<compile_context>
chip_gen: v5e
topology: v5e:2x2
jax: 0.10.0
libtpu: 0.0.40
codegen_flags: <defaults>
</compile_context>

<pallas_src>
import jax
import jax.numpy as jnp
from jax.experimental import pallas as pl
from jax.experimental.pallas import tpu as pltpu

# ----------------------------- small config ---------------------------------
D_MODEL = 32            # config.d_model
N_LAYER = 2             # config.n_layer
VOCAB = 16              # vocab_size (already multiple of pad_vocab_size_multiple)
D_INNER = 2 * D_MODEL   # mamba expand=2
D_STATE = 8             # SSM state size
D_CONV = 4              # depthwise conv width
DT_RANK = max(1, D_MODEL // 16)   # = 2
EPS = 1e-5              # norm_epsilon
BATCH = 2
SEQ = 8


def _rmsnorm(x, w):
    var = jnp.mean(x * x, axis=-1, keepdims=True)
    return x * jax.lax.rsqrt(var + EPS) * w


# ------------------------- fully fused network kernel ------------------------
def _build_fused_kernel(B, L):
    BL = B * L
    I = D_INNER
    S = D_STATE
    K = D_CONV

    def kernel(ids_ref, emb_ref, normw_ref, w_in_ref, w_out_ref,
               convw_ref, convb_ref, w_xbc_ref, b_dt_ref, a_neg_ref,
               d_skip_ref, norm_f_ref, out_ref, hid_s, res_s, y_buf):
        layer = pl.program_id(0)

        # ---- layer-0 prologue: in-kernel embedding (one-hot matmul) ----------
        @pl.when(layer == 0)
        def _():
            col = jax.lax.broadcasted_iota(jnp.int32, (BL, VOCAB), 1)
            onehot = (col == ids_ref[...]).astype(jnp.float32)
            hid_s[...] = jnp.dot(onehot, emb_ref[...],
                                 preferred_element_type=jnp.float32)
            res_s[...] = jnp.zeros_like(res_s)

        # ---- fused residual add + RMSNorm ------------------------------------
        resid_new = hid_s[...] + res_s[...]                      # (BL, D)
        h_norm = _rmsnorm(resid_new, normw_ref[0])

        # ---- shared (direction-tied) in_proj: one matmul serves both strands -
        xz = jnp.dot(h_norm.astype(jnp.bfloat16), w_in_ref[0],
                     preferred_element_type=jnp.float32)         # (BL, 2I)
        x_all = xz[:, :I]
        z_all = xz[:, I:]
        gate = z_all * jax.nn.sigmoid(z_all)                     # SiLU(z)

        x3 = x_all.reshape(B, L, I)
        pos = jax.lax.broadcasted_iota(jnp.int32, (B, L, I), 1)  # within-seq pos

        skip_sum = jnp.zeros((BL, I), jnp.float32)
        for d in range(2):   # d=0: forward strand, d=1: reverse (in-kernel)
            cw = convw_ref[0, d]        # (K, I)
            cb = convb_ref[0, d]        # (1, I)
            wxbc = w_xbc_ref[0, d]      # (I, I+2S)  bf16, [dt|B|C] packed
            bdt = b_dt_ref[0, d]        # (1, I)
            a_neg = a_neg_ref[0, d]     # (S, I)  = -exp(A_log), host precomputed
            dsk = d_skip_ref[0, d]      # (1, I)

            # depthwise conv1d: causal (d=0) / anti-causal (d=1); anti-causal
            # is exactly flip -> causal conv -> flip.
            acc = x3 * cw[K - 1]
            for s in range(1, K):
                if d == 0:     # shifted[t] = x[t - s]
                    rolled = pltpu.roll(x3, shift=s, axis=1)
                    shifted = jnp.where(pos >= s, rolled, 0.0)
                else:          # shifted[t] = x[t + s]
                    rolled = pltpu.roll(x3, shift=L - s, axis=1)
                    shifted = jnp.where(pos < L - s, rolled, 0.0)
                acc = acc + shifted * cw[K - 1 - s]
            x_c = acc.reshape(BL, I) + cb
            x_c = x_c * jax.nn.sigmoid(x_c)                      # SiLU, (BL, I)

            # one fused matmul -> [dt_pre | B | C]  (dt_proj pre-composed)
            xbc = jnp.dot(x_c.astype(jnp.bfloat16), wxbc,
                          preferred_element_type=jnp.float32)    # (BL, I+2S)
            dt = jax.nn.softplus(xbc[:, :I] + bdt)               # (BL, I)
            b_mat = xbc[:, I:I + S]                              # (BL, S)
            c_mat = xbc[:, I + S:]                               # (BL, S)

            # discretize (vectorized)
            dA = jnp.exp(dt[:, None, :] * a_neg[None, :, :])     # (BL, S, I)
            dbx = (dt * x_c)[:, None, :] * b_mat[:, :, None]     # (BL, S, I)

            dA4 = dA.reshape(B, L, S, I)
            dbx4 = dbx.reshape(B, L, S, I)
            c4 = c_mat.reshape(B, L, S)[..., None]               # (B, L, S, 1)

            # batch-merged selective scan, state (B*S, I); forward for d=0,
            # backward (== scan of flipped seq) for d=1.  C-contraction fused
            # per step; per-step outputs stored to VMEM scratch (no concat).
            h = jnp.zeros((B * S, I), jnp.float32)
            for step in range(L):
                t = step if d == 0 else L - 1 - step
                dA_t = dA4[:, t].reshape(B * S, I)
                dbx_t = dbx4[:, t].reshape(B * S, I)
                c_t = c4[:, t].reshape(B * S, 1)
                h = dA_t * h + dbx_t
                y_t = jnp.sum((h * c_t).reshape(B, S, I), axis=1)   # (B, I)
                for b in range(B):
                    y_buf[d, pl.ds(b * L + t, 1), :] = y_t[b:b + 1]

            skip_sum = skip_sum + x_c * dsk                      # D skip term

        # gate once, shared out_proj (tied): (y_fwd + y_rev) @ W_out
        y_sum = (y_buf[0] + y_buf[1] + skip_sum) * gate
        hid_new = jnp.dot(y_sum.astype(jnp.bfloat16), w_out_ref[0],
                          preferred_element_type=jnp.float32)

        hid_s[...] = hid_new
        res_s[...] = resid_new

        # ---- last-layer epilogue: final residual add + RMSNorm ---------------
        @pl.when(layer == pl.num_programs(0) - 1)
        def _():
            out_ref[...] = _rmsnorm(hid_new + resid_new, norm_f_ref[...])

    return kernel


def _const_spec(shape):
    n = len(shape)
    return pl.BlockSpec(tuple(shape), lambda l: (0,) * n)


def _layer_spec(shape):
    n = len(shape) - 1
    return pl.BlockSpec((1,) + tuple(shape[1:]), lambda l: (l,) + (0,) * n)


@jax.jit
def caduceus_forward(input_ids, params):
    B, L = input_ids.shape
    BL = B * L
    ids2 = input_ids.reshape(BL, 1).astype(jnp.int32)
    stk = params['stacked']
    emb = params['emb']
    norm_f_w = params['norm_f_w']
    n_layer = stk['norm_w'].shape[0]

    in_arrays = (ids2, emb, stk['norm_w'], stk['w_in'], stk['w_out'],
                 stk['conv_w'], stk['conv_b'], stk['w_xbc'], stk['b_dt'],
                 stk['a_neg'], stk['d_skip'], norm_f_w)
    in_specs = [
        _const_spec(ids2.shape),
        _const_spec(emb.shape),
        _layer_spec(stk['norm_w'].shape),
        _layer_spec(stk['w_in'].shape),
        _layer_spec(stk['w_out'].shape),
        _layer_spec(stk['conv_w'].shape),
        _layer_spec(stk['conv_b'].shape),
        _layer_spec(stk['w_xbc'].shape),
        _layer_spec(stk['b_dt'].shape),
        _layer_spec(stk['a_neg'].shape),
        _layer_spec(stk['d_skip'].shape),
        _const_spec(norm_f_w.shape),
    ]
    out = pl.pallas_call(
        _build_fused_kernel(B, L),
        out_shape=jax.ShapeDtypeStruct((BL, D_MODEL), jnp.float32),
        grid_spec=pltpu.PrefetchScalarGridSpec(
            num_scalar_prefetch=0,
            grid=(n_layer,),
            in_specs=in_specs,
            out_specs=pl.BlockSpec((BL, D_MODEL), lambda l: (0, 0)),
            scratch_shapes=[
                pltpu.VMEM((BL, D_MODEL), jnp.float32),   # hidden carry
                pltpu.VMEM((BL, D_MODEL), jnp.float32),   # residual carry
                pltpu.VMEM((2, BL, D_INNER), jnp.float32),  # per-dir scan out
            ]),
        compiler_params=pltpu.CompilerParams(
            dimension_semantics=("arbitrary",)),
    )(*in_arrays)
    return out.reshape(B, L, D_MODEL)


def dna_embedding_caduceus_forward(input_ids, params, *, rcps=False,
                                   conjoin_train=False, conjoin_test=False,
                                   training=False):
    """Mirrors DNAEmbeddingModelCaduceus.forward (returns (hidden_states, None))."""
    # TODO(synk): rcps=True branch needs the RCPS-wrapped Caduceus internals
    # (RCPSEmbedding / RCPSWrapper with doubled channels); not implemented.
    if conjoin_train or (conjoin_test and not training):
        hs = caduceus_forward(input_ids[..., 0], params)
        hs_rc = caduceus_forward(input_ids[..., 1], params)
        return jnp.stack([hs, hs_rc], axis=-1), None
    return caduceus_forward(input_ids, params), None


# --------------------------- deterministic params ----------------------------
def init_params(key):
    keys = jax.random.split(key, 256)
    kit = iter(keys)

    def nrm(shape, scale=0.02):
        return (scale * jax.random.normal(next(kit), shape)).astype(jnp.float32)

    emb = nrm((VOCAB, D_MODEL))
    # Mamba A init: A[:, s] = s+1; precompute a_neg = -exp(log A) on the host.
    a_neg = -jnp.broadcast_to(
        jnp.arange(1, D_STATE + 1, dtype=jnp.float32)[:, None],
        (D_STATE, D_INNER)).astype(jnp.float32)

    def mk_dir():
        # Per-direction Mamba params as PyTorch holds them, pre-packed for the
        # kernel: one (I, I+2S) projection = [ x_proj_dt @ dt_proj | B | C ].
        w_xp = nrm((D_INNER, DT_RANK + 2 * D_STATE))
        w_dt = nrm((DT_RANK, D_INNER), 0.5)
        w_xbc = jnp.concatenate(
            [w_xp[:, :DT_RANK] @ w_dt, w_xp[:, DT_RANK:]], axis=1)
        return dict(
            conv_w=nrm((D_CONV, D_INNER), 0.2),
            conv_b=nrm((1, D_INNER), 0.1),
            w_xbc=w_xbc.astype(jnp.bfloat16),
            b_dt=nrm((1, D_INNER), 0.1),
            a_neg=a_neg,
            d_skip=jnp.ones((1, D_INNER), jnp.float32),
        )

    layers = []
    for _ in range(N_LAYER):
        fwd, rev = mk_dir(), mk_dir()
        dirs = {k: jnp.stack([fwd[k], rev[k]], axis=0) for k in fwd}
        layers.append(dict(
            norm_w=jnp.ones((1, D_MODEL), jnp.float32),
            # in_proj / out_proj are weight-tied between directions (bf16 MXU
            # operands; accumulation stays f32 in the kernel).
            w_in=nrm((D_MODEL, 2 * D_INNER)).astype(jnp.bfloat16),
            w_out=nrm((D_INNER, D_MODEL)).astype(jnp.bfloat16),
            **dirs))
    stacked = {k: jnp.stack([lyr[k] for lyr in layers], axis=0)
               for k in layers[0]}
    return dict(emb=emb, norm_f_w=jnp.ones((1, D_MODEL), jnp.float32),
                stacked=stacked)


# ------------------------------------ main -----------------------------------
if __name__ == "__main__":
    root = jax.random.PRNGKey(0)
    pkey, dkey = jax.random.split(root)
    params = init_params(pkey)
    input_ids = jax.random.randint(dkey, (BATCH, SEQ), 0, VOCAB, dtype=jnp.int32)

    hidden_states, _ = dna_embedding_caduceus_forward(input_ids, params)
    hidden_states = jax.block_until_ready(hidden_states)
    assert hidden_states.shape == (BATCH, SEQ, D_MODEL)
    assert hidden_states.dtype == jnp.float32
    print("KERNEL_OK")
</pallas_src>

<mosaic_0001>
module attributes {stable_mosaic.version = 11 : i64} {
  func.func @kernel(%arg0: i32, %arg1: memref<16x1xi32, #tpu.memory_space<vmem>>, %arg2: memref<16x32xf32, #tpu.memory_space<vmem>>, %arg3: memref<1x1x32xf32, #tpu.memory_space<vmem>>, %arg4: memref<1x32x128xbf16, #tpu.memory_space<vmem>>, %arg5: memref<1x64x32xbf16, #tpu.memory_space<vmem>>, %arg6: memref<1x2x4x64xf32, #tpu.memory_space<vmem>>, %arg7: memref<1x2x1x64xf32, #tpu.memory_space<vmem>>, %arg8: memref<1x2x64x80xbf16, #tpu.memory_space<vmem>>, %arg9: memref<1x2x1x64xf32, #tpu.memory_space<vmem>>, %arg10: memref<1x2x8x64xf32, #tpu.memory_space<vmem>>, %arg11: memref<1x2x1x64xf32, #tpu.memory_space<vmem>>, %arg12: memref<1x32xf32, #tpu.memory_space<vmem>>, %arg13: memref<16x32xf32, #tpu.memory_space<vmem>>, %arg14: memref<16x32xf32, #tpu.memory_space<vmem>>, %arg15: memref<16x32xf32, #tpu.memory_space<vmem>>, %arg16: memref<2x16x64xf32, #tpu.memory_space<vmem>>) attributes {dimension_semantics = [#tpu.dimension_semantics<arbitrary>], iteration_bounds = array<i64: 2>, scalar_prefetch = 0 : i64, scratch_operands = 3 : i64, tpu.core_type = #tpu.core_type<tc>, window_params = [{pipeline_mode = #tpu.pipeline_mode<synchronous>, transform_indices = @transform_0, window_bounds = array<i64: 16, 1>}, {pipeline_mode = #tpu.pipeline_mode<synchronous>, transform_indices = @transform_1, window_bounds = array<i64: 16, 32>}, {transform_indices = @transform_2, window_bounds = array<i64: 1, 1, 32>}, {transform_indices = @transform_3, window_bounds = array<i64: 1, 32, 128>}, {transform_indices = @transform_4, window_bounds = array<i64: 1, 64, 32>}, {transform_indices = @transform_5, window_bounds = array<i64: 1, 2, 4, 64>}, {transform_indices = @transform_6, window_bounds = array<i64: 1, 2, 1, 64>}, {transform_indices = @transform_7, window_bounds = array<i64: 1, 2, 64, 80>}, {transform_indices = @transform_8, window_bounds = array<i64: 1, 2, 1, 64>}, {transform_indices = @transform_9, window_bounds = array<i64: 1, 2, 8, 64>}, {transform_indices = @transform_10, window_bounds = array<i64: 1, 2, 1, 64>}, {pipeline_mode = #tpu.pipeline_mode<synchronous>, transform_indices = @transform_11, window_bounds = array<i64: 1, 32>}, {pipeline_mode = #tpu.pipeline_mode<synchronous>, transform_indices = @transform_12, window_bounds = array<i64: 16, 32>}]} {
    %c0_i32 = arith.constant 0 : i32
    %0 = arith.cmpi eq, %arg0, %c0_i32 : i32
    %1 = arith.extui %0 : i1 to i32
    %c0_i32_0 = arith.constant 0 : i32
    %2 = arith.cmpi ne, %1, %c0_i32_0 : i32
    scf.if %2 {
      %619 = tpu.iota {dimensions = array<i32: 1>} : vector<16x16xi32>
      %c0_198 = arith.constant 0 : index
      %c0_199 = arith.constant 0 : index
      %620 = vector.load %arg1[%c0_198, %c0_199] : memref<16x1xi32, #tpu.memory_space<vmem>>, vector<16x1xi32>
      %621 = vector.broadcast %620 : vector<16x1xi32> to vector<16x16xi32>
      %622 = arith.cmpi eq, %619, %621 : vector<16x16xi32>
      %623 = arith.extui %622 : vector<16x16xi1> to vector<16x16xi32>
      %624 = arith.sitofp %623 : vector<16x16xi32> to vector<16x16xf32>
      %c0_200 = arith.constant 0 : index
      %c0_201 = arith.constant 0 : index
      %625 = vector.load %arg2[%c0_200, %c0_201] : memref<16x32xf32, #tpu.memory_space<vmem>>, vector<16x32xf32>
      %cst_202 = arith.constant dense<0.000000e+00> : vector<16x32xf32>
      %626 = tpu.matmul %624, %625, %cst_202 {dimension_numbers = #tpu.dot_dimension_numbers<[1], [0], [0], [1], [0, 0, 1, 1], [], []>} : vector<16x16xf32>, vector<16x32xf32>, vector<16x32xf32> -> vector<16x32xf32>
      %c0_203 = arith.constant 0 : index
      %c0_204 = arith.constant 0 : index
      %627 = vector.load %arg14[%c0_203, %c0_204] : memref<16x32xf32, #tpu.memory_space<vmem>>, vector<16x32xf32>
      tpu.vector_store %arg14[%c0_203, %c0_204], %626 {strides = array<i32>} : memref<16x32xf32, #tpu.memory_space<vmem>>, vector<16x32xf32>,
      %cst_205 = arith.constant 0.000000e+00 : f32
      %628 = vector.broadcast %cst_205 : f32 to vector<16x32xf32>
      %c0_206 = arith.constant 0 : index
      %c0_207 = arith.constant 0 : index
      %629 = vector.load %arg15[%c0_206, %c0_207] : memref<16x32xf32, #tpu.memory_space<vmem>>, vector<16x32xf32>
      tpu.vector_store %arg15[%c0_206, %c0_207], %628 {strides = array<i32>} : memref<16x32xf32, #tpu.memory_space<vmem>>, vector<16x32xf32>,
    } else {
    }
    %c0 = arith.constant 0 : index
    %c0_1 = arith.constant 0 : index
    %3 = vector.load %arg14[%c0, %c0_1] : memref<16x32xf32, #tpu.memory_space<vmem>>, vector<16x32xf32>
    %c0_2 = arith.constant 0 : index
    %c0_3 = arith.constant 0 : index
    %4 = vector.load %arg15[%c0_2, %c0_3] : memref<16x32xf32, #tpu.memory_space<vmem>>, vector<16x32xf32>
    %5 = arith.addf %3, %4 : vector<16x32xf32>
    %c0_4 = arith.constant 0 : index
    %c0_5 = arith.constant 0 : index
    %c0_6 = arith.constant 0 : index
    %6 = vector.load %arg3[%c0_4, %c0_5, %c0_6] : memref<1x1x32xf32, #tpu.memory_space<vmem>>, vector<1x1x32xf32>
    %7 = vector.shape_cast %6 : vector<1x1x32xf32> to vector<1x32xf32>
    %8 = arith.mulf %5, %5 : vector<16x32xf32>
    %cst = arith.constant dense<0.000000e+00> : vector<16xf32>
    %9 = vector.multi_reduction <add>, %8, %cst [1] : vector<16x32xf32> to vector<16xf32>
    %10 = vector.shape_cast %9 : vector<16xf32> to vector<16x1xf32>
    %cst_7 = arith.constant 3.200000e+01 : f32
    %11 = vector.broadcast %cst_7 : f32 to vector<16x1xf32>
    %12 = arith.divf %10, %11 : vector<16x1xf32>
    %cst_8 = arith.constant 9.99999974E-6 : f32
    %13 = vector.broadcast %cst_8 : f32 to vector<16x1xf32>
    %14 = arith.addf %12, %13 : vector<16x1xf32>
    %15 = math.rsqrt %14 : vector<16x1xf32>
    %16 = vector.broadcast %15 : vector<16x1xf32> to vector<16x32xf32>
    %17 = arith.mulf %5, %16 : vector<16x32xf32>
    %18 = vector.broadcast %7 : vector<1x32xf32> to vector<16x32xf32>
    %19 = arith.mulf %17, %18 : vector<16x32xf32>
    %20 = arith.truncf %19 : vector<16x32xf32> to vector<16x32xbf16>
    %c0_9 = arith.constant 0 : index
    %c0_10 = arith.constant 0 : index
    %c0_11 = arith.constant 0 : index
    %21 = vector.load %arg4[%c0_9, %c0_10, %c0_11] : memref<1x32x128xbf16, #tpu.memory_space<vmem>>, vector<1x32x128xbf16>
    %22 = vector.shape_cast %21 : vector<1x32x128xbf16> to vector<32x128xbf16>
    %cst_12 = arith.constant dense<0.000000e+00> : vector<16x128xf32>
    %23 = tpu.matmul %20, %22, %cst_12 {dimension_numbers = #tpu.dot_dimension_numbers<[1], [0], [0], [1], [0, 0, 1, 1], [], []>} : vector<16x32xbf16>, vector<32x128xbf16>, vector<16x128xf32> -> vector<16x128xf32>
    %24 = vector.extract_strided_slice %23 {offsets = [0, 0], sizes = [16, 64], strides = [1, 1]} : vector<16x128xf32> to vector<16x64xf32>
    %25 = vector.extract_strided_slice %23 {offsets = [0, 64], sizes = [16, 64], strides = [1, 1]} : vector<16x128xf32> to vector<16x64xf32>
    %26 = arith.negf %25 : vector<16x64xf32>
    %27 = math.exp %26 : vector<16x64xf32>
    %cst_13 = arith.constant 1.000000e+00 : f32
    %28 = vector.broadcast %cst_13 : f32 to vector<16x64xf32>
    %29 = arith.addf %28, %27 : vector<16x64xf32>
    %30 = arith.divf %28, %29 : vector<16x64xf32>
    %31 = arith.mulf %25, %30 : vector<16x64xf32>
    %32 = vector.shape_cast %24 : vector<16x64xf32> to vector<2x8x64xf32>
    %33 = tpu.iota {dimensions = array<i32: 1>} : vector<2x8x64xi32>
    %cst_14 = arith.constant 0.000000e+00 : f32
    %34 = vector.broadcast %cst_14 : f32 to vector<16x64xf32>
    %c0_15 = arith.constant 0 : index
    %c0_16 = arith.constant 0 : index
    %c0_17 = arith.constant 0 : index
    %c0_18 = arith.constant 0 : index
    %35 = vector.load %arg6[%c0_15, %c0_16, %c0_17, %c0_18] : memref<1x2x4x64xf32, #tpu.memory_space<vmem>>, vector<1x1x4x64xf32>
    %36 = vector.shape_cast %35 : vector<1x1x4x64xf32> to vector<4x64xf32>
    %c0_19 = arith.constant 0 : index
    %c0_20 = arith.constant 0 : index
    %c0_21 = arith.constant 0 : index
    %c0_22 = arith.constant 0 : index
    %37 = vector.load %arg7[%c0_19, %c0_20, %c0_21, %c0_22] : memref<1x2x1x64xf32, #tpu.memory_space<vmem>>, vector<1x1x1x64xf32>
    %38 = vector.shape_cast %37 : vector<1x1x1x64xf32> to vector<1x64xf32>
    %c0_23 = arith.constant 0 : index
    %c0_24 = arith.constant 0 : index
    %c0_25 = arith.constant 0 : index
    %c0_26 = arith.constant 0 : index
    %39 = vector.load %arg8[%c0_23, %c0_24, %c0_25, %c0_26] : memref<1x2x64x80xbf16, #tpu.memory_space<vmem>>, vector<1x1x64x80xbf16>
    %40 = vector.shape_cast %39 : vector<1x1x64x80xbf16> to vector<64x80xbf16>
    %c0_27 = arith.constant 0 : index
    %c0_28 = arith.constant 0 : index
    %c0_29 = arith.constant 0 : index
    %c0_30 = arith.constant 0 : index
    %41 = vector.load %arg9[%c0_27, %c0_28, %c0_29, %c0_30] : memref<1x2x1x64xf32, #tpu.memory_space<vmem>>, vector<1x1x1x64xf32>
    %42 = vector.shape_cast %41 : vector<1x1x1x64xf32> to vector<1x64xf32>
    %c0_31 = arith.constant 0 : index
    %c0_32 = arith.constant 0 : index
    %c0_33 = arith.constant 0 : index
    %c0_34 = arith.constant 0 : index
    %43 = vector.load %arg10[%c0_31, %c0_32, %c0_33, %c0_34] : memref<1x2x8x64xf32, #tpu.memory_space<vmem>>, vector<1x1x8x64xf32>
    %44 = vector.shape_cast %43 : vector<1x1x8x64xf32> to vector<8x64xf32>
    %c0_35 = arith.constant 0 : index
    %c0_36 = arith.constant 0 : index
    %c0_37 = arith.constant 0 : index
    %c0_38 = arith.constant 0 : index
    %45 = vector.load %arg11[%c0_35, %c0_36, %c0_37, %c0_38] : memref<1x2x1x64xf32, #tpu.memory_space<vmem>>, vector<1x1x1x64xf32>
    %46 = vector.shape_cast %45 : vector<1x1x1x64xf32> to vector<1x64xf32>
    %47 = vector.extract_strided_slice %36 {offsets = [3, 0], sizes = [1, 64], strides = [1, 1]} : vector<4x64xf32> to vector<1x64xf32>
    %48 = vector.shape_cast %47 : vector<1x64xf32> to vector<64xf32>
    %49 = vector.shape_cast %48 : vector<64xf32> to vector<1x1x64xf32>
    %50 = vector.broadcast %49 : vector<1x1x64xf32> to vector<2x8x64xf32>
    %51 = arith.mulf %32, %50 : vector<2x8x64xf32>
    %c1_i32 = arith.constant 1 : i32
    %52 = tpu.dynamic_rotate %32 by %c1_i32 dim 1 : vector<2x8x64xf32>, i32 -> vector<2x8x64xf32>
    %c1_i32_39 = arith.constant 1 : i32
    %53 = vector.broadcast %c1_i32_39 : i32 to vector<2x8x64xi32>
    %54 = arith.cmpi sge, %33, %53 : vector<2x8x64xi32>
    %cst_40 = arith.constant 0.000000e+00 : f32
    %55 = vector.broadcast %cst_40 : f32 to vector<2x8x64xf32>
    %56 = arith.select %54, %52, %55 : vector<2x8x64xi1>, vector<2x8x64xf32>
    %57 = vector.extract_strided_slice %36 {offsets = [2, 0], sizes = [1, 64], strides = [1, 1]} : vector<4x64xf32> to vector<1x64xf32>
    %58 = vector.shape_cast %57 : vector<1x64xf32> to vector<64xf32>
    %59 = vector.shape_cast %58 : vector<64xf32> to vector<1x1x64xf32>
    %60 = vector.broadcast %59 : vector<1x1x64xf32> to vector<2x8x64xf32>
    %61 = arith.mulf %56, %60 : vector<2x8x64xf32>
    %62 = arith.addf %51, %61 : vector<2x8x64xf32>
    %c2_i32 = arith.constant 2 : i32
    %63 = tpu.dynamic_rotate %32 by %c2_i32 dim 1 : vector<2x8x64xf32>, i32 -> vector<2x8x64xf32>
    %c2_i32_41 = arith.constant 2 : i32
    %64 = vector.broadcast %c2_i32_41 : i32 to vector<2x8x64xi32>
    %65 = arith.cmpi sge, %33, %64 : vector<2x8x64xi32>
    %cst_42 = arith.constant 0.000000e+00 : f32
    %66 = vector.broadcast %cst_42 : f32 to vector<2x8x64xf32>
    %67 = arith.select %65, %63, %66 : vector<2x8x64xi1>, vector<2x8x64xf32>
    %68 = vector.extract_strided_slice %36 {offsets = [1, 0], sizes = [1, 64], strides = [1, 1]} : vector<4x64xf32> to vector<1x64xf32>
    %69 = vector.shape_cast %68 : vector<1x64xf32> to vector<64xf32>
    %70 = vector.shape_cast %69 : vector<64xf32> to vector<1x1x64xf32>
    %71 = vector.broadcast %70 : vector<1x1x64xf32> to vector<2x8x64xf32>
    %72 = arith.mulf %67, %71 : vector<2x8x64xf32>
    %73 = arith.addf %62, %72 : vector<2x8x64xf32>
    %c3_i32 = arith.constant 3 : i32
    %74 = tpu.dynamic_rotate %32 by %c3_i32 dim 1 : vector<2x8x64xf32>, i32 -> vector<2x8x64xf32>
    %c3_i32_43 = arith.constant 3 : i32
    %75 = vector.broadcast %c3_i32_43 : i32 to vector<2x8x64xi32>
    %76 = arith.cmpi sge, %33, %75 : vector<2x8x64xi32>
    %cst_44 = arith.constant 0.000000e+00 : f32
    %77 = vector.broadcast %cst_44 : f32 to vector<2x8x64xf32>
    %78 = arith.select %76, %74, %77 : vector<2x8x64xi1>, vector<2x8x64xf32>
    %79 = vector.extract_strided_slice %36 {offsets = [0, 0], sizes = [1, 64], strides = [1, 1]} : vector<4x64xf32> to vector<1x64xf32>
    %80 = vector.shape_cast %79 : vector<1x64xf32> to vector<64xf32>
    %81 = vector.shape_cast %80 : vector<64xf32> to vector<1x1x64xf32>
    %82 = vector.broadcast %81 : vector<1x1x64xf32> to vector<2x8x64xf32>
    %83 = arith.mulf %78, %82 : vector<2x8x64xf32>
    %84 = arith.addf %73, %83 : vector<2x8x64xf32>
    %85 = vector.shape_cast %84 : vector<2x8x64xf32> to vector<16x64xf32>
    %86 = vector.broadcast %38 : vector<1x64xf32> to vector<16x64xf32>
    %87 = arith.addf %85, %86 : vector<16x64xf32>
    %88 = arith.negf %87 : vector<16x64xf32>
    %89 = math.exp %88 : vector<16x64xf32>
    %cst_45 = arith.constant 1.000000e+00 : f32
    %90 = vector.broadcast %cst_45 : f32 to vector<16x64xf32>
    %91 = arith.addf %90, %89 : vector<16x64xf32>
    %92 = arith.divf %90, %91 : vector<16x64xf32>
    %93 = arith.mulf %87, %92 : vector<16x64xf32>
    %94 = arith.truncf %93 : vector<16x64xf32> to vector<16x64xbf16>
    %cst_46 = arith.constant dense<0.000000e+00> : vector<16x80xf32>
    %95 = tpu.matmul %94, %40, %cst_46 {dimension_numbers = #tpu.dot_dimension_numbers<[1], [0], [0], [1], [0, 0, 1, 1], [], []>} : vector<16x64xbf16>, vector<64x80xbf16>, vector<16x80xf32> -> vector<16x80xf32>
    %96 = vector.extract_strided_slice %95 {offsets = [0, 0], sizes = [16, 64], strides = [1, 1]} : vector<16x80xf32> to vector<16x64xf32>
    %97 = vector.broadcast %42 : vector<1x64xf32> to vector<16x64xf32>
    %98 = arith.addf %96, %97 : vector<16x64xf32>
    %cst_47 = arith.constant 0.000000e+00 : f32
    %99 = vector.broadcast %cst_47 : f32 to vector<16x64xf32>
    %100 = arith.maximumf %98, %99 : vector<16x64xf32>
    %101 = vector.broadcast %cst_47 : f32 to vector<16x64xf32>
    %102 = arith.subf %98, %101 : vector<16x64xf32>
    %103 = arith.cmpf one, %102, %102 : vector<16x64xf32>
    %104 = vector.broadcast %cst_47 : f32 to vector<16x64xf32>
    %105 = arith.addf %98, %104 : vector<16x64xf32>
    %106 = math.absf %102 : vector<16x64xf32>
    %cst_48 = arith.constant 0.000000e+00 : f32
    %107 = vector.broadcast %cst_48 : f32 to vector<16x64xf32>
    %108 = arith.subf %107, %106 : vector<16x64xf32>
    %109 = math.exp %108 : vector<16x64xf32>
    %110 = math.log1p %109 : vector<16x64xf32>
    %111 = arith.addf %100, %110 : vector<16x64xf32>
    %112 = arith.select %103, %105, %111 : vector<16x64xi1>, vector<16x64xf32>
    %113 = vector.extract_strided_slice %95 {offsets = [0, 64], sizes = [16, 8], strides = [1, 1]} : vector<16x80xf32> to vector<16x8xf32>
    %114 = vector.extract_strided_slice %95 {offsets = [0, 72], sizes = [16, 8], strides = [1, 1]} : vector<16x80xf32> to vector<16x8xf32>
    %115 = vector.shape_cast %112 : vector<16x64xf32> to vector<16x1x64xf32>
    %116 = vector.shape_cast %44 : vector<8x64xf32> to vector<1x8x64xf32>
    %117 = vector.broadcast %115 : vector<16x1x64xf32> to vector<16x8x64xf32>
    %118 = vector.broadcast %116 : vector<1x8x64xf32> to vector<16x8x64xf32>
    %119 = arith.mulf %117, %118 : vector<16x8x64xf32>
    %120 = math.exp %119 : vector<16x8x64xf32>
    %121 = arith.mulf %112, %93 : vector<16x64xf32>
    %122 = vector.shape_cast %121 : vector<16x64xf32> to vector<16x1x64xf32>
    %123 = vector.shape_cast %113 : vector<16x8xf32> to vector<16x8x1xf32>
    %124 = vector.broadcast %122 : vector<16x1x64xf32> to vector<16x8x64xf32>
    %125 = vector.broadcast %123 : vector<16x8x1xf32> to vector<16x8x64xf32>
    %126 = arith.mulf %124, %125 : vector<16x8x64xf32>
    %127 = vector.shape_cast %120 : vector<16x8x64xf32> to vector<2x8x8x64xf32>
    %128 = vector.shape_cast %126 : vector<16x8x64xf32> to vector<2x8x8x64xf32>
    %129 = vector.shape_cast %114 : vector<16x8xf32> to vector<2x8x8xf32>
    %130 = vector.shape_cast %129 : vector<2x8x8xf32> to vector<2x8x8x1xf32>
    %cst_49 = arith.constant 0.000000e+00 : f32
    %131 = vector.broadcast %cst_49 : f32 to vector<16x64xf32>
    %132 = vector.extract_strided_slice %127 {offsets = [0, 0, 0, 0], sizes = [2, 1, 8, 64], strides = [1, 1, 1, 1]} : vector<2x8x8x64xf32> to vector<2x1x8x64xf32>
    %133 = vector.shape_cast %132 : vector<2x1x8x64xf32> to vector<2x8x64xf32>
    %134 = vector.shape_cast %133 : vector<2x8x64xf32> to vector<16x64xf32>
    %135 = vector.extract_strided_slice %128 {offsets = [0, 0, 0, 0], sizes = [2, 1, 8, 64], strides = [1, 1, 1, 1]} : vector<2x8x8x64xf32> to vector<2x1x8x64xf32>
    %136 = vector.shape_cast %135 : vector<2x1x8x64xf32> to vector<2x8x64xf32>
    %137 = vector.shape_cast %136 : vector<2x8x64xf32> to vector<16x64xf32>
    %138 = vector.extract_strided_slice %130 {offsets = [0, 0, 0, 0], sizes = [2, 1, 8, 1], strides = [1, 1, 1, 1]} : vector<2x8x8x1xf32> to vector<2x1x8x1xf32>
    %139 = vector.shape_cast %138 : vector<2x1x8x1xf32> to vector<2x8x1xf32>
    %140 = vector.shape_cast %139 : vector<2x8x1xf32> to vector<16x1xf32>
    %141 = arith.mulf %134, %131 : vector<16x64xf32>
    %142 = arith.addf %141, %137 : vector<16x64xf32>
    %143 = vector.broadcast %140 : vector<16x1xf32> to vector<16x64xf32>
    %144 = arith.mulf %142, %143 : vector<16x64xf32>
    %145 = vector.shape_cast %144 : vector<16x64xf32> to vector<2x8x64xf32>
    %cst_50 = arith.constant dense<0.000000e+00> : vector<2x64xf32>
    %146 = vector.multi_reduction <add>, %145, %cst_50 [1] : vector<2x8x64xf32> to vector<2x64xf32>
    %147 = vector.extract_strided_slice %146 {offsets = [0, 0], sizes = [1, 64], strides = [1, 1]} : vector<2x64xf32> to vector<1x64xf32>
    %c0_51 = arith.constant 0 : index
    %c0_52 = arith.constant 0 : index
    %c0_53 = arith.constant 0 : index
    %148 = vector.load %arg16[%c0_51, %c0_52, %c0_53] : memref<2x16x64xf32, #tpu.memory_space<vmem>>, vector<1x1x64xf32>
    %149 = vector.shape_cast %148 : vector<1x1x64xf32> to vector<1x64xf32>
    %150 = vector.shape_cast %147 : vector<1x64xf32> to vector<1x1x64xf32>
    tpu.vector_store %arg16[%c0_51, %c0_52, %c0_53], %150 {strides = array<i32>} : memref<2x16x64xf32, #tpu.memory_space<vmem>>, vector<1x1x64xf32>,
    %151 = vector.extract_strided_slice %146 {offsets = [1, 0], sizes = [1, 64], strides = [1, 1]} : vector<2x64xf32> to vector<1x64xf32>
    %c0_54 = arith.constant 0 : index
    %c8 = arith.constant 8 : index
    %c0_55 = arith.constant 0 : index
    %152 = vector.load %arg16[%c0_54, %c8, %c0_55] : memref<2x16x64xf32, #tpu.memory_space<vmem>>, vector<1x1x64xf32>
    %153 = vector.shape_cast %152 : vector<1x1x64xf32> to vector<1x64xf32>
    %154 = vector.shape_cast %151 : vector<1x64xf32> to vector<1x1x64xf32>
    tpu.vector_store %arg16[%c0_54, %c8, %c0_55], %154 {strides = array<i32>} : memref<2x16x64xf32, #tpu.memory_space<vmem>>, vector<1x1x64xf32>,
    %155 = vector.extract_strided_slice %127 {offsets = [0, 1, 0, 0], sizes = [2, 1, 8, 64], strides = [1, 1, 1, 1]} : vector<2x8x8x64xf32> to vector<2x1x8x64xf32>
    %156 = vector.shape_cast %155 : vector<2x1x8x64xf32> to vector<2x8x64xf32>
    %157 = vector.shape_cast %156 : vector<2x8x64xf32> to vector<16x64xf32>
    %158 = vector.extract_strided_slice %128 {offsets = [0, 1, 0, 0], sizes = [2, 1, 8, 64], strides = [1, 1, 1, 1]} : vector<2x8x8x64xf32> to vector<2x1x8x64xf32>
    %159 = vector.shape_cast %158 : vector<2x1x8x64xf32> to vector<2x8x64xf32>
    %160 = vector.shape_cast %159 : vector<2x8x64xf32> to vector<16x64xf32>
    %161 = vector.extract_strided_slice %130 {offsets = [0, 1, 0, 0], sizes = [2, 1, 8, 1], strides = [1, 1, 1, 1]} : vector<2x8x8x1xf32> to vector<2x1x8x1xf32>
    %162 = vector.shape_cast %161 : vector<2x1x8x1xf32> to vector<2x8x1xf32>
    %163 = vector.shape_cast %162 : vector<2x8x1xf32> to vector<16x1xf32>
    %164 = arith.mulf %157, %142 : vector<16x64xf32>
    %165 = arith.addf %164, %160 : vector<16x64xf32>
    %166 = vector.broadcast %163 : vector<16x1xf32> to vector<16x64xf32>
    %167 = arith.mulf %165, %166 : vector<16x64xf32>
    %168 = vector.shape_cast %167 : vector<16x64xf32> to vector<2x8x64xf32>
    %cst_56 = arith.constant dense<0.000000e+00> : vector<2x64xf32>
    %169 = vector.multi_reduction <add>, %168, %cst_56 [1] : vector<2x8x64xf32> to vector<2x64xf32>
    %170 = vector.extract_strided_slice %169 {offsets = [0, 0], sizes = [1, 64], strides = [1, 1]} : vector<2x64xf32> to vector<1x64xf32>
    %c0_57 = arith.constant 0 : index
    %c1 = arith.constant 1 : index
    %c0_58 = arith.constant 0 : index
    %171 = vector.load %arg16[%c0_57, %c1, %c0_58] : memref<2x16x64xf32, #tpu.memory_space<vmem>>, vector<1x1x64xf32>
    %172 = vector.shape_cast %171 : vector<1x1x64xf32> to vector<1x64xf32>
    %173 = vector.shape_cast %170 : vector<1x64xf32> to vector<1x1x64xf32>
    tpu.vector_store %arg16[%c0_57, %c1, %c0_58], %173 {strides = array<i32>} : memref<2x16x64xf32, #tpu.memory_space<vmem>>, vector<1x1x64xf32>,
    %174 = vector.extract_strided_slice %169 {offsets = [1, 0], sizes = [1, 64], strides = [1, 1]} : vector<2x64xf32> to vector<1x64xf32>
    %c0_59 = arith.constant 0 : index
    %c9 = arith.constant 9 : index
    %c0_60 = arith.constant 0 : index
    %175 = vector.load %arg16[%c0_59, %c9, %c0_60] : memref<2x16x64xf32, #tpu.memory_space<vmem>>, vector<1x1x64xf32>
    %176 = vector.shape_cast %175 : vector<1x1x64xf32> to vector<1x64xf32>
    %177 = vector.shape_cast %174 : vector<1x64xf32> to vector<1x1x64xf32>
    tpu.vector_store %arg16[%c0_59, %c9, %c0_60], %177 {strides = array<i32>} : memref<2x16x64xf32, #tpu.memory_space<vmem>>, vector<1x1x64xf32>,
    %178 = vector.extract_strided_slice %127 {offsets = [0, 2, 0, 0], sizes = [2, 1, 8, 64], strides = [1, 1, 1, 1]} : vector<2x8x8x64xf32> to vector<2x1x8x64xf32>
    %179 = vector.shape_cast %178 : vector<2x1x8x64xf32> to vector<2x8x64xf32>
    %180 = vector.shape_cast %179 : vector<2x8x64xf32> to vector<16x64xf32>
    %181 = vector.extract_strided_slice %128 {offsets = [0, 2, 0, 0], sizes = [2, 1, 8, 64], strides = [1, 1, 1, 1]} : vector<2x8x8x64xf32> to vector<2x1x8x64xf32>
    %182 = vector.shape_cast %181 : vector<2x1x8x64xf32> to vector<2x8x64xf32>
    %183 = vector.shape_cast %182 : vector<2x8x64xf32> to vector<16x64xf32>
    %184 = vector.extract_strided_slice %130 {offsets = [0, 2, 0, 0], sizes = [2, 1, 8, 1], strides = [1, 1, 1, 1]} : vector<2x8x8x1xf32> to vector<2x1x8x1xf32>
    %185 = vector.shape_cast %184 : vector<2x1x8x1xf32> to vector<2x8x1xf32>
    %186 = vector.shape_cast %185 : vector<2x8x1xf32> to vector<16x1xf32>
    %187 = arith.mulf %180, %165 : vector<16x64xf32>
    %188 = arith.addf %187, %183 : vector<16x64xf32>
    %189 = vector.broadcast %186 : vector<16x1xf32> to vector<16x64xf32>
    %190 = arith.mulf %188, %189 : vector<16x64xf32>
    %191 = vector.shape_cast %190 : vector<16x64xf32> to vector<2x8x64xf32>
    %cst_61 = arith.constant dense<0.000000e+00> : vector<2x64xf32>
    %192 = vector.multi_reduction <add>, %191, %cst_61 [1] : vector<2x8x64xf32> to vector<2x64xf32>
    %193 = vector.extract_strided_slice %192 {offsets = [0, 0], sizes = [1, 64], strides = [1, 1]} : vector<2x64xf32> to vector<1x64xf32>
    %c0_62 = arith.constant 0 : index
    %c2 = arith.constant 2 : index
    %c0_63 = arith.constant 0 : index
    %194 = vector.load %arg16[%c0_62, %c2, %c0_63] : memref<2x16x64xf32, #tpu.memory_space<vmem>>, vector<1x1x64xf32>
    %195 = vector.shape_cast %194 : vector<1x1x64xf32> to vector<1x64xf32>
    %196 = vector.shape_cast %193 : vector<1x64xf32> to vector<1x1x64xf32>
    tpu.vector_store %arg16[%c0_62, %c2, %c0_63], %196 {strides = array<i32>} : memref<2x16x64xf32, #tpu.memory_space<vmem>>, vector<1x1x64xf32>,
    %197 = vector.extract_strided_slice %192 {offsets = [1, 0], sizes = [1, 64], strides = [1, 1]} : vector<2x64xf32> to vector<1x64xf32>
    %c0_64 = arith.constant 0 : index
    %c10 = arith.constant 10 : index
    %c0_65 = arith.constant 0 : index
    %198 = vector.load %arg16[%c0_64, %c10, %c0_65] : memref<2x16x64xf32, #tpu.memory_space<vmem>>, vector<1x1x64xf32>
    %199 = vector.shape_cast %198 : vector<1x1x64xf32> to vector<1x64xf32>
    %200 = vector.shape_cast %197 : vector<1x64xf32> to vector<1x1x64xf32>
    tpu.vector_store %arg16[%c0_64, %c10, %c0_65], %200 {strides = array<i32>} : memref<2x16x64xf32, #tpu.memory_space<vmem>>, vector<1x1x64xf32>,
    %201 = vector.extract_strided_slice %127 {offsets = [0, 3, 0, 0], sizes = [2, 1, 8, 64], strides = [1, 1, 1, 1]} : vector<2x8x8x64xf32> to vector<2x1x8x64xf32>
    %202 = vector.shape_cast %201 : vector<2x1x8x64xf32> to vector<2x8x64xf32>
    %203 = vector.shape_cast %202 : vector<2x8x64xf32> to vector<16x64xf32>
    %204 = vector.extract_strided_slice %128 {offsets = [0, 3, 0, 0], sizes = [2, 1, 8, 64], strides = [1, 1, 1, 1]} : vector<2x8x8x64xf32> to vector<2x1x8x64xf32>
    %205 = vector.shape_cast %204 : vector<2x1x8x64xf32> to vector<2x8x64xf32>
    %206 = vector.shape_cast %205 : vector<2x8x64xf32> to vector<16x64xf32>
    %207 = vector.extract_strided_slice %130 {offsets = [0, 3, 0, 0], sizes = [2, 1, 8, 1], strides = [1, 1, 1, 1]} : vector<2x8x8x1xf32> to vector<2x1x8x1xf32>
    %208 = vector.shape_cast %207 : vector<2x1x8x1xf32> to vector<2x8x1xf32>
    %209 = vector.shape_cast %208 : vector<2x8x1xf32> to vector<16x1xf32>
    %210 = arith.mulf %203, %188 : vector<16x64xf32>
    %211 = arith.addf %210, %206 : vector<16x64xf32>
    %212 = vector.broadcast %209 : vector<16x1xf32> to vector<16x64xf32>
    %213 = arith.mulf %211, %212 : vector<16x64xf32>
    %214 = vector.shape_cast %213 : vector<16x64xf32> to vector<2x8x64xf32>
    %cst_66 = arith.constant dense<0.000000e+00> : vector<2x64xf32>
    %215 = vector.multi_reduction <add>, %214, %cst_66 [1] : vector<2x8x64xf32> to vector<2x64xf32>
    %216 = vector.extract_strided_slice %215 {offsets = [0, 0], sizes = [1, 64], strides = [1, 1]} : vector<2x64xf32> to vector<1x64xf32>
    %c0_67 = arith.constant 0 : index
    %c3 = arith.constant 3 : index
    %c0_68 = arith.constant 0 : index
    %217 = vector.load %arg16[%c0_67, %c3, %c0_68] : memref<2x16x64xf32, #tpu.memory_space<vmem>>, vector<1x1x64xf32>
    %218 = vector.shape_cast %217 : vector<1x1x64xf32> to vector<1x64xf32>
    %219 = vector.shape_cast %216 : vector<1x64xf32> to vector<1x1x64xf32>
    tpu.vector_store %arg16[%c0_67, %c3, %c0_68], %219 {strides = array<i32>} : memref<2x16x64xf32, #tpu.memory_space<vmem>>, vector<1x1x64xf32>,
    %220 = vector.extract_strided_slice %215 {offsets = [1, 0], sizes = [1, 64], strides = [1, 1]} : vector<2x64xf32> to vector<1x64xf32>
    %c0_69 = arith.constant 0 : index
    %c11 = arith.constant 11 : index
    %c0_70 = arith.constant 0 : index
    %221 = vector.load %arg16[%c0_69, %c11, %c0_70] : memref<2x16x64xf32, #tpu.memory_space<vmem>>, vector<1x1x64xf32>
    %222 = vector.shape_cast %221 : vector<1x1x64xf32> to vector<1x64xf32>
    %223 = vector.shape_cast %220 : vector<1x64xf32> to vector<1x1x64xf32>
    tpu.vector_store %arg16[%c0_69, %c11, %c0_70], %223 {strides = array<i32>} : memref<2x16x64xf32, #tpu.memory_space<vmem>>, vector<1x1x64xf32>,
    %224 = vector.extract_strided_slice %127 {offsets = [0, 4, 0, 0], sizes = [2, 1, 8, 64], strides = [1, 1, 1, 1]} : vector<2x8x8x64xf32> to vector<2x1x8x64xf32>
    %225 = vector.shape_cast %224 : vector<2x1x8x64xf32> to vector<2x8x64xf32>
    %226 = vector.shape_cast %225 : vector<2x8x64xf32> to vector<16x64xf32>
    %227 = vector.extract_strided_slice %128 {offsets = [0, 4, 0, 0], sizes = [2, 1, 8, 64], strides = [1, 1, 1, 1]} : vector<2x8x8x64xf32> to vector<2x1x8x64xf32>
    %228 = vector.shape_cast %227 : vector<2x1x8x64xf32> to vector<2x8x64xf32>
    %229 = vector.shape_cast %228 : vector<2x8x64xf32> to vector<16x64xf32>
    %230 = vector.extract_strided_slice %130 {offsets = [0, 4, 0, 0], sizes = [2, 1, 8, 1], strides = [1, 1, 1, 1]} : vector<2x8x8x1xf32> to vector<2x1x8x1xf32>
    %231 = vector.shape_cast %230 : vector<2x1x8x1xf32> to vector<2x8x1xf32>
    %232 = vector.shape_cast %231 : vector<2x8x1xf32> to vector<16x1xf32>
    %233 = arith.mulf %226, %211 : vector<16x64xf32>
    %234 = arith.addf %233, %229 : vector<16x64xf32>
    %235 = vector.broadcast %232 : vector<16x1xf32> to vector<16x64xf32>
    %236 = arith.mulf %234, %235 : vector<16x64xf32>
    %237 = vector.shape_cast %236 : vector<16x64xf32> to vector<2x8x64xf32>
    %cst_71 = arith.constant dense<0.000000e+00> : vector<2x64xf32>
    %238 = vector.multi_reduction <add>, %237, %cst_71 [1] : vector<2x8x64xf32> to vector<2x64xf32>
    %239 = vector.extract_strided_slice %238 {offsets = [0, 0], sizes = [1, 64], strides = [1, 1]} : vector<2x64xf32> to vector<1x64xf32>
    %c0_72 = arith.constant 0 : index
    %c4 = arith.constant 4 : index
    %c0_73 = arith.constant 0 : index
    %240 = vector.load %arg16[%c0_72, %c4, %c0_73] : memref<2x16x64xf32, #tpu.memory_space<vmem>>, vector<1x1x64xf32>
    %241 = vector.shape_cast %240 : vector<1x1x64xf32> to vector<1x64xf32>
    %242 = vector.shape_cast %239 : vector<1x64xf32> to vector<1x1x64xf32>
    tpu.vector_store %arg16[%c0_72, %c4, %c0_73], %242 {strides = array<i32>} : memref<2x16x64xf32, #tpu.memory_space<vmem>>, vector<1x1x64xf32>,
    %243 = vector.extract_strided_slice %238 {offsets = [1, 0], sizes = [1, 64], strides = [1, 1]} : vector<2x64xf32> to vector<1x64xf32>
    %c0_74 = arith.constant 0 : index
    %c12 = arith.constant 12 : index
    %c0_75 = arith.constant 0 : index
    %244 = vector.load %arg16[%c0_74, %c12, %c0_75] : memref<2x16x64xf32, #tpu.memory_space<vmem>>, vector<1x1x64xf32>
    %245 = vector.shape_cast %244 : vector<1x1x64xf32> to vector<1x64xf32>
    %246 = vector.shape_cast %243 : vector<1x64xf32> to vector<1x1x64xf32>
    tpu.vector_store %arg16[%c0_74, %c12, %c0_75], %246 {strides = array<i32>} : memref<2x16x64xf32, #tpu.memory_space<vmem>>, vector<1x1x64xf32>,
    %247 = vector.extract_strided_slice %127 {offsets = [0, 5, 0, 0], sizes = [2, 1, 8, 64], strides = [1, 1, 1, 1]} : vector<2x8x8x64xf32> to vector<2x1x8x64xf32>
    %248 = vector.shape_cast %247 : vector<2x1x8x64xf32> to vector<2x8x64xf32>
    %249 = vector.shape_cast %248 : vector<2x8x64xf32> to vector<16x64xf32>
    %250 = vector.extract_strided_slice %128 {offsets = [0, 5, 0, 0], sizes = [2, 1, 8, 64], strides = [1, 1, 1, 1]} : vector<2x8x8x64xf32> to vector<2x1x8x64xf32>
    %251 = vector.shape_cast %250 : vector<2x1x8x64xf32> to vector<2x8x64xf32>
    %252 = vector.shape_cast %251 : vector<2x8x64xf32> to vector<16x64xf32>
    %253 = vector.extract_strided_slice %130 {offsets = [0, 5, 0, 0], sizes = [2, 1, 8, 1], strides = [1, 1, 1, 1]} : vector<2x8x8x1xf32> to vector<2x1x8x1xf32>
    %254 = vector.shape_cast %253 : vector<2x1x8x1xf32> to vector<2x8x1xf32>
    %255 = vector.shape_cast %254 : vector<2x8x1xf32> to vector<16x1xf32>
    %256 = arith.mulf %249, %234 : vector<16x64xf32>
    %257 = arith.addf %256, %252 : vector<16x64xf32>
    %258 = vector.broadcast %255 : vector<16x1xf32> to vector<16x64xf32>
    %259 = arith.mulf %257, %258 : vector<16x64xf32>
    %260 = vector.shape_cast %259 : vector<16x64xf32> to vector<2x8x64xf32>
    %cst_76 = arith.constant dense<0.000000e+00> : vector<2x64xf32>
    %261 = vector.multi_reduction <add>, %260, %cst_76 [1] : vector<2x8x64xf32> to vector<2x64xf32>
    %262 = vector.extract_strided_slice %261 {offsets = [0, 0], sizes = [1, 64], strides = [1, 1]} : vector<2x64xf32> to vector<1x64xf32>
    %c0_77 = arith.constant 0 : index
    %c5 = arith.constant 5 : index
    %c0_78 = arith.constant 0 : index
    %263 = vector.load %arg16[%c0_77, %c5, %c0_78] : memref<2x16x64xf32, #tpu.memory_space<vmem>>, vector<1x1x64xf32>
    %264 = vector.shape_cast %263 : vector<1x1x64xf32> to vector<1x64xf32>
    %265 = vector.shape_cast %262 : vector<1x64xf32> to vector<1x1x64xf32>
    tpu.vector_store %arg16[%c0_77, %c5, %c0_78], %265 {strides = array<i32>} : memref<2x16x64xf32, #tpu.memory_space<vmem>>, vector<1x1x64xf32>,
    %266 = vector.extract_strided_slice %261 {offsets = [1, 0], sizes = [1, 64], strides = [1, 1]} : vector<2x64xf32> to vector<1x64xf32>
    %c0_79 = arith.constant 0 : index
    %c13 = arith.constant 13 : index
    %c0_80 = arith.constant 0 : index
    %267 = vector.load %arg16[%c0_79, %c13, %c0_80] : memref<2x16x64xf32, #tpu.memory_space<vmem>>, vector<1x1x64xf32>
    %268 = vector.shape_cast %267 : vector<1x1x64xf32> to vector<1x64xf32>
    %269 = vector.shape_cast %266 : vector<1x64xf32> to vector<1x1x64xf32>
    tpu.vector_store %arg16[%c0_79, %c13, %c0_80], %269 {strides = array<i32>} : memref<2x16x64xf32, #tpu.memory_space<vmem>>, vector<1x1x64xf32>,
    %270 = vector.extract_strided_slice %127 {offsets = [0, 6, 0, 0], sizes = [2, 1, 8, 64], strides = [1, 1, 1, 1]} : vector<2x8x8x64xf32> to vector<2x1x8x64xf32>
    %271 = vector.shape_cast %270 : vector<2x1x8x64xf32> to vector<2x8x64xf32>
    %272 = vector.shape_cast %271 : vector<2x8x64xf32> to vector<16x64xf32>
    %273 = vector.extract_strided_slice %128 {offsets = [0, 6, 0, 0], sizes = [2, 1, 8, 64], strides = [1, 1, 1, 1]} : vector<2x8x8x64xf32> to vector<2x1x8x64xf32>
    %274 = vector.shape_cast %273 : vector<2x1x8x64xf32> to vector<2x8x64xf32>
    %275 = vector.shape_cast %274 : vector<2x8x64xf32> to vector<16x64xf32>
    %276 = vector.extract_strided_slice %130 {offsets = [0, 6, 0, 0], sizes = [2, 1, 8, 1], strides = [1, 1, 1, 1]} : vector<2x8x8x1xf32> to vector<2x1x8x1xf32>
    %277 = vector.shape_cast %276 : vector<2x1x8x1xf32> to vector<2x8x1xf32>
    %278 = vector.shape_cast %277 : vector<2x8x1xf32> to vector<16x1xf32>
    %279 = arith.mulf %272, %257 : vector<16x64xf32>
    %280 = arith.addf %279, %275 : vector<16x64xf32>
    %281 = vector.broadcast %278 : vector<16x1xf32> to vector<16x64xf32>
    %282 = arith.mulf %280, %281 : vector<16x64xf32>
    %283 = vector.shape_cast %282 : vector<16x64xf32> to vector<2x8x64xf32>
    %cst_81 = arith.constant dense<0.000000e+00> : vector<2x64xf32>
    %284 = vector.multi_reduction <add>, %283, %cst_81 [1] : vector<2x8x64xf32> to vector<2x64xf32>
    %285 = vector.extract_strided_slice %284 {offsets = [0, 0], sizes = [1, 64], strides = [1, 1]} : vector<2x64xf32> to vector<1x64xf32>
    %c0_82 = arith.constant 0 : index
    %c6 = arith.constant 6 : index
    %c0_83 = arith.constant 0 : index
    %286 = vector.load %arg16[%c0_82, %c6, %c0_83] : memref<2x16x64xf32, #tpu.memory_space<vmem>>, vector<1x1x64xf32>
    %287 = vector.shape_cast %286 : vector<1x1x64xf32> to vector<1x64xf32>
    %288 = vector.shape_cast %285 : vector<1x64xf32> to vector<1x1x64xf32>
    tpu.vector_store %arg16[%c0_82, %c6, %c0_83], %288 {strides = array<i32>} : memref<2x16x64xf32, #tpu.memory_space<vmem>>, vector<1x1x64xf32>,
    %289 = vector.extract_strided_slice %284 {offsets = [1, 0], sizes = [1, 64], strides = [1, 1]} : vector<2x64xf32> to vector<1x64xf32>
    %c0_84 = arith.constant 0 : index
    %c14 = arith.constant 14 : index
    %c0_85 = arith.constant 0 : index
    %290 = vector.load %arg16[%c0_84, %c14, %c0_85] : memref<2x16x64xf32, #tpu.memory_space<vmem>>, vector<1x1x64xf32>
    %291 = vector.shape_cast %290 : vector<1x1x64xf32> to vector<1x64xf32>
    %292 = vector.shape_cast %289 : vector<1x64xf32> to vector<1x1x64xf32>
    tpu.vector_store %arg16[%c0_84, %c14, %c0_85], %292 {strides = array<i32>} : memref<2x16x64xf32, #tpu.memory_space<vmem>>, vector<1x1x64xf32>,
    %293 = vector.extract_strided_slice %127 {offsets = [0, 7, 0, 0], sizes = [2, 1, 8, 64], strides = [1, 1, 1, 1]} : vector<2x8x8x64xf32> to vector<2x1x8x64xf32>
    %294 = vector.shape_cast %293 : vector<2x1x8x64xf32> to vector<2x8x64xf32>
    %295 = vector.shape_cast %294 : vector<2x8x64xf32> to vector<16x64xf32>
    %296 = vector.extract_strided_slice %128 {offsets = [0, 7, 0, 0], sizes = [2, 1, 8, 64], strides = [1, 1, 1, 1]} : vector<2x8x8x64xf32> to vector<2x1x8x64xf32>
    %297 = vector.shape_cast %296 : vector<2x1x8x64xf32> to vector<2x8x64xf32>
    %298 = vector.shape_cast %297 : vector<2x8x64xf32> to vector<16x64xf32>
    %299 = vector.extract_strided_slice %130 {offsets = [0, 7, 0, 0], sizes = [2, 1, 8, 1], strides = [1, 1, 1, 1]} : vector<2x8x8x1xf32> to vector<2x1x8x1xf32>
    %300 = vector.shape_cast %299 : vector<2x1x8x1xf32> to vector<2x8x1xf32>
    %301 = vector.shape_cast %300 : vector<2x8x1xf32> to vector<16x1xf32>
    %302 = arith.mulf %295, %280 : vector<16x64xf32>
    %303 = arith.addf %302, %298 : vector<16x64xf32>
    %304 = vector.broadcast %301 : vector<16x1xf32> to vector<16x64xf32>
    %305 = arith.mulf %303, %304 : vector<16x64xf32>
    %306 = vector.shape_cast %305 : vector<16x64xf32> to vector<2x8x64xf32>
    %cst_86 = arith.constant dense<0.000000e+00> : vector<2x64xf32>
    %307 = vector.multi_reduction <add>, %306, %cst_86 [1] : vector<2x8x64xf32> to vector<2x64xf32>
    %308 = vector.extract_strided_slice %307 {offsets = [0, 0], sizes = [1, 64], strides = [1, 1]} : vector<2x64xf32> to vector<1x64xf32>
    %c0_87 = arith.constant 0 : index
    %c7 = arith.constant 7 : index
    %c0_88 = arith.constant 0 : index
    %309 = vector.load %arg16[%c0_87, %c7, %c0_88] : memref<2x16x64xf32, #tpu.memory_space<vmem>>, vector<1x1x64xf32>
    %310 = vector.shape_cast %309 : vector<1x1x64xf32> to vector<1x64xf32>
    %311 = vector.shape_cast %308 : vector<1x64xf32> to vector<1x1x64xf32>
    tpu.vector_store %arg16[%c0_87, %c7, %c0_88], %311 {strides = array<i32>} : memref<2x16x64xf32, #tpu.memory_space<vmem>>, vector<1x1x64xf32>,
    %312 = vector.extract_strided_slice %307 {offsets = [1, 0], sizes = [1, 64], strides = [1, 1]} : vector<2x64xf32> to vector<1x64xf32>
    %c0_89 = arith.constant 0 : index
    %c15 = arith.constant 15 : index
    %c0_90 = arith.constant 0 : index
    %313 = vector.load %arg16[%c0_89, %c15, %c0_90] : memref<2x16x64xf32, #tpu.memory_space<vmem>>, vector<1x1x64xf32>
    %314 = vector.shape_cast %313 : vector<1x1x64xf32> to vector<1x64xf32>
    %315 = vector.shape_cast %312 : vector<1x64xf32> to vector<1x1x64xf32>
    tpu.vector_store %arg16[%c0_89, %c15, %c0_90], %315 {strides = array<i32>} : memref<2x16x64xf32, #tpu.memory_space<vmem>>, vector<1x1x64xf32>,
    %316 = vector.broadcast %46 : vector<1x64xf32> to vector<16x64xf32>
    %317 = arith.mulf %93, %316 : vector<16x64xf32>
    %318 = arith.addf %34, %317 : vector<16x64xf32>
    %c0_91 = arith.constant 0 : index
    %c1_92 = arith.constant 1 : index
    %c0_93 = arith.constant 0 : index
    %c0_94 = arith.constant 0 : index
    %319 = vector.load %arg6[%c0_91, %c1_92, %c0_93, %c0_94] : memref<1x2x4x64xf32, #tpu.memory_space<vmem>>, vector<1x1x4x64xf32>
    %320 = vector.shape_cast %319 : vector<1x1x4x64xf32> to vector<4x64xf32>
    %c0_95 = arith.constant 0 : index
    %c1_96 = arith.constant 1 : index
    %c0_97 = arith.constant 0 : index
    %c0_98 = arith.constant 0 : index
    %321 = vector.load %arg7[%c0_95, %c1_96, %c0_97, %c0_98] : memref<1x2x1x64xf32, #tpu.memory_space<vmem>>, vector<1x1x1x64xf32>
    %322 = vector.shape_cast %321 : vector<1x1x1x64xf32> to vector<1x64xf32>
    %c0_99 = arith.constant 0 : index
    %c1_100 = arith.constant 1 : index
    %c0_101 = arith.constant 0 : index
    %c0_102 = arith.constant 0 : index
    %323 = vector.load %arg8[%c0_99, %c1_100, %c0_101, %c0_102] : memref<1x2x64x80xbf16, #tpu.memory_space<vmem>>, vector<1x1x64x80xbf16>
    %324 = vector.shape_cast %323 : vector<1x1x64x80xbf16> to vector<64x80xbf16>
    %c0_103 = arith.constant 0 : index
    %c1_104 = arith.constant 1 : index
    %c0_105 = arith.constant 0 : index
    %c0_106 = arith.constant 0 : index
    %325 = vector.load %arg9[%c0_103, %c1_104, %c0_105, %c0_106] : memref<1x2x1x64xf32, #tpu.memory_space<vmem>>, vector<1x1x1x64xf32>
    %326 = vector.shape_cast %325 : vector<1x1x1x64xf32> to vector<1x64xf32>
    %c0_107 = arith.constant 0 : index
    %c1_108 = arith.constant 1 : index
    %c0_109 = arith.constant 0 : index
    %c0_110 = arith.constant 0 : index
    %327 = vector.load %arg10[%c0_107, %c1_108, %c0_109, %c0_110] : memref<1x2x8x64xf32, #tpu.memory_space<vmem>>, vector<1x1x8x64xf32>
    %328 = vector.shape_cast %327 : vector<1x1x8x64xf32> to vector<8x64xf32>
    %c0_111 = arith.constant 0 : index
    %c1_112 = arith.constant 1 : index
    %c0_113 = arith.constant 0 : index
    %c0_114 = arith.constant 0 : index
    %329 = vector.load %arg11[%c0_111, %c1_112, %c0_113, %c0_114] : memref<1x2x1x64xf32, #tpu.memory_space<vmem>>, vector<1x1x1x64xf32>
    %330 = vector.shape_cast %329 : vector<1x1x1x64xf32> to vector<1x64xf32>
    %331 = vector.extract_strided_slice %320 {offsets = [3, 0], sizes = [1, 64], strides = [1, 1]} : vector<4x64xf32> to vector<1x64xf32>
    %332 = vector.shape_cast %331 : vector<1x64xf32> to vector<64xf32>
    %333 = vector.shape_cast %332 : vector<64xf32> to vector<1x1x64xf32>
    %334 = vector.broadcast %333 : vector<1x1x64xf32> to vector<2x8x64xf32>
    %335 = arith.mulf %32, %334 : vector<2x8x64xf32>
    %c7_i32 = arith.constant 7 : i32
    %336 = tpu.dynamic_rotate %32 by %c7_i32 dim 1 : vector<2x8x64xf32>, i32 -> vector<2x8x64xf32>
    %c7_i32_115 = arith.constant 7 : i32
    %337 = vector.broadcast %c7_i32_115 : i32 to vector<2x8x64xi32>
    %338 = arith.cmpi slt, %33, %337 : vector<2x8x64xi32>
    %cst_116 = arith.constant 0.000000e+00 : f32
    %339 = vector.broadcast %cst_116 : f32 to vector<2x8x64xf32>
    %340 = arith.select %338, %336, %339 : vector<2x8x64xi1>, vector<2x8x64xf32>
    %341 = vector.extract_strided_slice %320 {offsets = [2, 0], sizes = [1, 64], strides = [1, 1]} : vector<4x64xf32> to vector<1x64xf32>
    %342 = vector.shape_cast %341 : vector<1x64xf32> to vector<64xf32>
    %343 = vector.shape_cast %342 : vector<64xf32> to vector<1x1x64xf32>
    %344 = vector.broadcast %343 : vector<1x1x64xf32> to vector<2x8x64xf32>
    %345 = arith.mulf %340, %344 : vector<2x8x64xf32>
    %346 = arith.addf %335, %345 : vector<2x8x64xf32>
    %c6_i32 = arith.constant 6 : i32
    %347 = tpu.dynamic_rotate %32 by %c6_i32 dim 1 : vector<2x8x64xf32>, i32 -> vector<2x8x64xf32>
    %c6_i32_117 = arith.constant 6 : i32
    %348 = vector.broadcast %c6_i32_117 : i32 to vector<2x8x64xi32>
    %349 = arith.cmpi slt, %33, %348 : vector<2x8x64xi32>
    %cst_118 = arith.constant 0.000000e+00 : f32
    %350 = vector.broadcast %cst_118 : f32 to vector<2x8x64xf32>
    %351 = arith.select %349, %347, %350 : vector<2x8x64xi1>, vector<2x8x64xf32>
    %352 = vector.extract_strided_slice %320 {offsets = [1, 0], sizes = [1, 64], strides = [1, 1]} : vector<4x64xf32> to vector<1x64xf32>
    %353 = vector.shape_cast %352 : vector<1x64xf32> to vector<64xf32>
    %354 = vector.shape_cast %353 : vector<64xf32> to vector<1x1x64xf32>
    %355 = vector.broadcast %354 : vector<1x1x64xf32> to vector<2x8x64xf32>
    %356 = arith.mulf %351, %355 : vector<2x8x64xf32>
    %357 = arith.addf %346, %356 : vector<2x8x64xf32>
    %c5_i32 = arith.constant 5 : i32
    %358 = tpu.dynamic_rotate %32 by %c5_i32 dim 1 : vector<2x8x64xf32>, i32 -> vector<2x8x64xf32>
    %c5_i32_119 = arith.constant 5 : i32
    %359 = vector.broadcast %c5_i32_119 : i32 to vector<2x8x64xi32>
    %360 = arith.cmpi slt, %33, %359 : vector<2x8x64xi32>
    %cst_120 = arith.constant 0.000000e+00 : f32
    %361 = vector.broadcast %cst_120 : f32 to vector<2x8x64xf32>
    %362 = arith.select %360, %358, %361 : vector<2x8x64xi1>, vector<2x8x64xf32>
    %363 = vector.extract_strided_slice %320 {offsets = [0, 0], sizes = [1, 64], strides = [1, 1]} : vector<4x64xf32> to vector<1x64xf32>
    %364 = vector.shape_cast %363 : vector<1x64xf32> to vector<64xf32>
    %365 = vector.shape_cast %364 : vector<64xf32> to vector<1x1x64xf32>
    %366 = vector.broadcast %365 : vector<1x1x64xf32> to vector<2x8x64xf32>
    %367 = arith.mulf %362, %366 : vector<2x8x64xf32>
    %368 = arith.addf %357, %367 : vector<2x8x64xf32>
    %369 = vector.shape_cast %368 : vector<2x8x64xf32> to vector<16x64xf32>
    %370 = vector.broadcast %322 : vector<1x64xf32> to vector<16x64xf32>
    %371 = arith.addf %369, %370 : vector<16x64xf32>
    %372 = arith.negf %371 : vector<16x64xf32>
    %373 = math.exp %372 : vector<16x64xf32>
    %cst_121 = arith.constant 1.000000e+00 : f32
    %374 = vector.broadcast %cst_121 : f32 to vector<16x64xf32>
    %375 = arith.addf %374, %373 : vector<16x64xf32>
    %376 = arith.divf %374, %375 : vector<16x64xf32>
    %377 = arith.mulf %371, %376 : vector<16x64xf32>
    %378 = arith.truncf %377 : vector<16x64xf32> to vector<16x64xbf16>
    %cst_122 = arith.constant dense<0.000000e+00> : vector<16x80xf32>
    %379 = tpu.matmul %378, %324, %cst_122 {dimension_numbers = #tpu.dot_dimension_numbers<[1], [0], [0], [1], [0, 0, 1, 1], [], []>} : vector<16x64xbf16>, vector<64x80xbf16>, vector<16x80xf32> -> vector<16x80xf32>
    %380 = vector.extract_strided_slice %379 {offsets = [0, 0], sizes = [16, 64], strides = [1, 1]} : vector<16x80xf32> to vector<16x64xf32>
    %381 = vector.broadcast %326 : vector<1x64xf32> to vector<16x64xf32>
    %382 = arith.addf %380, %381 : vector<16x64xf32>
    %cst_123 = arith.constant 0.000000e+00 : f32
    %383 = vector.broadcast %cst_123 : f32 to vector<16x64xf32>
    %384 = arith.maximumf %382, %383 : vector<16x64xf32>
    %385 = vector.broadcast %cst_123 : f32 to vector<16x64xf32>
    %386 = arith.subf %382, %385 : vector<16x64xf32>
    %387 = arith.cmpf one, %386, %386 : vector<16x64xf32>
    %388 = vector.broadcast %cst_123 : f32 to vector<16x64xf32>
    %389 = arith.addf %382, %388 : vector<16x64xf32>
    %390 = math.absf %386 : vector<16x64xf32>
    %cst_124 = arith.constant 0.000000e+00 : f32
    %391 = vector.broadcast %cst_124 : f32 to vector<16x64xf32>
    %392 = arith.subf %391, %390 : vector<16x64xf32>
    %393 = math.exp %392 : vector<16x64xf32>
    %394 = math.log1p %393 : vector<16x64xf32>
    %395 = arith.addf %384, %394 : vector<16x64xf32>
    %396 = arith.select %387, %389, %395 : vector<16x64xi1>, vector<16x64xf32>
    %397 = vector.extract_strided_slice %379 {offsets = [0, 64], sizes = [16, 8], strides = [1, 1]} : vector<16x80xf32> to vector<16x8xf32>
    %398 = vector.extract_strided_slice %379 {offsets = [0, 72], sizes = [16, 8], strides = [1, 1]} : vector<16x80xf32> to vector<16x8xf32>
    %399 = vector.shape_cast %396 : vector<16x64xf32> to vector<16x1x64xf32>
    %400 = vector.shape_cast %328 : vector<8x64xf32> to vector<1x8x64xf32>
    %401 = vector.broadcast %399 : vector<16x1x64xf32> to vector<16x8x64xf32>
    %402 = vector.broadcast %400 : vector<1x8x64xf32> to vector<16x8x64xf32>
    %403 = arith.mulf %401, %402 : vector<16x8x64xf32>
    %404 = math.exp %403 : vector<16x8x64xf32>
    %405 = arith.mulf %396, %377 : vector<16x64xf32>
    %406 = vector.shape_cast %405 : vector<16x64xf32> to vector<16x1x64xf32>
    %407 = vector.shape_cast %397 : vector<16x8xf32> to vector<16x8x1xf32>
    %408 = vector.broadcast %406 : vector<16x1x64xf32> to vector<16x8x64xf32>
    %409 = vector.broadcast %407 : vector<16x8x1xf32> to vector<16x8x64xf32>
    %410 = arith.mulf %408, %409 : vector<16x8x64xf32>
    %411 = vector.shape_cast %404 : vector<16x8x64xf32> to vector<2x8x8x64xf32>
    %412 = vector.shape_cast %410 : vector<16x8x64xf32> to vector<2x8x8x64xf32>
    %413 = vector.shape_cast %398 : vector<16x8xf32> to vector<2x8x8xf32>
    %414 = vector.shape_cast %413 : vector<2x8x8xf32> to vector<2x8x8x1xf32>
    %cst_125 = arith.constant 0.000000e+00 : f32
    %415 = vector.broadcast %cst_125 : f32 to vector<16x64xf32>
    %416 = vector.extract_strided_slice %411 {offsets = [0, 7, 0, 0], sizes = [2, 1, 8, 64], strides = [1, 1, 1, 1]} : vector<2x8x8x64xf32> to vector<2x1x8x64xf32>
    %417 = vector.shape_cast %416 : vector<2x1x8x64xf32> to vector<2x8x64xf32>
    %418 = vector.shape_cast %417 : vector<2x8x64xf32> to vector<16x64xf32>
    %419 = vector.extract_strided_slice %412 {offsets = [0, 7, 0, 0], sizes = [2, 1, 8, 64], strides = [1, 1, 1, 1]} : vector<2x8x8x64xf32> to vector<2x1x8x64xf32>
    %420 = vector.shape_cast %419 : vector<2x1x8x64xf32> to vector<2x8x64xf32>
    %421 = vector.shape_cast %420 : vector<2x8x64xf32> to vector<16x64xf32>
    %422 = vector.extract_strided_slice %414 {offsets = [0, 7, 0, 0], sizes = [2, 1, 8, 1], strides = [1, 1, 1, 1]} : vector<2x8x8x1xf32> to vector<2x1x8x1xf32>
    %423 = vector.shape_cast %422 : vector<2x1x8x1xf32> to vector<2x8x1xf32>
    %424 = vector.shape_cast %423 : vector<2x8x1xf32> to vector<16x1xf32>
    %425 = arith.mulf %418, %415 : vector<16x64xf32>
    %426 = arith.addf %425, %421 : vector<16x64xf32>
    %427 = vector.broadcast %424 : vector<16x1xf32> to vector<16x64xf32>
    %428 = arith.mulf %426, %427 : vector<16x64xf32>
    %429 = vector.shape_cast %428 : vector<16x64xf32> to vector<2x8x64xf32>
    %cst_126 = arith.constant dense<0.000000e+00> : vector<2x64xf32>
    %430 = vector.multi_reduction <add>, %429, %cst_126 [1] : vector<2x8x64xf32> to vector<2x64xf32>
    %431 = vector.extract_strided_slice %430 {offsets = [0, 0], sizes = [1, 64], strides = [1, 1]} : vector<2x64xf32> to vector<1x64xf32>
    %c1_127 = arith.constant 1 : index
    %c7_128 = arith.constant 7 : index
    %c0_129 = arith.constant 0 : index
    %432 = vector.load %arg16[%c1_127, %c7_128, %c0_129] : memref<2x16x64xf32, #tpu.memory_space<vmem>>, vector<1x1x64xf32>
    %433 = vector.shape_cast %432 : vector<1x1x64xf32> to vector<1x64xf32>
    %434 = vector.shape_cast %431 : vector<1x64xf32> to vector<1x1x64xf32>
    tpu.vector_store %arg16[%c1_127, %c7_128, %c0_129], %434 {strides = array<i32>} : memref<2x16x64xf32, #tpu.memory_space<vmem>>, vector<1x1x64xf32>,
    %435 = vector.extract_strided_slice %430 {offsets = [1, 0], sizes = [1, 64], strides = [1, 1]} : vector<2x64xf32> to vector<1x64xf32>
    %c1_130 = arith.constant 1 : index
    %c15_131 = arith.constant 15 : index
    %c0_132 = arith.constant 0 : index
    %436 = vector.load %arg16[%c1_130, %c15_131, %c0_132] : memref<2x16x64xf32, #tpu.memory_space<vmem>>, vector<1x1x64xf32>
    %437 = vector.shape_cast %436 : vector<1x1x64xf32> to vector<1x64xf32>
    %438 = vector.shape_cast %435 : vector<1x64xf32> to vector<1x1x64xf32>
    tpu.vector_store %arg16[%c1_130, %c15_131, %c0_132], %438 {strides = array<i32>} : memref<2x16x64xf32, #tpu.memory_space<vmem>>, vector<1x1x64xf32>,
    %439 = vector.extract_strided_slice %411 {offsets = [0, 6, 0, 0], sizes = [2, 1, 8, 64], strides = [1, 1, 1, 1]} : vector<2x8x8x64xf32> to vector<2x1x8x64xf32>
    %440 = vector.shape_cast %439 : vector<2x1x8x64xf32> to vector<2x8x64xf32>
    %441 = vector.shape_cast %440 : vector<2x8x64xf32> to vector<16x64xf32>
    %442 = vector.extract_strided_slice %412 {offsets = [0, 6, 0, 0], sizes = [2, 1, 8, 64], strides = [1, 1, 1, 1]} : vector<2x8x8x64xf32> to vector<2x1x8x64xf32>
    %443 = vector.shape_cast %442 : vector<2x1x8x64xf32> to vector<2x8x64xf32>
    %444 = vector.shape_cast %443 : vector<2x8x64xf32> to vector<16x64xf32>
    %445 = vector.extract_strided_slice %414 {offsets = [0, 6, 0, 0], sizes = [2, 1, 8, 1], strides = [1, 1, 1, 1]} : vector<2x8x8x1xf32> to vector<2x1x8x1xf32>
    %446 = vector.shape_cast %445 : vector<2x1x8x1xf32> to vector<2x8x1xf32>
    %447 = vector.shape_cast %446 : vector<2x8x1xf32> to vector<16x1xf32>
    %448 = arith.mulf %441, %426 : vector<16x64xf32>
    %449 = arith.addf %448, %444 : vector<16x64xf32>
    %450 = vector.broadcast %447 : vector<16x1xf32> to vector<16x64xf32>
    %451 = arith.mulf %449, %450 : vector<16x64xf32>
    %452 = vector.shape_cast %451 : vector<16x64xf32> to vector<2x8x64xf32>
    %cst_133 = arith.constant dense<0.000000e+00> : vector<2x64xf32>
    %453 = vector.multi_reduction <add>, %452, %cst_133 [1] : vector<2x8x64xf32> to vector<2x64xf32>
    %454 = vector.extract_strided_slice %453 {offsets = [0, 0], sizes = [1, 64], strides = [1, 1]} : vector<2x64xf32> to vector<1x64xf32>
    %c1_134 = arith.constant 1 : index
    %c6_135 = arith.constant 6 : index
    %c0_136 = arith.constant 0 : index
    %455 = vector.load %arg16[%c1_134, %c6_135, %c0_136] : memref<2x16x64xf32, #tpu.memory_space<vmem>>, vector<1x1x64xf32>
    %456 = vector.shape_cast %455 : vector<1x1x64xf32> to vector<1x64xf32>
    %457 = vector.shape_cast %454 : vector<1x64xf32> to vector<1x1x64xf32>
    tpu.vector_store %arg16[%c1_134, %c6_135, %c0_136], %457 {strides = array<i32>} : memref<2x16x64xf32, #tpu.memory_space<vmem>>, vector<1x1x64xf32>,
    %458 = vector.extract_strided_slice %453 {offsets = [1, 0], sizes = [1, 64], strides = [1, 1]} : vector<2x64xf32> to vector<1x64xf32>
    %c1_137 = arith.constant 1 : index
    %c14_138 = arith.constant 14 : index
    %c0_139 = arith.constant 0 : index
    %459 = vector.load %arg16[%c1_137, %c14_138, %c0_139] : memref<2x16x64xf32, #tpu.memory_space<vmem>>, vector<1x1x64xf32>
    %460 = vector.shape_cast %459 : vector<1x1x64xf32> to vector<1x64xf32>
    %461 = vector.shape_cast %458 : vector<1x64xf32> to vector<1x1x64xf32>
    tpu.vector_store %arg16[%c1_137, %c14_138, %c0_139], %461 {strides = array<i32>} : memref<2x16x64xf32, #tpu.memory_space<vmem>>, vector<1x1x64xf32>,
    %462 = vector.extract_strided_slice %411 {offsets = [0, 5, 0, 0], sizes = [2, 1, 8, 64], strides = [1, 1, 1, 1]} : vector<2x8x8x64xf32> to vector<2x1x8x64xf32>
    %463 = vector.shape_cast %462 : vector<2x1x8x64xf32> to vector<2x8x64xf32>
    %464 = vector.shape_cast %463 : vector<2x8x64xf32> to vector<16x64xf32>
    %465 = vector.extract_strided_slice %412 {offsets = [0, 5, 0, 0], sizes = [2, 1, 8, 64], strides = [1, 1, 1, 1]} : vector<2x8x8x64xf32> to vector<2x1x8x64xf32>
    %466 = vector.shape_cast %465 : vector<2x1x8x64xf32> to vector<2x8x64xf32>
    %467 = vector.shape_cast %466 : vector<2x8x64xf32> to vector<16x64xf32>
    %468 = vector.extract_strided_slice %414 {offsets = [0, 5, 0, 0], sizes = [2, 1, 8, 1], strides = [1, 1, 1, 1]} : vector<2x8x8x1xf32> to vector<2x1x8x1xf32>
    %469 = vector.shape_cast %468 : vector<2x1x8x1xf32> to vector<2x8x1xf32>
    %470 = vector.shape_cast %469 : vector<2x8x1xf32> to vector<16x1xf32>
    %471 = arith.mulf %464, %449 : vector<16x64xf32>
    %472 = arith.addf %471, %467 : vector<16x64xf32>
    %473 = vector.broadcast %470 : vector<16x1xf32> to vector<16x64xf32>
    %474 = arith.mulf %472, %473 : vector<16x64xf32>
    %475 = vector.shape_cast %474 : vector<16x64xf32> to vector<2x8x64xf32>
    %cst_140 = arith.constant dense<0.000000e+00> : vector<2x64xf32>
    %476 = vector.multi_reduction <add>, %475, %cst_140 [1] : vector<2x8x64xf32> to vector<2x64xf32>
    %477 = vector.extract_strided_slice %476 {offsets = [0, 0], sizes = [1, 64], strides = [1, 1]} : vector<2x64xf32> to vector<1x64xf32>
    %c1_141 = arith.constant 1 : index
    %c5_142 = arith.constant 5 : index
    %c0_143 = arith.constant 0 : index
    %478 = vector.load %arg16[%c1_141, %c5_142, %c0_143] : memref<2x16x64xf32, #tpu.memory_space<vmem>>, vector<1x1x64xf32>
    %479 = vector.shape_cast %478 : vector<1x1x64xf32> to vector<1x64xf32>
    %480 = vector.shape_cast %477 : vector<1x64xf32> to vector<1x1x64xf32>
    tpu.vector_store %arg16[%c1_141, %c5_142, %c0_143], %480 {strides = array<i32>} : memref<2x16x64xf32, #tpu.memory_space<vmem>>, vector<1x1x64xf32>,
    %481 = vector.extract_strided_slice %476 {offsets = [1, 0], sizes = [1, 64], strides = [1, 1]} : vector<2x64xf32> to vector<1x64xf32>
    %c1_144 = arith.constant 1 : index
    %c13_145 = arith.constant 13 : index
    %c0_146 = arith.constant 0 : index
    %482 = vector.load %arg16[%c1_144, %c13_145, %c0_146] : memref<2x16x64xf32, #tpu.memory_space<vmem>>, vector<1x1x64xf32>
    %483 = vector.shape_cast %482 : vector<1x1x64xf32> to vector<1x64xf32>
    %484 = vector.shape_cast %481 : vector<1x64xf32> to vector<1x1x64xf32>
    tpu.vector_store %arg16[%c1_144, %c13_145, %c0_146], %484 {strides = array<i32>} : memref<2x16x64xf32, #tpu.memory_space<vmem>>, vector<1x1x64xf32>,
    %485 = vector.extract_strided_slice %411 {offsets = [0, 4, 0, 0], sizes = [2, 1, 8, 64], strides = [1, 1, 1, 1]} : vector<2x8x8x64xf32> to vector<2x1x8x64xf32>
    %486 = vector.shape_cast %485 : vector<2x1x8x64xf32> to vector<2x8x64xf32>
    %487 = vector.shape_cast %486 : vector<2x8x64xf32> to vector<16x64xf32>
    %488 = vector.extract_strided_slice %412 {offsets = [0, 4, 0, 0], sizes = [2, 1, 8, 64], strides = [1, 1, 1, 1]} : vector<2x8x8x64xf32> to vector<2x1x8x64xf32>
    %489 = vector.shape_cast %488 : vector<2x1x8x64xf32> to vector<2x8x64xf32>
    %490 = vector.shape_cast %489 : vector<2x8x64xf32> to vector<16x64xf32>
    %491 = vector.extract_strided_slice %414 {offsets = [0, 4, 0, 0], sizes = [2, 1, 8, 1], strides = [1, 1, 1, 1]} : vector<2x8x8x1xf32> to vector<2x1x8x1xf32>
    %492 = vector.shape_cast %491 : vector<2x1x8x1xf32> to vector<2x8x1xf32>
    %493 = vector.shape_cast %492 : vector<2x8x1xf32> to vector<16x1xf32>
    %494 = arith.mulf %487, %472 : vector<16x64xf32>
    %495 = arith.addf %494, %490 : vector<16x64xf32>
    %496 = vector.broadcast %493 : vector<16x1xf32> to vector<16x64xf32>
    %497 = arith.mulf %495, %496 : vector<16x64xf32>
    %498 = vector.shape_cast %497 : vector<16x64xf32> to vector<2x8x64xf32>
    %cst_147 = arith.constant dense<0.000000e+00> : vector<2x64xf32>
    %499 = vector.multi_reduction <add>, %498, %cst_147 [1] : vector<2x8x64xf32> to vector<2x64xf32>
    %500 = vector.extract_strided_slice %499 {offsets = [0, 0], sizes = [1, 64], strides = [1, 1]} : vector<2x64xf32> to vector<1x64xf32>
    %c1_148 = arith.constant 1 : index
    %c4_149 = arith.constant 4 : index
    %c0_150 = arith.constant 0 : index
    %501 = vector.load %arg16[%c1_148, %c4_149, %c0_150] : memref<2x16x64xf32, #tpu.memory_space<vmem>>, vector<1x1x64xf32>
    %502 = vector.shape_cast %501 : vector<1x1x64xf32> to vector<1x64xf32>
    %503 = vector.shape_cast %500 : vector<1x64xf32> to vector<1x1x64xf32>
    tpu.vector_store %arg16[%c1_148, %c4_149, %c0_150], %503 {strides = array<i32>} : memref<2x16x64xf32, #tpu.memory_space<vmem>>, vector<1x1x64xf32>,
    %504 = vector.extract_strided_slice %499 {offsets = [1, 0], sizes = [1, 64], strides = [1, 1]} : vector<2x64xf32> to vector<1x64xf32>
    %c1_151 = arith.constant 1 : index
    %c12_152 = arith.constant 12 : index
    %c0_153 = arith.constant 0 : index
    %505 = vector.load %arg16[%c1_151, %c12_152, %c0_153] : memref<2x16x64xf32, #tpu.memory_space<vmem>>, vector<1x1x64xf32>
    %506 = vector.shape_cast %505 : vector<1x1x64xf32> to vector<1x64xf32>
    %507 = vector.shape_cast %504 : vector<1x64xf32> to vector<1x1x64xf32>
    tpu.vector_store %arg16[%c1_151, %c12_152, %c0_153], %507 {strides = array<i32>} : memref<2x16x64xf32, #tpu.memory_space<vmem>>, vector<1x1x64xf32>,
    %508 = vector.extract_strided_slice %411 {offsets = [0, 3, 0, 0], sizes = [2, 1, 8, 64], strides = [1, 1, 1, 1]} : vector<2x8x8x64xf32> to vector<2x1x8x64xf32>
    %509 = vector.shape_cast %508 : vector<2x1x8x64xf32> to vector<2x8x64xf32>
    %510 = vector.shape_cast %509 : vector<2x8x64xf32> to vector<16x64xf32>
    %511 = vector.extract_strided_slice %412 {offsets = [0, 3, 0, 0], sizes = [2, 1, 8, 64], strides = [1, 1, 1, 1]} : vector<2x8x8x64xf32> to vector<2x1x8x64xf32>
    %512 = vector.shape_cast %511 : vector<2x1x8x64xf32> to vector<2x8x64xf32>
    %513 = vector.shape_cast %512 : vector<2x8x64xf32> to vector<16x64xf32>
    %514 = vector.extract_strided_slice %414 {offsets = [0, 3, 0, 0], sizes = [2, 1, 8, 1], strides = [1, 1, 1, 1]} : vector<2x8x8x1xf32> to vector<2x1x8x1xf32>
    %515 = vector.shape_cast %514 : vector<2x1x8x1xf32> to vector<2x8x1xf32>
    %516 = vector.shape_cast %515 : vector<2x8x1xf32> to vector<16x1xf32>
    %517 = arith.mulf %510, %495 : vector<16x64xf32>
    %518 = arith.addf %517, %513 : vector<16x64xf32>
    %519 = vector.broadcast %516 : vector<16x1xf32> to vector<16x64xf32>
    %520 = arith.mulf %518, %519 : vector<16x64xf32>
    %521 = vector.shape_cast %520 : vector<16x64xf32> to vector<2x8x64xf32>
    %cst_154 = arith.constant dense<0.000000e+00> : vector<2x64xf32>
    %522 = vector.multi_reduction <add>, %521, %cst_154 [1] : vector<2x8x64xf32> to vector<2x64xf32>
    %523 = vector.extract_strided_slice %522 {offsets = [0, 0], sizes = [1, 64], strides = [1, 1]} : vector<2x64xf32> to vector<1x64xf32>
    %c1_155 = arith.constant 1 : index
    %c3_156 = arith.constant 3 : index
    %c0_157 = arith.constant 0 : index
    %524 = vector.load %arg16[%c1_155, %c3_156, %c0_157] : memref<2x16x64xf32, #tpu.memory_space<vmem>>, vector<1x1x64xf32>
    %525 = vector.shape_cast %524 : vector<1x1x64xf32> to vector<1x64xf32>
    %526 = vector.shape_cast %523 : vector<1x64xf32> to vector<1x1x64xf32>
    tpu.vector_store %arg16[%c1_155, %c3_156, %c0_157], %526 {strides = array<i32>} : memref<2x16x64xf32, #tpu.memory_space<vmem>>, vector<1x1x64xf32>,
    %527 = vector.extract_strided_slice %522 {offsets = [1, 0], sizes = [1, 64], strides = [1, 1]} : vector<2x64xf32> to vector<1x64xf32>
    %c1_158 = arith.constant 1 : index
    %c11_159 = arith.constant 11 : index
    %c0_160 = arith.constant 0 : index
    %528 = vector.load %arg16[%c1_158, %c11_159, %c0_160] : memref<2x16x64xf32, #tpu.memory_space<vmem>>, vector<1x1x64xf32>
    %529 = vector.shape_cast %528 : vector<1x1x64xf32> to vector<1x64xf32>
    %530 = vector.shape_cast %527 : vector<1x64xf32> to vector<1x1x64xf32>
    tpu.vector_store %arg16[%c1_158, %c11_159, %c0_160], %530 {strides = array<i32>} : memref<2x16x64xf32, #tpu.memory_space<vmem>>, vector<1x1x64xf32>,
    %531 = vector.extract_strided_slice %411 {offsets = [0, 2, 0, 0], sizes = [2, 1, 8, 64], strides = [1, 1, 1, 1]} : vector<2x8x8x64xf32> to vector<2x1x8x64xf32>
    %532 = vector.shape_cast %531 : vector<2x1x8x64xf32> to vector<2x8x64xf32>
    %533 = vector.shape_cast %532 : vector<2x8x64xf32> to vector<16x64xf32>
    %534 = vector.extract_strided_slice %412 {offsets = [0, 2, 0, 0], sizes = [2, 1, 8, 64], strides = [1, 1, 1, 1]} : vector<2x8x8x64xf32> to vector<2x1x8x64xf32>
    %535 = vector.shape_cast %534 : vector<2x1x8x64xf32> to vector<2x8x64xf32>
    %536 = vector.shape_cast %535 : vector<2x8x64xf32> to vector<16x64xf32>
    %537 = vector.extract_strided_slice %414 {offsets = [0, 2, 0, 0], sizes = [2, 1, 8, 1], strides = [1, 1, 1, 1]} : vector<2x8x8x1xf32> to vector<2x1x8x1xf32>
    %538 = vector.shape_cast %537 : vector<2x1x8x1xf32> to vector<2x8x1xf32>
    %539 = vector.shape_cast %538 : vector<2x8x1xf32> to vector<16x1xf32>
    %540 = arith.mulf %533, %518 : vector<16x64xf32>
    %541 = arith.addf %540, %536 : vector<16x64xf32>
    %542 = vector.broadcast %539 : vector<16x1xf32> to vector<16x64xf32>
    %543 = arith.mulf %541, %542 : vector<16x64xf32>
    %544 = vector.shape_cast %543 : vector<16x64xf32> to vector<2x8x64xf32>
    %cst_161 = arith.constant dense<0.000000e+00> : vector<2x64xf32>
    %545 = vector.multi_reduction <add>, %544, %cst_161 [1] : vector<2x8x64xf32> to vector<2x64xf32>
    %546 = vector.extract_strided_slice %545 {offsets = [0, 0], sizes = [1, 64], strides = [1, 1]} : vector<2x64xf32> to vector<1x64xf32>
    %c1_162 = arith.constant 1 : index
    %c2_163 = arith.constant 2 : index
    %c0_164 = arith.constant 0 : index
    %547 = vector.load %arg16[%c1_162, %c2_163, %c0_164] : memref<2x16x64xf32, #tpu.memory_space<vmem>>, vector<1x1x64xf32>
    %548 = vector.shape_cast %547 : vector<1x1x64xf32> to vector<1x64xf32>
    %549 = vector.shape_cast %546 : vector<1x64xf32> to vector<1x1x64xf32>
    tpu.vector_store %arg16[%c1_162, %c2_163, %c0_164], %549 {strides = array<i32>} : memref<2x16x64xf32, #tpu.memory_space<vmem>>, vector<1x1x64xf32>,
    %550 = vector.extract_strided_slice %545 {offsets = [1, 0], sizes = [1, 64], strides = [1, 1]} : vector<2x64xf32> to vector<1x64xf32>
    %c1_165 = arith.constant 1 : index
    %c10_166 = arith.constant 10 : index
    %c0_167 = arith.constant 0 : index
    %551 = vector.load %arg16[%c1_165, %c10_166, %c0_167] : memref<2x16x64xf32, #tpu.memory_space<vmem>>, vector<1x1x64xf32>
    %552 = vector.shape_cast %551 : vector<1x1x64xf32> to vector<1x64xf32>
    %553 = vector.shape_cast %550 : vector<1x64xf32> to vector<1x1x64xf32>
    tpu.vector_store %arg16[%c1_165, %c10_166, %c0_167], %553 {strides = array<i32>} : memref<2x16x64xf32, #tpu.memory_space<vmem>>, vector<1x1x64xf32>,
    %554 = vector.extract_strided_slice %411 {offsets = [0, 1, 0, 0], sizes = [2, 1, 8, 64], strides = [1, 1, 1, 1]} : vector<2x8x8x64xf32> to vector<2x1x8x64xf32>
    %555 = vector.shape_cast %554 : vector<2x1x8x64xf32> to vector<2x8x64xf32>
    %556 = vector.shape_cast %555 : vector<2x8x64xf32> to vector<16x64xf32>
    %557 = vector.extract_strided_slice %412 {offsets = [0, 1, 0, 0], sizes = [2, 1, 8, 64], strides = [1, 1, 1, 1]} : vector<2x8x8x64xf32> to vector<2x1x8x64xf32>
    %558 = vector.shape_cast %557 : vector<2x1x8x64xf32> to vector<2x8x64xf32>
    %559 = vector.shape_cast %558 : vector<2x8x64xf32> to vector<16x64xf32>
    %560 = vector.extract_strided_slice %414 {offsets = [0, 1, 0, 0], sizes = [2, 1, 8, 1], strides = [1, 1, 1, 1]} : vector<2x8x8x1xf32> to vector<2x1x8x1xf32>
    %561 = vector.shape_cast %560 : vector<2x1x8x1xf32> to vector<2x8x1xf32>
    %562 = vector.shape_cast %561 : vector<2x8x1xf32> to vector<16x1xf32>
    %563 = arith.mulf %556, %541 : vector<16x64xf32>
    %564 = arith.addf %563, %559 : vector<16x64xf32>
    %565 = vector.broadcast %562 : vector<16x1xf32> to vector<16x64xf32>
    %566 = arith.mulf %564, %565 : vector<16x64xf32>
    %567 = vector.shape_cast %566 : vector<16x64xf32> to vector<2x8x64xf32>
    %cst_168 = arith.constant dense<0.000000e+00> : vector<2x64xf32>
    %568 = vector.multi_reduction <add>, %567, %cst_168 [1] : vector<2x8x64xf32> to vector<2x64xf32>
    %569 = vector.extract_strided_slice %568 {offsets = [0, 0], sizes = [1, 64], strides = [1, 1]} : vector<2x64xf32> to vector<1x64xf32>
    %c1_169 = arith.constant 1 : index
    %c1_170 = arith.constant 1 : index
    %c0_171 = arith.constant 0 : index
    %570 = vector.load %arg16[%c1_169, %c1_170, %c0_171] : memref<2x16x64xf32, #tpu.memory_space<vmem>>, vector<1x1x64xf32>
    %571 = vector.shape_cast %570 : vector<1x1x64xf32> to vector<1x64xf32>
    %572 = vector.shape_cast %569 : vector<1x64xf32> to vector<1x1x64xf32>
    tpu.vector_store %arg16[%c1_169, %c1_170, %c0_171], %572 {strides = array<i32>} : memref<2x16x64xf32, #tpu.memory_space<vmem>>, vector<1x1x64xf32>,
    %573 = vector.extract_strided_slice %568 {offsets = [1, 0], sizes = [1, 64], strides = [1, 1]} : vector<2x64xf32> to vector<1x64xf32>
    %c1_172 = arith.constant 1 : index
    %c9_173 = arith.constant 9 : index
    %c0_174 = arith.constant 0 : index
    %574 = vector.load %arg16[%c1_172, %c9_173, %c0_174] : memref<2x16x64xf32, #tpu.memory_space<vmem>>, vector<1x1x64xf32>
    %575 = vector.shape_cast %574 : vector<1x1x64xf32> to vector<1x64xf32>
    %576 = vector.shape_cast %573 : vector<1x64xf32> to vector<1x1x64xf32>
    tpu.vector_store %arg16[%c1_172, %c9_173, %c0_174], %576 {strides = array<i32>} : memref<2x16x64xf32, #tpu.memory_space<vmem>>, vector<1x1x64xf32>,
    %577 = vector.extract_strided_slice %411 {offsets = [0, 0, 0, 0], sizes = [2, 1, 8, 64], strides = [1, 1, 1, 1]} : vector<2x8x8x64xf32> to vector<2x1x8x64xf32>
    %578 = vector.shape_cast %577 : vector<2x1x8x64xf32> to vector<2x8x64xf32>
    %579 = vector.shape_cast %578 : vector<2x8x64xf32> to vector<16x64xf32>
    %580 = vector.extract_strided_slice %412 {offsets = [0, 0, 0, 0], sizes = [2, 1, 8, 64], strides = [1, 1, 1, 1]} : vector<2x8x8x64xf32> to vector<2x1x8x64xf32>
    %581 = vector.shape_cast %580 : vector<2x1x8x64xf32> to vector<2x8x64xf32>
    %582 = vector.shape_cast %581 : vector<2x8x64xf32> to vector<16x64xf32>
    %583 = vector.extract_strided_slice %414 {offsets = [0, 0, 0, 0], sizes = [2, 1, 8, 1], strides = [1, 1, 1, 1]} : vector<2x8x8x1xf32> to vector<2x1x8x1xf32>
    %584 = vector.shape_cast %583 : vector<2x1x8x1xf32> to vector<2x8x1xf32>
    %585 = vector.shape_cast %584 : vector<2x8x1xf32> to vector<16x1xf32>
    %586 = arith.mulf %579, %564 : vector<16x64xf32>
    %587 = arith.addf %586, %582 : vector<16x64xf32>
    %588 = vector.broadcast %585 : vector<16x1xf32> to vector<16x64xf32>
    %589 = arith.mulf %587, %588 : vector<16x64xf32>
    %590 = vector.shape_cast %589 : vector<16x64xf32> to vector<2x8x64xf32>
    %cst_175 = arith.constant dense<0.000000e+00> : vector<2x64xf32>
    %591 = vector.multi_reduction <add>, %590, %cst_175 [1] : vector<2x8x64xf32> to vector<2x64xf32>
    %592 = vector.extract_strided_slice %591 {offsets = [0, 0], sizes = [1, 64], strides = [1, 1]} : vector<2x64xf32> to vector<1x64xf32>
    %c1_176 = arith.constant 1 : index
    %c0_177 = arith.constant 0 : index
    %c0_178 = arith.constant 0 : index
    %593 = vector.load %arg16[%c1_176, %c0_177, %c0_178] : memref<2x16x64xf32, #tpu.memory_space<vmem>>, vector<1x1x64xf32>
    %594 = vector.shape_cast %593 : vector<1x1x64xf32> to vector<1x64xf32>
    %595 = vector.shape_cast %592 : vector<1x64xf32> to vector<1x1x64xf32>
    tpu.vector_store %arg16[%c1_176, %c0_177, %c0_178], %595 {strides = array<i32>} : memref<2x16x64xf32, #tpu.memory_space<vmem>>, vector<1x1x64xf32>,
    %596 = vector.extract_strided_slice %591 {offsets = [1, 0], sizes = [1, 64], strides = [1, 1]} : vector<2x64xf32> to vector<1x64xf32>
    %c1_179 = arith.constant 1 : index
    %c8_180 = arith.constant 8 : index
    %c0_181 = arith.constant 0 : index
    %597 = vector.load %arg16[%c1_179, %c8_180, %c0_181] : memref<2x16x64xf32, #tpu.memory_space<vmem>>, vector<1x1x64xf32>
    %598 = vector.shape_cast %597 : vector<1x1x64xf32> to vector<1x64xf32>
    %599 = vector.shape_cast %596 : vector<1x64xf32> to vector<1x1x64xf32>
    tpu.vector_store %arg16[%c1_179, %c8_180, %c0_181], %599 {strides = array<i32>} : memref<2x16x64xf32, #tpu.memory_space<vmem>>, vector<1x1x64xf32>,
    %600 = vector.broadcast %330 : vector<1x64xf32> to vector<16x64xf32>
    %601 = arith.mulf %377, %600 : vector<16x64xf32>
    %602 = arith.addf %318, %601 : vector<16x64xf32>
    %c0_182 = arith.constant 0 : index
    %c0_183 = arith.constant 0 : index
    %c0_184 = arith.constant 0 : index
    %603 = vector.load %arg16[%c0_182, %c0_183, %c0_184] : memref<2x16x64xf32, #tpu.memory_space<vmem>>, vector<1x16x64xf32>
    %604 = vector.shape_cast %603 : vector<1x16x64xf32> to vector<16x64xf32>
    %c1_185 = arith.constant 1 : index
    %c0_186 = arith.constant 0 : index
    %c0_187 = arith.constant 0 : index
    %605 = vector.load %arg16[%c1_185, %c0_186, %c0_187] : memref<2x16x64xf32, #tpu.memory_space<vmem>>, vector<1x16x64xf32>
    %606 = vector.shape_cast %605 : vector<1x16x64xf32> to vector<16x64xf32>
    %607 = arith.addf %604, %606 : vector<16x64xf32>
    %608 = arith.addf %607, %602 : vector<16x64xf32>
    %609 = arith.mulf %608, %31 : vector<16x64xf32>
    %610 = arith.truncf %609 : vector<16x64xf32> to vector<16x64xbf16>
    %c0_188 = arith.constant 0 : index
    %c0_189 = arith.constant 0 : index
    %c0_190 = arith.constant 0 : index
    %611 = vector.load %arg5[%c0_188, %c0_189, %c0_190] : memref<1x64x32xbf16, #tpu.memory_space<vmem>>, vector<1x64x32xbf16>
    %612 = vector.shape_cast %611 : vector<1x64x32xbf16> to vector<64x32xbf16>
    %cst_191 = arith.constant dense<0.000000e+00> : vector<16x32xf32>
    %613 = tpu.matmul %610, %612, %cst_191 {dimension_numbers = #tpu.dot_dimension_numbers<[1], [0], [0], [1], [0, 0, 1, 1], [], []>} : vector<16x64xbf16>, vector<64x32xbf16>, vector<16x32xf32> -> vector<16x32xf32>
    %c0_192 = arith.constant 0 : index
    %c0_193 = arith.constant 0 : index
    %614 = vector.load %arg14[%c0_192, %c0_193] : memref<16x32xf32, #tpu.memory_space<vmem>>, vector<16x32xf32>
    tpu.vector_store %arg14[%c0_192, %c0_193], %613 {strides = array<i32>} : memref<16x32xf32, #tpu.memory_space<vmem>>, vector<16x32xf32>,
    %c0_194 = arith.constant 0 : index
    %c0_195 = arith.constant 0 : index
    %615 = vector.load %arg15[%c0_194, %c0_195] : memref<16x32xf32, #tpu.memory_space<vmem>>, vector<16x32xf32>
    tpu.vector_store %arg15[%c0_194, %c0_195], %5 {strides = array<i32>} : memref<16x32xf32, #tpu.memory_space<vmem>>, vector<16x32xf32>,
    %c1_i32_196 = arith.constant 1 : i32
    %616 = arith.cmpi eq, %arg0, %c1_i32_196 : i32
    %617 = arith.extui %616 : i1 to i32
    %c0_i32_197 = arith.constant 0 : i32
    %618 = arith.cmpi ne, %617, %c0_i32_197 : i32
    scf.if %618 {
      %619 = arith.addf %613, %5 : vector<16x32xf32>
      %c0_198 = arith.constant 0 : index
      %c0_199 = arith.constant 0 : index
      %620 = vector.load %arg12[%c0_198, %c0_199] : memref<1x32xf32, #tpu.memory_space<vmem>>, vector<1x32xf32>
      %621 = arith.mulf %619, %619 : vector<16x32xf32>
      %cst_200 = arith.constant dense<0.000000e+00> : vector<16xf32>
      %622 = vector.multi_reduction <add>, %621, %cst_200 [1] : vector<16x32xf32> to vector<16xf32>
      %623 = vector.shape_cast %622 : vector<16xf32> to vector<16x1xf32>
      %cst_201 = arith.constant 3.200000e+01 : f32
      %624 = vector.broadcast %cst_201 : f32 to vector<16x1xf32>
      %625 = arith.divf %623, %624 : vector<16x1xf32>
      %cst_202 = arith.constant 9.99999974E-6 : f32
      %626 = vector.broadcast %cst_202 : f32 to vector<16x1xf32>
      %627 = arith.addf %625, %626 : vector<16x1xf32>
      %628 = math.rsqrt %627 : vector<16x1xf32>
      %629 = vector.broadcast %628 : vector<16x1xf32> to vector<16x32xf32>
      %630 = arith.mulf %619, %629 : vector<16x32xf32>
      %631 = vector.broadcast %620 : vector<1x32xf32> to vector<16x32xf32>
      %632 = arith.mulf %630, %631 : vector<16x32xf32>
      %c0_203 = arith.constant 0 : index
      %c0_204 = arith.constant 0 : index
      %633 = vector.load %arg13[%c0_203, %c0_204] : memref<16x32xf32, #tpu.memory_space<vmem>>, vector<16x32xf32>
      tpu.vector_store %arg13[%c0_203, %c0_204], %632 {strides = array<i32>} : memref<16x32xf32, #tpu.memory_space<vmem>>, vector<16x32xf32>,
    } else {
    }
    return
  }
  func.func @transform_0(%arg0: i32) -> (i32, i32) {
    %c0_i32 = arith.constant 0 : i32
    %c0_i32_0 = arith.constant 0 : i32
    %c0_i32_1 = arith.constant 0 : i32
    return %c0_i32, %c0_i32_0 : i32, i32
  }
  func.func @transform_1(%arg0: i32) -> (i32, i32) {
    %c0_i32 = arith.constant 0 : i32
    %c0_i32_0 = arith.constant 0 : i32
    %c0_i32_1 = arith.constant 0 : i32
    return %c0_i32, %c0_i32_0 : i32, i32
  }
  func.func @transform_2(%arg0: i32) -> (i32, i32, i32) {
    %c0_i32 = arith.constant 0 : i32
    %c0_i32_0 = arith.constant 0 : i32
    %c0_i32_1 = arith.constant 0 : i32
    return %arg0, %c0_i32, %c0_i32_0 : i32, i32, i32
  }
  func.func @transform_3(%arg0: i32) -> (i32, i32, i32) {
    %c0_i32 = arith.constant 0 : i32
    %c0_i32_0 = arith.constant 0 : i32
    %c0_i32_1 = arith.constant 0 : i32
    return %arg0, %c0_i32, %c0_i32_0 : i32, i32, i32
  }
  func.func @transform_4(%arg0: i32) -> (i32, i32, i32) {
    %c0_i32 = arith.constant 0 : i32
    %c0_i32_0 = arith.constant 0 : i32
    %c0_i32_1 = arith.constant 0 : i32
    return %arg0, %c0_i32, %c0_i32_0 : i32, i32, i32
  }
  func.func @transform_5(%arg0: i32) -> (i32, i32, i32, i32) {
    %c0_i32 = arith.constant 0 : i32
    %c0_i32_0 = arith.constant 0 : i32
    %c0_i32_1 = arith.constant 0 : i32
    %c0_i32_2 = arith.constant 0 : i32
    return %arg0, %c0_i32, %c0_i32_0, %c0_i32_1 : i32, i32, i32, i32
  }
  func.func @transform_6(%arg0: i32) -> (i32, i32, i32, i32) {
    %c0_i32 = arith.constant 0 : i32
    %c0_i32_0 = arith.constant 0 : i32
    %c0_i32_1 = arith.constant 0 : i32
    %c0_i32_2 = arith.constant 0 : i32
    return %arg0, %c0_i32, %c0_i32_0, %c0_i32_1 : i32, i32, i32, i32
  }
  func.func @transform_7(%arg0: i32) -> (i32, i32, i32, i32) {
    %c0_i32 = arith.constant 0 : i32
    %c0_i32_0 = arith.constant 0 : i32
    %c0_i32_1 = arith.constant 0 : i32
    %c0_i32_2 = arith.constant 0 : i32
    return %arg0, %c0_i32, %c0_i32_0, %c0_i32_1 : i32, i32, i32, i32
  }
  func.func @transform_8(%arg0: i32) -> (i32, i32, i32, i32) {
    %c0_i32 = arith.constant 0 : i32
    %c0_i32_0 = arith.constant 0 : i32
    %c0_i32_1 = arith.constant 0 : i32
    %c0_i32_2 = arith.constant 0 : i32
    return %arg0, %c0_i32, %c0_i32_0, %c0_i32_1 : i32, i32, i32, i32
  }
  func.func @transform_9(%arg0: i32) -> (i32, i32, i32, i32) {
    %c0_i32 = arith.constant 0 : i32
    %c0_i32_0 = arith.constant 0 : i32
    %c0_i32_1 = arith.constant 0 : i32
    %c0_i32_2 = arith.constant 0 : i32
    return %arg0, %c0_i32, %c0_i32_0, %c0_i32_1 : i32, i32, i32, i32
  }
  func.func @transform_10(%arg0: i32) -> (i32, i32, i32, i32) {
    %c0_i32 = arith.constant 0 : i32
    %c0_i32_0 = arith.constant 0 : i32
    %c0_i32_1 = arith.constant 0 : i32
    %c0_i32_2 = arith.constant 0 : i32
    return %arg0, %c0_i32, %c0_i32_0, %c0_i32_1 : i32, i32, i32, i32
  }
  func.func @transform_11(%arg0: i32) -> (i32, i32) {
    %c0_i32 = arith.constant 0 : i32
    %c0_i32_0 = arith.constant 0 : i32
    %c0_i32_1 = arith.constant 0 : i32
    return %c0_i32, %c0_i32_0 : i32, i32
  }
  func.func @transform_12(%arg0: i32) -> (i32, i32) {
    %c0_i32 = arith.constant 0 : i32
    %c0_i32_0 = arith.constant 0 : i32
    %c0_i32_1 = arith.constant 0 : i32
    return %c0_i32, %c0_i32_0 : i32, i32
  }
}

</mosaic_0001>

<bundles_post_ra>
// kernel: caduceus_forward.1
= control target key start
LH: loop header
LB: loop body
LE: loop exit
PB: predicated region body
PF: predicated region fallthrough
CT: control target
= control target key end

     0   :  { %s3906_s0 = inlined_call_operand.vmem [shape: s32[16,1], index: 0, kind: input, shape index: {}]   ;;  %s3907_s1 = inlined_call_operand.vmem [shape: f32[16,32], index: 1, kind: input, shape index: {}]   ;;  %s3908_s2 = inlined_call_operand.vmem [shape: f32[2,1,32], index: 2, kind: input, shape index: {}]   ;;  %s3909_s3 = inlined_call_operand.vmem [shape: bf16[2,32,128], index: 3, kind: input, shape index: {}]   ;;  %s3910_s4 = inlined_call_operand.vmem [shape: bf16[2,64,32], index: 4, kind: input, shape index: {}]   ;;  %s3911_s5 = inlined_call_operand.vmem [shape: f32[2,2,4,64], index: 5, kind: input, shape index: {}]   ;;  %s3912_s6 = inlined_call_operand.vmem [shape: f32[2,2,1,64], index: 6, kind: input, shape index: {}]   ;;  %s3913_s7 = inlined_call_operand.hbm [shape: bf16[2,2,64,80], index: 7, kind: input, shape index: {}]   ;;  %s3914_s8 = inlined_call_operand.vmem [shape: f32[2,2,1,64], index: 8, kind: input, shape index: {}]   ;;  %s3915_s9 = inlined_call_operand.vmem [shape: f32[2,2,8,64], index: 9, kind: input, shape index: {}]   ;;  %s3916_s10 = inlined_call_operand.vmem [shape: f32[2,2,1,64], index: 10, kind: input, shape index: {}]   ;;  %s3917_s11 = inlined_call_operand.vmem [shape: f32[1,32], index: 11, kind: input, shape index: {}]   ;;  %s3918_s12 = inlined_call_operand.hbm [shape: f32[16,32], index: 12, kind: output, shape index: {}]  }
   0x1   :  { %3935 = sst [smem:[#allocation17_spill]] %s3909_s3 }
   0x2   :  { %3936 = sst [smem:[#allocation18_spill]] %s3910_s4 }
   0x3   :  { %3937 = sst [smem:[#allocation19_spill]] %s3913_s7 }
   0x4   :  { %17 = vsyncpa [#allocation6], 0 }
   0x5   :  { %19 = vsyncpa [#allocation6 + $0x1], 0 }
   0x6   :  { %20 = vsyncpa [#allocation7], 0  ;;  %s2994_s21 = smov 0   ;;  %s2996_s22 = smov 0  }
   0x7   :  { %s2998_s23 = smov 0   ;;  %s3000_s24 = smov 0  }
   0x8 LB: > { %3938 = sst [smem:[#allocation11_spill]] %s2910_s22  ;;  %s3013_s25 = sadd.s32 4294967295, %s2918_s24   ;;  %s2918_s24 = sphi %s3000_s24, %s3976_s24   ;;  %s2914_s23 = sphi %s2998_s23, %s3979_s23   ;;  %s2910_s22 = sphi %s2996_s22, %s3978_s22   ;;  %s2906_s21 = sphi %s2994_s21, %s3977_s21  }
   0x9   : > { %3939 = sst [smem:[#allocation12_spill]] %s2914_s23  ;;  %s3016_s26 = sadd.s32 1, %s2918_s24  }
   0xa   : > { %3940 = sst [smem:[#allocation13_spill]] %s3016_s26  ;;  %s202_s27 = ssub.s32 %s2918_s24, %s3016_s26 }
   0xb   : > { %s205_s28 = sadd.s32 1, %s2914_s23  ;;  %p203_p0 = scmp.eq.s32.totalorder %s202_s27, 0 }
   0xc   : > { %p212_p1 = scmp.ne.s32.totalorder %s2914_s23, %s2910_s22  ;;  %p213_p2 = scmp.eq.s32.totalorder %s2918_s24, 0 }
   0xd   : > { %p218_p3 = scmp.ne.s32.totalorder %s2910_s22, %s2906_s21  ;;  %p219_p5 = scmp.eq.s32.totalorder %s3013_s25, 0 }
   0xe   : > { %s3026_s29 = scalar_select %p203_p0, %s2914_s23, %s205_s28  }
   0xf   : > { %p3028_p4 = por %p213_p2, %p212_p1  ;;  %p2631_p6 = scmp.lt.s32.totalorder %s2918_s24, 2 }
  0x10   : > { %3941 = sst [smem:[#allocation14_spill]] %s3026_s29  ;;  %p3034_p7 = por %p219_p5, %p218_p3 }
  0x11   : > { %s408_s14 = sand.u32 1, %s2914_s23   ;;  %s2600_s16 = sshll.u32 %s2918_s24, 6 }
  0x12   : > { %s2495_s15 = sshll.u32 %s408_s14, 6  ;;  %s3944_s7 = sld [smem:[#allocation19_spill]] }
  0x13   : > { %s412_s20 = scalar_lea.vmem [#allocation5], %s2495_s15  ;;  %p3045_p8 = pnand %p2631_p6, %p3028_p4 }
  0x14   : > { %s420_s21 = sshll.u32 %s412_s20, 4  ;;  %p2498_p9 = scmp.ge.s32.totalorder %s2918_s24, 1  ;;  %s421_s21 = int_to_ptr.vmem [resolvable:$true] %s420_s21 }
  0x15   : > { %s409_s29 = scalar_lea.sflag [#allocation6], %s408_s14  ;;  %p2826_p11 = pneg %p3045_p8 }
  0x18   : > { %s417_s19 = scalar_lea.hbm %s3944_s7, %s2600_s16  ;;  %s2829_s17 = scalar_lea.hbm %s3944_s7, 128 }
  0x19   : > { %s418_s27 = sshll.u32 %s417_s19, 4  ;;  %s419_s27 = int_to_ptr.hbm [resolvable:$true] %s418_s27 }
  0x1a   : > { %s2822_s23 = sshra.s32 %s419_s27, 4  ;;  %s2823_s23 = int_to_ptr.hbm [resolvable:$true] %s2822_s23 }
  0x1b   : > { %s2824_s26 = scalar_lea.hbm %s2823_s23, 64  ;;  %p2830_p0 = scmp.lt.s32.totalorder %s2823_s23, %s3944_s7 }
  0x1c   : > { %p2825_p10 = scmp.ne.s32.totalorder %s2823_s23, %s2824_s26  ;;  %p2831_p1 = scmp.lt.s32.totalorder %s2829_s17, %s2824_s26 }
  0x1e   : > { %p2827_p12 = pnand %p2826_p11, %p2825_p10  ;;  %p2832_p2 = por %p2831_p1, %p2830_p0 }
  0x20   : > { %p2828_p13 = pneg %p2827_p12 }
  0x22   : > { %p2833_p3 = pnand %p2832_p2, %p2828_p13 }
  0x24   : > { %2836 = shalt.err (!%p2833_p3)
}
  0x25   : > { %s2920_s14 = smov 64   ;;  %s2921_s19 = smov 4  }
  0x26   : > { %2630 = dma.hbm_to_vmem [thread:$0]  (!%p3045_p8), %s419_s27, 1024, %s421_s21, %s409_s29, %s2920_s14, %s2920_s14, %s2921_s19  }
  0x27   : > { %p450_p4 = scmp.lt.s32.totalorder %s2918_s24, 3 }
  0x29   : > { %p451_p5 = pnand %p2498_p9, %p450_p4 }
  0x2b   : > { %454 = sbr.rel (%p451_p5) target bundleno = 1475 (0x5c3), region = 68 }
  0x30   : > { %s456_s20 = sand.u32 1, %s2910_s22  }
  0x31   : > { %s2499_s15 = sshll.u32 %s456_s20, 6  ;;  %s457_s23 = scalar_lea.sflag [#allocation6], %s456_s20 }
  0x32   : > { %s3064_s26 = scalar_lea.vmem [#allocation5], %s2499_s15 }
  0x33   : > { %2897 = dma.done.wait (%p3034_p7), %s457_s23, 1024  }
  0x34   : > { %2899 = vsyncadd (%p3034_p7), %s457_s23, 4294966272  ;;  %p532_p6 = scmp.lt.s32.totalorder %s3013_s25, 1  ;;  %s3946_s3 = sld [smem:[#allocation17_spill]] }
  0x35   : > { %s3947_s4 = sld [smem:[#allocation18_spill]]  ;;  %p2511_p7 = scmp.ne.s32.totalorder %s3013_s25, 0 }
  0x36   : > { %s3072_s29 = scalar_select %p532_p6, %s3013_s25, 1 }
  0x38   : > { %s2601_s28 = sshll.u32 %s3072_s29, 4  ;;  %s2602_s30 = sshll.u32 %s3072_s29, 5 }
  0x39   : > { %s2603_s20 = sshll.u32 %s3072_s29, 3  ;;  %s2506_s21 = sshll.u32 %s3072_s29, 1 }
  0x3a   : > { %s3082_s13 = scalar_lea.vmem %s3946_s3, %s2601_s28  ;;  %s3094_s24 = scalar_lea.vmem %s3911_s5, %s2603_s20 }
  0x3b   : > { %s3088_s19 = scalar_lea.vmem %s3947_s4, %s2602_s30  ;;  %s3100_s22 = scalar_lea.vmem %s3912_s6, %s2506_s21 }
  0x3c   : > { %s3105_s3 = scalar_lea.vmem %s3914_s8, %s2506_s21  ;;  %s3110_s14 = scalar_lea.vmem %s3915_s9, %s2601_s28 }
  0x3d   : > { %s3115_s20 = scalar_lea.vmem %s3916_s10, %s2506_s21  ;;  %571 = sbr.rel (%p2511_p7) target bundleno = 320 (0x140), region = 76 }
  0x42   : > { %v574_v0 = vld [vmem:[%s3906_s0] sm:$0xff]  ;;  %v589_v1 = vld [vmem:[%s3907_s1 + $0x8] sm:$0xff]  ;;  %v2922_v2 = vmov 0   ;;  %v572_v5 = vlaneseq  ;;  %vm590_vm0 = vcmask 130048   ;;  %v2923_v8 = vmov 0.0  }
  0x43   : > { %2675 = vset.pattern.permute.xlu0 %v2922_v2  ;;  %611 = vmatpush.msra.mxu0 %v589_v1  ;;  %v575_v3 = vld [vmem:[%s3906_s0 + $0x8] sm:$0xff]  ;;  %v588_v4 = vld [vmem:[%s3907_s1] sm:$0xff]  ;;  %vm620_vm3 = vcmask 261120  }
  0x44   : > { %577 = vperm.xlu0 %2675, %v574_v0   ;;  %2619 = vmatpush.msra.mxu1 %v589_v1  ;;  %v573_v6 = vand.u32 127, %v572_v5  ;;  %623 = vst.msk [vmem:[#allocation3] sm:$0xff] %vm620_vm3, %v2923_v8 }
  0x45   : > { %612 = vmatpush.msra.mxu0 %v588_v4  ;;  %624 = vst.msk [vmem:[#allocation3 + $0x8] sm:$0xff] %vm620_vm3, %v2923_v8 }
  0x46   : > { %2620 = vmatpush.msra.mxu1 %v588_v4 }
  0x4c   : > { %580 = vperm.xlu0 %2675, %v575_v3  }
  0xb6   : > { %v578_v7 = vpop.permute.xlu0 %577 }
  0xb7   : > { %vm582_vm1 = vcmp.eq.s32.totalorder %v573_v6, %v578_v7 }
  0xb8   : > { %v2512_v9 = vsel %vm582_vm1, 1.0, %v2923_v8 }
  0xb9   : > { %2514 = vmatmul.msk.f32.vlgmr.msra.gmra.mxu0 %vm590_vm0, %v2512_v9 }
  0xbe   : > { %v581_v10 = vpop.permute.xlu0 %580 }
  0xbf   : > { %vm583_vm2 = vcmp.eq.s32.totalorder %v573_v6, %v581_v10 }
  0xc0   : > { %v2513_v11 = vsel %vm583_vm2, 1.0, %v2923_v8 }
  0xc1   : > { %2515 = vmatmul.msk.f32.vlgmr.msra.gmra.mxu1 %vm590_vm0, %v2513_v11 }
 0x136   : > { %v614_v12 = vpop.f32.mrf.mxu0 }
 0x137   : > { %621 = vst.msk [vmem:[#allocation2] sm:$0xff] %vm620_vm3, %v614_v12 }
 0x13e   : > { %v617_v13 = vpop.f32.mrf.mxu1 }
 0x13f   : > { %622 = vst.msk [vmem:[#allocation2 + $0x8] sm:$0xff] %vm620_vm3, %v617_v13 }
 0x140 PF: > { %v625_v14 = vld [vmem:[#allocation2] sm:$0xff]  ;;  %v627_v15 = vld [vmem:[#allocation3] sm:$0xff]  ;;  %vm634_vm4 = vcmask 261120   ;;  %v628_v18 = vld [vmem:[#allocation3 + $0x8] sm:$0xff]  ;;  %v2924_v24 = vmov 32.0   ;;  %s3950_s30 = scalar_lea.vmem %s3908_s2, %s3072_s29  ;;  %v753_v3 = vlaneseq  ;;  %p2595_p8 = scmp.ne.s32.totalorder %s3013_s25, 1 }
 0x141   : > { %v3130_v17 = vadd.f32 %v627_v15, %v625_v14  ;;  %2707 = vrcp.f32 %v2924_v24  ;;  %v2606_v30 = vld [vmem:[%s3082_s13 + $0x8] sm:$0xff]  ;;  %v2605_v32 = vld [vmem:[%s3082_s13] sm:$0xff]  ;;  %v2610_v59 = vld [vmem:[%s3064_s26 + $0x18] sm:$0xff] }
 0x142   : > { %705 = vmatpush.bf16.msra.mxu0 %v2606_v30  ;;  %v2700_v53 = vld [vmem:[%s3950_s30] ss:$0 sm:$0xff]  ;;  %v2614_v60 = vld [vmem:[%s3064_s26 + $0x38] sm:$0xff]  ;;  %879 = vmatpush.bf16.msra.mxu1 %v2610_v59  ;;  %v2609_v61 = vld [vmem:[%s3064_s26 + $0x10] sm:$0xff]  ;;  %v3166_v4 = vshrl.u32 %v753_v3, 7 }
 0x143   : > { %v632_v20 = vmul.f32 %v3130_v17, %v3130_v17  ;;  %2288 = vst.msk [vmem:[#allocation3] sm:$0xff] %vm634_vm4, %v3130_v17  ;;  %1613 = vmatpush.bf16.msra.mxu2 %v2614_v60  ;;  %v2613_v62 = vld [vmem:[%s3064_s26 + $0x30] sm:$0xff]  ;;  %v2608_v63 = vld [vmem:[%s3064_s26 + $0x8] sm:$0xff]  ;;  %v2607_v1 = vld [vmem:[%s3064_s26] sm:$0xff] }
 0x144   : > { %v2612_v0 = vld [vmem:[%s3064_s26 + $0x28] sm:$0xff]  ;;  %v2611_v2 = vld [vmem:[%s3064_s26 + $0x20] sm:$0xff]  ;;  %vm773_vm12 = vcmp.ge.s32.totalorder %v3166_v4, 1  ;;  %vm783_vm13 = vcmp.ge.s32.totalorder %v3166_v4, 2  ;;  %vm1508_vm14 = vcmp.lt.s32.totalorder %v3166_v4, 7  ;;  %vm793_vm15 = vcmp.ge.s32.totalorder %v3166_v4, 3 }
 0x145   : > { %v635_v21 = vsel %vm634_vm4, %v632_v20, 0.0  ;;  %v3169_v5 = vld [vmem:[%s3094_s24] sm:$0xf]  ;;  %v3172_v6 = vld [vmem:[%s3094_s24 + $0x4] sm:$0xf]  ;;  %vm1518_vm0 = vcmp.lt.s32.totalorder %v3166_v4, 6 }
 0x146   : > { %v626_v16 = vld [vmem:[#allocation2 + $0x8] sm:$0xff]  ;;  %636 = vadd.xlane.f32.xlu0 %v635_v21  ;;  %706 = vmatpush.bf16.msra.mxu0 %v2605_v32  ;;  %v768_v7 = vperm.slane %v3169_v5, 3  ;;  %v1503_v8 = vperm.slane %v3172_v6, 3  ;;  %v776_v10 = vperm.slane %v3169_v5, 2  ;;  %v786_v11 = vperm.slane %v3169_v5, 1 }
 0x147   : > { %v3132_v19 = vadd.f32 %v628_v18, %v626_v16  ;;  %v2708_v25 = vpop.eup %2707  ;;  %880 = vmatpush.bf16.msra.mxu1 %v2609_v61  ;;  %1614 = vmatpush.bf16.msra.mxu2 %v2613_v62  ;;  %v1511_v15 = vperm.slane %v3172_v6, 2  ;;  %v796_v16 = vperm.slane %v3169_v5, 0  ;;  %vm1528_vm1 = vcmp.lt.s32.totalorder %v3166_v4, 5 }
 0x148   : > { %v642_v26 = vmul.f32 32.0, %v2708_v25  ;;  %vm646_vm5 = vweird.f32 %v2708_v25  ;;  %v1521_v30 = vperm.slane %v3172_v6, 1 }
 0x149   : > { %3948 = vst [vmem:[#allocation15_spill] sm:$0xff] %v3132_v19  ;;  %v633_v22 = vmul.f32 %v3132_v19, %v3132_v19 }
 0x14a   : > { %2289 = vst.msk [vmem:[#allocation3 + $0x8] sm:$0xff] %vm634_vm4, %v3132_v19  ;;  %v643_v27 = vsub.f32 1.0, %v642_v26 }
 0x14b   : > { %v638_v23 = vsel %vm634_vm4, %v633_v22, 0.0  ;;  %881 = vmatpush.bf16.msra.mxu1 %v2608_v63  ;;  %1615 = vmatpush.bf16.msra.mxu2 %v2612_v0 }
 0x14c   : > { %v644_v28 = vmul.f32 %v2708_v25, %v643_v27 }
 0x14e   : > { %639 = vadd.xlane.f32.xlu0 %v638_v23  ;;  %v645_v29 = vadd.f32 %v2708_v25, %v644_v28 }
 0x14f   : > { %882 = vmatpush.bf16.msra.mxu1 %v2607_v1  ;;  %1616 = vmatpush.bf16.msra.mxu2 %v2611_v2 }
 0x150   : > { %v3145_v31 = vsel %vm646_vm5, %v2708_v25, %v645_v29 }
 0x151   : > { %3949 = vst [vmem:[#allocation16_spill] sm:$0xff] %v3145_v31 }
 0x1b9   : > { %v637_v33 = vpop.xlane.xlu0 %636 }
 0x1ba   : > { %v648_v34 = vmul.f32 %v3145_v31, %v637_v33 }
 0x1bc   : > { %v650_v35 = vadd.f32 1e-05, %v648_v34 }
 0x1be   : > { %2709 = vrsqrt.f32 %v650_v35  ;;  %vm658_vm7 = vweird.f32 %v650_v35 }
 0x1c1   : > { %v640_v36 = vpop.xlane.xlu0 %639 }
 0x1c2   : > { %v649_v37 = vmul.f32 %v3145_v31, %v640_v36 }
 0x1c4   : > { %v2710_v38 = vpop.eup %2709  ;;  %v651_v39 = vadd.f32 1e-05, %v649_v37 }
 0x1c5   : > { %v653_v40 = vmul.f32 %v2710_v38, %v650_v35  ;;  %vm659_vm6 = vweird.f32 %v2710_v38  ;;  %v1531_v35 = vperm.slane %v3172_v6, 0 }
 0x1c6   : > { %2711 = vrsqrt.f32 %v651_v39  ;;  %vm660_vm8 = vmor %vm658_vm7, %vm659_vm6  ;;  %vm668_vm10 = vweird.f32 %v651_v39 }
 0x1c7   : > { %v654_v41 = vmul.f32 %v2710_v38, %v653_v40 }
 0x1c9   : > { %v655_v42 = vmul.f32 0.5, %v654_v41  ;;  %v2701_v41 = vld [vmem:[%s3100_s22] ss:$0 sm:$0xff] }
 0x1cb   : > { %v656_v43 = vsub.f32 1.5, %v655_v42 }
 0x1cc   : > { %v2712_v44 = vpop.eup %2711 }
 0x1cd   : > { %v663_v45 = vmul.f32 %v2712_v44, %v651_v39  ;;  %v657_v46 = vmul.f32 %v2710_v38, %v656_v43  ;;  %vm669_vm9 = vweird.f32 %v2712_v44 }
 0x1ce   : > { %vm670_vm11 = vmor %vm668_vm10, %vm669_vm9 }
 0x1cf   : > { %v664_v47 = vmul.f32 %v2712_v44, %v663_v45  ;;  %v661_v49 = vsel %vm660_vm8, %v2710_v38, %v657_v46 }
 0x1d0   : > { %v672_v52 = vmul.f32 %v661_v49, %v3130_v17 }
 0x1d1   : > { %v665_v48 = vmul.f32 0.5, %v664_v47 }
 0x1d2   : > { %v677_v56 = vmul.f32 %v2700_v53, %v672_v52 }
 0x1d3   : > { %v666_v50 = vsub.f32 1.5, %v665_v48 }
 0x1d5   : > { %v667_v51 = vmul.f32 %v2712_v44, %v666_v50 }
 0x1d7   : > { %v671_v54 = vsel %vm670_vm11, %v2712_v44, %v667_v51 }
 0x1d8   : > { %v673_v55 = vmul.f32 %v671_v54, %v3132_v19  ;;  %v2702_v54 = vld [vmem:[%s3100_s22 + $0x1] ss:$0 sm:$0xff] }
 0x1da   : > { %v678_v57 = vmul.f32 %v2700_v53, %v673_v55 }
 0x1dc   : > { %v679_v58 = vpack.c.bf16 %v678_v57, %v677_v56 }
 0x1de   : > { %2524 = vmatmul.msk.bf16.vlgmr.msra.gmra.mxu0 %vm634_vm4, %v679_v58 }
 0x25b   : > { %v3177_v9 = vpop.f32.mrf.mxu0 }
 0x25c   : > { %v771_v12 = vrot.slane %v3177_v9, 7  ;;  %v781_v13 = vrot.slane %v3177_v9, 6  ;;  %v791_v14 = vrot.slane %v3177_v9, 5  ;;  %v1506_v18 = vrot.slane %v3177_v9, 1 }
 0x25d   : > { %v1516_v20 = vrot.slane %v3177_v9, 2  ;;  %v1526_v23 = vrot.slane %v3177_v9, 3  ;;  %v769_v24 = vmul.f32 %v768_v7, %v3177_v9  ;;  %v1504_v28 = vmul.f32 %v1503_v8, %v3177_v9 }
 0x25e   : > { %v774_v21 = vsel %vm773_vm12, %v771_v12, 0.0  ;;  %v784_v22 = vsel %vm783_vm13, %v781_v13, 0.0  ;;  %v1509_v26 = vsel %vm1508_vm14, %v1506_v18, 0.0  ;;  %v794_v27 = vsel %vm793_vm15, %v791_v14, 0.0 }
 0x25f   : > { %v777_v25 = vmul.f32 %v776_v10, %v774_v21  ;;  %v1512_v29 = vmul.f32 %v1511_v15, %v1509_v26  ;;  %v787_v33 = vmul.f32 %v786_v11, %v784_v22  ;;  %v1519_v34 = vsel %vm1518_vm0, %v1516_v20, 0.0 }
 0x260   : > { %v1529_v37 = vsel %vm1528_vm1, %v1526_v23, 0.0  ;;  %v797_v40 = vmul.f32 %v796_v16, %v794_v27  ;;  %v1522_v45 = vmul.f32 %v1521_v30, %v1519_v34  ;;  %v3247_v26 = vadd.s32 64, %v3166_v4 }
 0x261   : > { %v779_v32 = vadd.f32 %v777_v25, %v769_v24  ;;  %v1514_v36 = vadd.f32 %v1512_v29, %v1504_v28  ;;  %v1532_v49 = vmul.f32 %v1531_v35, %v1529_v37 }
 0x262   : > { %2678 = vset.pattern.permute.xlu0 %v3247_v26  ;;  %2677 = vset.pattern.permute.xlu2 %v3247_v26 }
 0x263   : > { %v3210_v38 = vpop.f32.mrf.mxu0  ;;  %v789_v39 = vadd.f32 %v787_v33, %v779_v32  ;;  %v1524_v53 = vadd.f32 %v1522_v45, %v1514_v36  ;;  %2676 = vset.pattern.permute.xlu1 %v3247_v26 }
 0x264   : > { %v772_v42 = vrot.slane %v3210_v38, 7  ;;  %v782_v43 = vrot.slane %v3210_v38, 6  ;;  %v792_v44 = vrot.slane %v3210_v38, 5  ;;  %v1507_v47 = vrot.slane %v3210_v38, 1 }
 0x265   : > { %v799_v46 = vadd.f32 %v797_v40, %v789_v39  ;;  %v1517_v48 = vrot.slane %v3210_v38, 2  ;;  %v770_v50 = vmul.f32 %v768_v7, %v3210_v38  ;;  %v1505_v58 = vmul.f32 %v1503_v8, %v3210_v38 }
 0x266   : > { %v775_v51 = vsel %vm773_vm12, %v772_v42, 0.0  ;;  %v785_v52 = vsel %vm783_vm13, %v782_v43, 0.0  ;;  %v795_v56 = vsel %vm793_vm15, %v792_v44, 0.0  ;;  %v1510_v59 = vsel %vm1508_vm14, %v1507_v47, 0.0 }
 0x267   : > { %v778_v55 = vmul.f32 %v776_v10, %v775_v51  ;;  %v3226_v57 = vadd.f32 %v2701_v41, %v799_v46  ;;  %v1520_v60 = vsel %vm1518_vm0, %v1517_v48, 0.0  ;;  %v1527_v61 = vrot.slane %v3210_v38, 3 }
 0x268   : > { %v1534_v62 = vadd.f32 %v1532_v49, %v1524_v53  ;;  %v788_v0 = vmul.f32 %v786_v11, %v785_v52  ;;  %v1513_v2 = vmul.f32 %v1511_v15, %v1510_v59  ;;  %v798_v3 = vmul.f32 %v796_v16, %v795_v56 }
 0x269   : > { %v780_v63 = vadd.f32 %v778_v55, %v770_v50  ;;  %v2527_v1 = vmul.f32 -1.442695, %v3226_v57  ;;  %v1530_v5 = vsel %vm1528_vm1, %v1527_v61, 0.0  ;;  %v1523_v10 = vmul.f32 %v1521_v30, %v1520_v60 }
 0x26a   : > { %v3237_v6 = vadd.f32 %v2702_v54, %v1534_v62  ;;  %v1515_v8 = vadd.f32 %v1513_v2, %v1505_v58  ;;  %v1533_v18 = vmul.f32 %v1531_v35, %v1530_v5 }
 0x26b   : > { %v790_v7 = vadd.f32 %v788_v0, %v780_v63  ;;  %2713 = vpow2.f32 %v2527_v1 }
 0x26c   : > { %v2559_v12 = vmul.f32 -1.442695, %v3237_v6  ;;  %v1525_v14 = vadd.f32 %v1523_v10, %v1515_v8 }
 0x26d   : > { %v800_v13 = vadd.f32 %v798_v3, %v790_v7 }
 0x26e   : > { %2715 = vpow2.f32 %v2559_v12  ;;  %v1535_v20 = vadd.f32 %v1533_v18, %v1525_v14 }
 0x26f   : > { %v3240_v11 = vadd.f32 %v2701_v41, %v800_v13 }
 0x270   : > { %v3243_v21 = vadd.f32 %v2702_v54, %v1535_v20 }
 0x271   : > { %v2714_v15 = vpop.eup %2713  ;;  %v2528_v16 = vmul.f32 -1.442695, %v3240_v11 }
 0x272   : > { %v812_v22 = vadd.f32 1.0, %v2714_v15  ;;  %v2560_v23 = vmul.f32 -1.442695, %v3243_v21 }
 0x273   : > { %2717 = vpow2.f32 %v2528_v16 }
 0x274   : > { %v2716_v24 = vpop.eup %2715  ;;  %2719 = vrcp.f32 %v812_v22  ;;  %v823_v40 = vand.u32 2147483647, %v812_v22  ;;  %v825_v41 = vand.u32 2147483648, %v812_v22  ;;  %vm819_vm3 = vweird.f32 %v812_v22 }
 0x275   : > { %2721 = vpow2.f32 %v2560_v23  ;;  %v1547_v25 = vadd.f32 1.0, %v2716_v24 }
 0x276   : > { %vm3252_vm5 = vcmp.eq.f32.partialorder %v823_v40, 8.507059e+37  ;;  %v826_v48 = vor.u32 1.1754944e-38, %v825_v41 }
 0x277   : > { %2723 = vrcp.f32 %v1547_v25  ;;  %v1560_v53 = vand.u32 2147483648, %v1547_v25  ;;  %vm1554_vm10 = vweird.f32 %v1547_v25  ;;  %v1558_v59 = vand.u32 2147483647, %v1547_v25 }
 0x279   : > { %v2718_v27 = vpop.eup %2717  ;;  %v1561_v8 = vor.u32 1.1754944e-38, %v1560_v53  ;;  %vm1559_vm15 = vcmp.eq.f32.partialorder %v1558_v59, 8.507059e+37 }
 0x27a   : > { %v2720_v28 = vpop.eup %2719  ;;  %v813_v29 = vadd.f32 1.0, %v2718_v27 }
 0x27b   : > { %v2722_v30 = vpop.eup %2721  ;;  %v815_v32 = vmul.f32 %v2720_v28, %v812_v22  ;;  %vm820_vm2 = vweird.f32 %v2720_v28 }
 0x27c   : > { %2725 = vrcp.f32 %v813_v29  ;;  %v1548_v35 = vadd.f32 1.0, %v2722_v30  ;;  %v840_v50 = vand.u32 2147483648, %v813_v29  ;;  %vm3256_vm6 = vmor %vm819_vm3, %vm820_vm2  ;;  %v838_v58 = vand.u32 2147483647, %v813_v29 }
 0x27d   : > { %v2724_v33 = vpop.eup %2723  ;;  %v816_v34 = vsub.f32 1.0, %v815_v32  ;;  %vm834_vm9 = vweird.f32 %v813_v29  ;;  %vm871_vm2 = vcmask 523264  }
 0x27e   : > { %v1550_v36 = vmul.f32 %v2724_v33, %v1547_v25  ;;  %2727 = vrcp.f32 %v1548_v35  ;;  %vm1555_vm7 = vweird.f32 %v2724_v33  ;;  %v841_v62 = vor.u32 1.1754944e-38, %v840_v50 }
 0x27f   : > { %v817_v37 = vmul.f32 %v2720_v28, %v816_v34  ;;  %vm3262_vm11 = vmor %vm1554_vm10, %vm1555_vm7  ;;  %v1573_v0 = vand.u32 2147483647, %v1548_v35  ;;  %v1575_v1 = vand.u32 2147483648, %v1548_v35  ;;  %vm839_vm14 = vcmp.eq.f32.partialorder %v838_v58, 8.507059e+37 }
 0x280   : > { %v1551_v39 = vsub.f32 1.0, %v1550_v36  ;;  %vm1569_vm0 = vweird.f32 %v1548_v35 }
 0x281   : > { %v818_v44 = vadd.f32 %v2720_v28, %v817_v37  ;;  %v1576_v20 = vor.u32 1.1754944e-38, %v1575_v1  ;;  %vm1574_vm3 = vcmp.eq.f32.partialorder %v1573_v0, 8.507059e+37 }
 0x282   : > { %v2726_v42 = vpop.eup %2725  ;;  %v1552_v43 = vmul.f32 %v2724_v33, %v1551_v39 }
 0x283   : > { %v830_v45 = vmul.f32 %v2726_v42, %v813_v29  ;;  %v822_v55 = vsel %vm3256_vm6, %v2720_v28, %v818_v44  ;;  %vm835_vm8 = vweird.f32 %v2726_v42 }
 0x284   : > { %v2728_v46 = vpop.eup %2727  ;;  %v1553_v52 = vadd.f32 %v2724_v33, %v1552_v43  ;;  %v827_v2 = vsel %vm3252_vm5, %v826_v48, %v822_v55  ;;  %vm836_vm12 = vmor %vm834_vm9, %vm835_vm8 }
 0x285   : > { %v831_v49 = vsub.f32 1.0, %v830_v45  ;;  %v1565_v54 = vmul.f32 %v2728_v46, %v1548_v35  ;;  %vm1570_vm13 = vweird.f32 %v2728_v46  ;;  %v3271_v13 = vmul.f32 %v827_v2, %v3226_v57 }
 0x286   : > { %v1557_v3 = vsel %vm3262_vm11, %v2724_v33, %v1553_v52  ;;  %vm1571_vm1 = vmor %vm1569_vm0, %vm1570_vm13  ;;  %vm1320_vm11 = vcmask 516096  }
 0x287   : > { %v832_v56 = vmul.f32 %v2726_v42, %v831_v49  ;;  %v1566_v60 = vsub.f32 1.0, %v1565_v54  ;;  %v1562_v18 = vsel %vm1559_vm15, %v1561_v8, %v1557_v3 }
 0x288   : > { %v3279_v23 = vmul.f32 %v1562_v18, %v3237_v6  ;;  %v2703_v6 = vld [vmem:[%s3105_s3] ss:$0 sm:$0xff] }
 0x289   : > { %v833_v61 = vadd.f32 %v2726_v42, %v832_v56  ;;  %v1567_v5 = vmul.f32 %v2728_v46, %v1566_v60 }
 0x28b   : > { %v837_v7 = vsel %vm836_vm12, %v2726_v42, %v833_v61  ;;  %v1568_v12 = vadd.f32 %v2728_v46, %v1567_v5 }
 0x28c   : > { %v842_v10 = vsel %vm839_vm14, %v841_v62, %v837_v7 }
 0x28d   : > { %v3274_v14 = vmul.f32 %v842_v10, %v3240_v11  ;;  %v1572_v15 = vsel %vm1571_vm1, %v2728_v46, %v1568_v12 }
 0x28e   : > { %v1577_v22 = vsel %vm1574_vm3, %v1576_v20, %v1572_v15 }
 0x28f   : > { %v846_v16 = vpack.c.bf16 %v3274_v14, %v3271_v13  ;;  %v3282_v57 = vmul.f32 %v1577_v22, %v3243_v21  ;;  %v3295_v21 = vadd.s32 72, %v3166_v4  ;;  %v3309_v4 = vld [vmem:[%s3105_s3 + $0x1] ss:$0 sm:$0xff]  ;;  %s2925_s3 = smov 64  }
 0x291   : > { %2545 = vmatmul.msk.bf16.vlgmr.msra.gmra.mxu1 %vm871_vm2, %v846_v16  ;;  %v1581_v11 = vpack.c.bf16 %v3282_v57, %v3279_v23 }
 0x293   : > { %2577 = vmatmul.msk.bf16.vlgmr.msra.gmra.mxu2 %vm871_vm2, %v1581_v11  ;;  %v3345_v11 = vld [vmem:[%s3110_s14] sm:$0xff] }
 0x30e   : > { %v3288_v24 = vpop.f32.mrf.mxu1 }
 0x30f   : > { %v1072_v25 = vperm.slane %v3288_v24, 4  ;;  %v1058_v27 = vperm.slane %v3288_v24, 2  ;;  %v1044_v28 = vperm.slane %v3288_v24, 0  ;;  %v1065_v33 = vperm.slane %v3288_v24, 3 }
 0x310   : > { %v1051_v34 = vperm.slane %v3288_v24, 1  ;;  %v1086_v39 = vperm.slane %v3288_v24, 6  ;;  %v1079_v41 = vperm.slane %v3288_v24, 5  ;;  %v1093_v46 = vperm.slane %v3288_v24, 7 }
 0x311   : > { %1077 = vperm.xlu0 %2678, %v1072_v25   ;;  %1063 = vperm.xlu2 %2677, %v1058_v27   ;;  %v3328_v61 = vadd.f32 %v2703_v6, %v3288_v24 }
 0x312   : > { %1049 = vperm.xlu1 %2676, %v1044_v28  }
 0x313   : > { %v900_v5 = vand.u32 2147483647, %v3328_v61  ;;  %vm896_vm10 = vcmp.ne.f32.partialorder %v3328_v61, %v3328_v61 }
 0x315   : > { %v902_v12 = vsub.f32 0.0, %v900_v5 }
 0x316   : > { %v3297_v29 = vpop.f32.mrf.mxu1  ;;  %v3299_v30 = vpop.f32.mrf.mxu2 }
 0x317   : > { %v3302_v32 = vadd.f32 %v2703_v6, %v3297_v29  ;;  %v1806_v52 = vperm.slane %v3299_v30, 4  ;;  %v1785_v0 = vperm.slane %v3299_v30, 1  ;;  %v904_v22 = vmul.f32 1.442695, %v902_v12 }
 0x319   : > { %v901_v35 = vand.u32 2147483647, %v3302_v32  ;;  %2681 = vset.pattern.permute.xlu0 %v3295_v21  ;;  %1070 = vperm.xlu2 %2677, %v1065_v33   ;;  %v895_v1 = vmax.f32 %v3302_v32, 0.0  ;;  %vm897_vm7 = vcmp.ne.f32.partialorder %v3302_v32, %v3302_v32 }
 0x31a   : > { %1056 = vperm.xlu1 %2676, %v1051_v34  }
 0x31b   : > { %v903_v36 = vsub.f32 0.0, %v901_v35 }
 0x31d   : > { %v906_v42 = vmul.f32 1.442695, %v903_v36 }
 0x31e   : > { %v3311_v37 = vpop.f32.mrf.mxu2 }
 0x31f   : > { %v3316_v40 = vadd.f32 %v3309_v4, %v3311_v37  ;;  %2729 = vpow2.f32 %v906_v42 }
 0x321   : > { %1220 = vperm.xlu0 %2681, %v1058_v27   ;;  %1091 = vperm.xlu2 %2677, %v1086_v39   ;;  %v1635_v43 = vand.u32 2147483647, %v3316_v40  ;;  %v1629_v20 = vmax.f32 %v3316_v40, 0.0  ;;  %vm1631_vm8 = vcmp.ne.f32.partialorder %v3316_v40, %v3316_v40  ;;  %v1778_v27 = vperm.slane %v3299_v30, 0 }
 0x322   : > { %1084 = vperm.xlu1 %2676, %v1079_v41  }
 0x323   : > { %v1637_v44 = vsub.f32 0.0, %v1635_v43 }
 0x325   : > { %v1640_v45 = vmul.f32 1.442695, %v1637_v44  ;;  %v2730_v47 = vpop.eup %2729 }
 0x326   : > { %v917_v48 = vadd.f32 1.0, %v2730_v47  ;;  %v920_v51 = vmul.f32 -0.5, %v2730_v47  ;;  %v923_v55 = vand.u32 2147483647, %v2730_v47 }
 0x327   : > { %2731 = vpow2.f32 %v1640_v45 }
 0x328   : > { %2733 = vlog2.f32 %v917_v48  ;;  %v921_v54 = vadd.f32 1.0, %v920_v51  ;;  %vm924_vm5 = vcmp.lt.f32.partialorder %v923_v55, 0.0004427343  ;;  %v1799_v48 = vperm.slane %v3299_v30, 3 }
 0x329   : > { %1250 = vperm.xlu0 %2681, %v1093_v46   ;;  %2680 = vset.pattern.permute.xlu2 %v3295_v21 }
 0x32a   : > { %1098 = vperm.xlu1 %2676, %v1093_v46   ;;  %v922_v59 = vmul.f32 %v2730_v47, %v921_v54 }
 0x32d   : > { %v2732_v49 = vpop.eup %2731 }
 0x32e   : > { %v1651_v50 = vadd.f32 1.0, %v2732_v49  ;;  %v2734_v53 = vpop.eup %2733  ;;  %v1654_v58 = vmul.f32 -0.5, %v2732_v49  ;;  %v1657_v2 = vand.u32 2147483647, %v2732_v49 }
 0x32f   : > { %v919_v56 = vmul.f32 0.6931472, %v2734_v53 }
 0x330   : > { %2735 = vlog2.f32 %v1651_v50  ;;  %v1655_v63 = vadd.f32 1.0, %v1654_v58  ;;  %vm1658_vm6 = vcmp.lt.f32.partialorder %v1657_v2, 0.0004427343  ;;  %v1820_v50 = vperm.slane %v3299_v30, 6 }
 0x331   : > { %2684 = vset.pattern.permute.xlu0 %v3247_v26  ;;  %1214 = vperm.xlu2 %2680, %v1051_v34   ;;  %v925_v62 = vsel %vm924_vm5, %v922_v59, %v919_v56  ;;  %2737 = vpow2.f32 %v904_v22  ;;  %v3363_v34 = vld [vmem:[%s3110_s14 + $0x8] sm:$0xff] }
 0x332   : > { %2679 = vset.pattern.permute.xlu1 %v3295_v21  ;;  %v927_v7 = vadd.f32 %v925_v62, %v895_v1  ;;  %v1656_v8 = vmul.f32 %v2732_v49, %v1655_v63 }
 0x334   : > { %v3338_v18 = vsel %vm897_vm7, %v3302_v32, %v927_v7 }
 0x335   : > { %v954_v16 = vperm.slane %v3338_v18, 0  ;;  %v941_v43 = vrot.slane %v3338_v18, 3  ;;  %v942_v44 = vrot.slane %v3338_v18, 4  ;;  %v943_v45 = vrot.slane %v3338_v18, 5 }
 0x336   : > { %v2736_v60 = vpop.eup %2735  ;;  %v944_v46 = vrot.slane %v3338_v18, 6 }
 0x337   : > { %v1653_v3 = vmul.f32 0.6931472, %v2736_v60  ;;  %v3350_v24 = vmul.f32 %v954_v16, %v3345_v11  ;;  %v957_v51 = vperm.slane %v941_v43, 0  ;;  %v958_v53 = vperm.slane %v942_v44, 0 }
 0x338   : > { %v959_v54 = vperm.slane %v943_v45, 0  ;;  %v960_v55 = vperm.slane %v944_v46, 0  ;;  %v945_v60 = vrot.slane %v3338_v18, 7 }
 0x339   : > { %1811 = vperm.xlu0 %2684, %v1806_v52   ;;  %1232 = vperm.xlu2 %2680, %v1072_v25   ;;  %v1659_v10 = vsel %vm1658_vm6, %v1656_v8, %v1653_v3  ;;  %v3382_v56 = vmul.f32 %v957_v51, %v3345_v11  ;;  %v3385_v58 = vmul.f32 %v958_v53, %v3345_v11 }
 0x33a   : > { %1208 = vperm.xlu1 %2679, %v1044_v28   ;;  %v1661_v15 = vadd.f32 %v1659_v10, %v1629_v20  ;;  %v1827_v28 = vperm.slane %v3299_v30, 7  ;;  %v3388_v59 = vmul.f32 %v959_v54, %v3345_v11  ;;  %v3392_v62 = vmul.f32 %v960_v55, %v3345_v11 }
 0x33b   : > { %v961_v1 = vperm.slane %v945_v60, 0  ;;  %v1813_v10 = vperm.slane %v3299_v30, 5  ;;  %v1792_v55 = vperm.slane %v3299_v30, 2  ;;  %v894_v60 = vmax.f32 %v3328_v61, 0.0 }
 0x33c   : > { %v3353_v25 = vsel %vm1631_vm8, %v3316_v40, %v1661_v15  ;;  %v2738_v40 = vpop.eup %2737 }
 0x33d   : > { %v1679_v6 = vrot.slane %v3353_v25, 7  ;;  %v908_v47 = vadd.f32 1.0, %v2738_v40  ;;  %v1678_v63 = vrot.slane %v3353_v25, 6  ;;  %v911_v3 = vmul.f32 -0.5, %v2738_v40 }
 0x33e   : > { %v1677_v5 = vrot.slane %v3353_v25, 5  ;;  %v3397_v7 = vmul.f32 %v961_v1, %v3345_v11  ;;  %v1676_v15 = vrot.slane %v3353_v25, 4  ;;  %v1688_v45 = vperm.slane %v3353_v25, 0 }
 0x33f   : > { %v1695_v32 = vperm.slane %v1679_v6, 0  ;;  %2739 = vlog2.f32 %v908_v47  ;;  %v1694_v2 = vperm.slane %v1678_v63, 0  ;;  %v912_v16 = vadd.f32 1.0, %v911_v3 }
 0x340   : > { %v1693_v12 = vperm.slane %v1677_v5, 0  ;;  %v1674_v6 = vrot.slane %v3353_v25, 2  ;;  %v3421_v51 = vmul.f32 %v3363_v34, %v1688_v45  ;;  %v3923_v1 = vperm.slane %v3297_v29, 7 }
 0x341   : > { %1790 = vperm.xlu0 %2684, %v1785_v0   ;;  %1244 = vperm.xlu2 %2680, %v1086_v39   ;;  %v3366_v35 = vmul.f32 %v3363_v34, %v1695_v32  ;;  %v940_v39 = vrot.slane %v3338_v18, 2  ;;  %v3400_v8 = vmul.f32 %v3363_v34, %v1694_v2  ;;  %v914_v32 = vand.u32 2147483647, %v2738_v40 }
 0x342   : > { %1226 = vperm.xlu1 %2679, %v1065_v33   ;;  %v939_v33 = vrot.slane %v3338_v18, 1  ;;  %v3405_v22 = vmul.f32 %v3363_v34, %v1693_v12  ;;  %v1690_v43 = vperm.slane %v1674_v6, 0  ;;  %v913_v47 = vmul.f32 %v2738_v40, %v912_v16 }
 0x343   : > { %v956_v42 = vperm.slane %v940_v39, 0  ;;  %v1673_v39 = vrot.slane %v3353_v25, 1  ;;  %vm915_vm9 = vcmp.lt.f32.partialorder %v914_v32, 0.0004427343  ;;  %v3450_v16 = vadd.f32 %v3309_v4, %v3299_v30 }
 0x344   : > { %v955_v36 = vperm.slane %v939_v33, 0  ;;  %v1692_v33 = vperm.slane %v1676_v15, 0 }
 0x345   : > { %v3378_v49 = vmul.f32 %v956_v42, %v3345_v11  ;;  %v2740_v20 = vpop.eup %2739  ;;  %v1689_v46 = vperm.slane %v1673_v39, 0  ;;  %v1634_v39 = vand.u32 2147483647, %v3450_v16  ;;  %vm1630_vm13 = vcmp.ne.f32.partialorder %v3450_v16, %v3450_v16 }
 0x346   : > { %v910_v42 = vmul.f32 0.6931472, %v2740_v20  ;;  %v3411_v44 = vmul.f32 %v3363_v34, %v1692_v33 }
 0x347   : > { %v3424_v53 = vmul.f32 %v3363_v34, %v1689_v46 }
 0x348   : > { %v916_v54 = vsel %vm915_vm9, %v913_v47, %v910_v42  ;;  %v1636_v47 = vsub.f32 0.0, %v1634_v39 }
 0x349   : > { %2685 = vset.pattern.permute.xlu0 %v3295_v21  ;;  %2682 = vset.pattern.permute.xlu2 %v3247_v26  ;;  %v926_v40 = vadd.f32 %v916_v54, %v894_v60 }
 0x34a   : > { %1238 = vperm.xlu1 %2679, %v1079_v41   ;;  %v3370_v41 = vmul.f32 %v955_v36, %v3345_v11  ;;  %v1675_v36 = vrot.slane %v3353_v25, 3 }
 0x34b   : > { %v3433_v63 = vsel %vm896_vm10, %v3328_v61, %v926_v40 }
 0x34c   : > { %v946_v2 = vperm.slane %v3433_v63, 0  ;;  %v932_v12 = vrot.slane %v3433_v63, 1  ;;  %v933_v15 = vrot.slane %v3433_v63, 2  ;;  %v936_v60 = vrot.slane %v3433_v63, 5 }
 0x34e   : > { %v978_v5 = vmul.f32 %v946_v2, %v3345_v11  ;;  %v947_v20 = vperm.slane %v932_v12, 0  ;;  %v948_v33 = vperm.slane %v933_v15, 0  ;;  %v3925_v12 = vperm.slane %v3297_v29, 0 }
 0x350   : > { %v994_v61 = vmul.f32 1.442695, %v978_v5  ;;  %v979_v32 = vmul.f32 %v947_v20, %v3345_v11  ;;  %v1638_v20 = vmul.f32 1.442695, %v1636_v47 }
 0x351   : > { %1942 = vperm.xlu0 %2685, %v1778_v27   ;;  %1832 = vperm.xlu2 %2682, %v1827_v28  }
 0x352   : > { %2683 = vset.pattern.permute.xlu1 %v3247_v26  ;;  %2741 = vpow2.f32 %v994_v61  ;;  %v996_v4 = vmul.f32 1.442695, %v979_v32 }
 0x354   : > { %2743 = vpow2.f32 %v996_v4  ;;  %v937_v4 = vrot.slane %v3433_v63, 6 }
 0x358   : > { %v2742_v46 = vpop.eup %2741 }
 0x359   : > { %1960 = vperm.xlu0 %2685, %v1799_v48   ;;  %1804 = vperm.xlu2 %2682, %v1799_v48   ;;  %v3415_v48 = vmul.f32 %v3363_v34, %v1690_v43  ;;  %v980_v43 = vmul.f32 %v948_v33, %v3345_v11 }
 0x35a   : > { %1825 = vperm.xlu1 %2683, %v1820_v50  }
 0x35b   : > { %v998_v2 = vmul.f32 1.442695, %v980_v43 }
 0x35d   : > { %2745 = vpow2.f32 %v998_v2 }
 0x35e   : > { %2747 = vpow2.f32 %v1638_v20 }
 0x361   : > { %1978 = vperm.xlu0 %2685, %v1820_v50   ;;  %1783 = vperm.xlu2 %2682, %v1778_v27   ;;  %v1691_v27 = vperm.slane %v1675_v36, 0  ;;  %v3458_v36 = vmul.f32 %v3433_v63, %v3271_v13 }
 0x362   : > { %1818 = vperm.xlu1 %2683, %v1813_v10  }
 0x363   : > { %v3418_v50 = vmul.f32 %v3363_v34, %v1691_v27  ;;  %v935_v27 = vrot.slane %v3433_v63, 4  ;;  %v1156_v45 = vperm.slane %v3458_v36, 0  ;;  %v1030_v61 = vrot.slane %v3458_v36, 1 }
 0x365   : > { %v950_v5 = vperm.slane %v935_v27, 0  ;;  %v1157_v27 = vperm.slane %v1030_v61, 0  ;;  %v3924_v61 = vperm.slane %v3311_v37, 7 }
 0x367   : > { %v982_v39 = vmul.f32 %v950_v5, %v3345_v11  ;;  %v1032_v5 = vrot.slane %v3458_v36, 3 }
 0x369   : > { %2690 = vset.pattern.permute.xlu0 %v3247_v26  ;;  %2687 = vset.pattern.permute.xlu2 %v3295_v21 }
 0x36a   : > { %1797 = vperm.xlu1 %2683, %v1792_v55  }
 0x36b   : > { %v3440_v3 = vpop.permute.xlu2 %1063 }
 0x371   : > { %1954 = vperm.xlu2 %2687, %v1792_v55   ;;  %1154 = vperm.xlu0 %2690, %v3923_v1  }
 0x372   : > { %2686 = vset.pattern.permute.xlu1 %v3295_v21 }
 0x373   : > { %v3452_v6 = vpop.permute.xlu2 %1070 }
 0x379   : > { %1972 = vperm.xlu2 %2687, %v1813_v10   ;;  %2693 = vset.pattern.permute.xlu0 %v3295_v21  ;;  %v934_v10 = vrot.slane %v3433_v63, 3 }
 0x37a   : > { %1948 = vperm.xlu1 %2686, %v1785_v0   ;;  %v3927_v0 = vperm.slane %v3297_v29, 3 }
 0x37b   : > { %v949_v42 = vperm.slane %v934_v10, 0  ;;  %v3474_v15 = vpop.permute.xlu2 %1091  ;;  %v951_v10 = vperm.slane %v936_v60, 0  ;;  %v952_v60 = vperm.slane %v937_v4, 0 }
 0x37d   : > { %v981_v40 = vmul.f32 %v949_v42, %v3345_v11  ;;  %v1031_v42 = vrot.slane %v3458_v36, 2  ;;  %v983_v30 = vmul.f32 %v951_v10, %v3345_v11 }
 0x37f   : > { %v1000_v33 = vmul.f32 1.442695, %v981_v40  ;;  %v938_v40 = vrot.slane %v3433_v63, 7  ;;  %v1158_v2 = vperm.slane %v1031_v42, 0  ;;  %v1004_v63 = vmul.f32 1.442695, %v983_v30 }
 0x380   : > { %v1159_v42 = vperm.slane %v1032_v5, 0 }
 0x381   : > { %2688 = vset.pattern.permute.xlu2 %v3247_v26  ;;  %1274 = vperm.xlu0 %2693, %v3927_v0   ;;  %2749 = vpow2.f32 %v1000_v33  ;;  %v953_v4 = vperm.slane %v938_v40, 0 }
 0x382   : > { %1966 = vperm.xlu1 %2686, %v1806_v52   ;;  %v1300_v52 = vmul.f32 0.0, %v2742_v46  ;;  %v1191_v30 = vmul.f32 %v1159_v42, %v3452_v6  ;;  %v1107_v6 = vperm.slane %v3297_v29, 1 }
 0x383   : > { %v1078_v43 = vpop.permute.xlu0 %1077 }
 0x384   : > { %v1050_v54 = vpop.permute.xlu1 %1049 }
 0x385   : > { %v1188_v55 = vmul.f32 %v1156_v45, %v1050_v54  ;;  %v2744_v45 = vpop.eup %2743 }
 0x386   : > { %v2746_v20 = vpop.eup %2745 }
 0x387   : > { %v3476_v32 = vadd.f32 %v1300_v52, %v1188_v55  ;;  %v3926_v55 = vperm.slane %v3297_v29, 2  ;;  %v3497_v33 = vpop.eup %2747 }
 0x389   : > { %2694 = vset.pattern.permute.xlu0 %v3247_v26  ;;  %1105 = vperm.xlu2 %2688, %v3925_v12   ;;  %v1323_v54 = vmul.f32 %v2744_v45, %v3476_v32  ;;  %v985_v12 = vmul.f32 %v953_v4, %v3345_v11 }
 0x38a   : > { %1984 = vperm.xlu1 %2686, %v1827_v28   ;;  %v1002_v28 = vmul.f32 1.442695, %v982_v39  ;;  %v984_v39 = vmul.f32 %v952_v60, %v3345_v11  ;;  %v3958_v11 = vperm.slane %v3297_v29, 4 }
 0x38b   : > { %v1215_v1 = vpop.permute.xlu2 %1214 }
 0x38c   : > { %v1057_v46 = vpop.permute.xlu1 %1056  ;;  %2751 = vpow2.f32 %v1002_v28  ;;  %v1006_v5 = vmul.f32 1.442695, %v984_v39  ;;  %v3957_v39 = vperm.slane %v3311_v37, 3 }
 0x38d   : > { %v1189_v47 = vmul.f32 %v1157_v27, %v1057_v46  ;;  %v1190_v27 = vmul.f32 %v1158_v2, %v3440_v3  ;;  %v1033_v3 = vrot.slane %v3458_v36, 4  ;;  %2753 = vpow2.f32 %v1004_v63 }
 0x38f   : > { %v1325_v52 = vadd.f32 %v1323_v54, %v1189_v47  ;;  %v2750_v54 = vpop.eup %2749 }
 0x391   : > { %v1327_v45 = vmul.f32 %v1325_v52, %v1215_v1  ;;  %1888 = vperm.xlu0 %2694, %v3924_v61   ;;  %1119 = vperm.xlu2 %2688, %v3926_v55   ;;  %v1345_v10 = vmul.f32 %v2746_v20, %v1325_v52  ;;  %v1642_v61 = vadd.f32 1.0, %v3497_v33  ;;  %v1034_v55 = vrot.slane %v3458_v36, 5 }
 0x392   : > { %2689 = vset.pattern.permute.xlu1 %v3247_v26  ;;  %v2752_v0 = vpop.eup %2751 }
 0x393   : > { %v1329_v1 = vsel %vm871_vm2, %v1327_v45, 0.0  ;;  %v1221_v46 = vpop.permute.xlu0 %1220  ;;  %v1347_v47 = vadd.f32 %v1345_v10, %v1190_v27  ;;  %v1160_v45 = vperm.slane %v1033_v3, 0  ;;  %2755 = vlog2.f32 %v1642_v61 }
 0x394   : > { %v1330_v2 = vrot.slane %v1329_v1, 4  ;;  %v1085_v31 = vpop.permute.xlu1 %1084  ;;  %2757 = vpow2.f32 %v1006_v5 }
 0x395   : > { %v1349_v28 = vmul.f32 %v1347_v47, %v1221_v46  ;;  %v1367_v60 = vmul.f32 %v2750_v54, %v1347_v47  ;;  %v1192_v42 = vmul.f32 %v1160_v45, %v1078_v43  ;;  %v1008_v46 = vmul.f32 1.442695, %v985_v12  ;;  %v2754_v54 = vpop.eup %2753 }
 0x396   : > { %v1331_v40 = vadd.f32 %v1330_v2, %v1329_v1  ;;  %v1233_v1 = vpop.permute.xlu2 %1232  ;;  %v1035_v47 = vrot.slane %v3458_v36, 6  ;;  %v1161_v43 = vperm.slane %v1034_v55, 0  ;;  %v3930_v12 = vperm.slane %v3311_v37, 0 }
 0x397   : > { %v1351_v27 = vsel %vm871_vm2, %v1349_v28, 0.0  ;;  %v3509_v10 = vadd.f32 %v1367_v60, %v1191_v30  ;;  %v1142_v28 = vperm.slane %v3297_v29, 6  ;;  %2759 = vpow2.f32 %v1008_v46 }
 0x398   : > { %v1332_v20 = vrot.slane %v1331_v40, 2  ;;  %v1352_v52 = vrot.slane %v1351_v27, 4 }
 0x399   : > { %v1389_v63 = vmul.f32 %v2752_v0, %v3509_v10  ;;  %1860 = vperm.xlu0 %2694, %v3957_v39   ;;  %1133 = vperm.xlu2 %2688, %v3958_v11   ;;  %v1645_v0 = vmul.f32 -0.5, %v3497_v33  ;;  %v2756_v5 = vpop.eup %2755 }
 0x39a   : > { %v1333_v4 = vadd.f32 %v1332_v20, %v1331_v40  ;;  %v1353_v3 = vadd.f32 %v1352_v52, %v1351_v27  ;;  %1112 = vperm.xlu1 %2689, %v1107_v6   ;;  %v1193_v52 = vmul.f32 %v1161_v43, %v1085_v31  ;;  %v1162_v27 = vperm.slane %v1035_v47, 0  ;;  %v2758_v39 = vpop.eup %2757 }
 0x39b   : > { %v1391_v61 = vadd.f32 %v1389_v63, %v1192_v42  ;;  %v1036_v63 = vrot.slane %v3458_v36, 7  ;;  %v1646_v11 = vadd.f32 1.0, %v1645_v0  ;;  %v1644_v47 = vmul.f32 0.6931472, %v2756_v5 }
 0x39c   : > { %v1334_v2 = vrot.slane %v1333_v4, 1  ;;  %v1354_v30 = vrot.slane %v1353_v3, 2  ;;  %v1099_v43 = vpop.permute.xlu1 %1098 }
 0x39d   : > { %v1393_v20 = vmul.f32 %v1391_v61, %v1233_v1  ;;  %v1411_v60 = vmul.f32 %v2754_v54, %v1391_v61  ;;  %v3959_v54 = vperm.slane %v3297_v29, 3 }
 0x39e   : > { %v1335_v40 = vadd.f32 %v1334_v2, %v1333_v4  ;;  %v1355_v45 = vadd.f32 %v1354_v30, %v1353_v3  ;;  %v1648_v4 = vand.u32 2147483647, %v3497_v33  ;;  %v1194_v3 = vmul.f32 %v1162_v27, %v3474_v15  ;;  %v2760_v30 = vpop.eup %2759 }
 0x39f   : > { %v1395_v55 = vsel %vm871_vm2, %v1393_v20, 0.0  ;;  %v3525_v42 = vadd.f32 %v1411_v60, %v1193_v52  ;;  %v1163_v2 = vperm.slane %v1036_v63, 0  ;;  %v1647_v15 = vmul.f32 %v3497_v33, %v1646_v11  ;;  %v1245_v52 = vpop.permute.xlu2 %1244  ;;  %v1251_v63 = vpop.permute.xlu0 %1250 }
 0x3a0   : > { %1343 = vst.msk [vmem:[#allocation4 + $0x1] sm:$0x1] %vm1320_vm11, %v1335_v40  ;;  %v1356_v1 = vrot.slane %v1355_v45, 1  ;;  %v1396_v31 = vrot.slane %v1395_v55, 4  ;;  %vm1649_vm12 = vcmp.lt.f32.partialorder %v1648_v4, 0.0004427343 }
 0x3a1   : > { %v1433_v46 = vmul.f32 %v2758_v39, %v3525_v42  ;;  %1839 = vperm.xlu0 %2694, %v3930_v12   ;;  %1147 = vperm.xlu2 %2688, %v1142_v28   ;;  %v1195_v40 = vmul.f32 %v1163_v2, %v1099_v43  ;;  %v1650_v5 = vsel %vm1649_vm12, %v1647_v15, %v1644_v47  ;;  %v1135_v33 = vperm.slane %v3297_v29, 5 }
 0x3a2   : > { %v1357_v36 = vadd.f32 %v1356_v1, %v1355_v45  ;;  %v1397_v61 = vadd.f32 %v1396_v31, %v1395_v55  ;;  %1126 = vperm.xlu1 %2689, %v3959_v54   ;;  %v1628_v55 = vmax.f32 %v3450_v16, 0.0 }
 0x3a3   : > { %v1435_v0 = vadd.f32 %v1433_v46, %v1194_v3 }
 0x3a4   : > { %1365 = vst.msk [vmem:[#allocation4 + $0x2] sm:$0x1] %vm1320_vm11, %v1357_v36  ;;  %v1398_v20 = vrot.slane %v1397_v61, 2  ;;  %v1660_v11 = vadd.f32 %v1650_v5, %v1628_v55 }
 0x3a5   : > { %v1437_v60 = vmul.f32 %v1435_v0, %v1245_v52  ;;  %v1455_v27 = vmul.f32 %v2760_v30, %v1435_v0  ;;  %v3932_v52 = vperm.slane %v3311_v37, 1 }
 0x3a6   : > { %v1399_v45 = vadd.f32 %v1398_v20, %v1397_v61  ;;  %v3550_v0 = vsel %vm1630_vm13, %v3450_v16, %v1660_v11  ;;  %v3960_v16 = vperm.slane %v3297_v29, 2 }
 0x3a7   : > { %v1439_v39 = vsel %vm871_vm2, %v1437_v60, 0.0  ;;  %v1457_v1 = vadd.f32 %v1455_v27, %v1195_v40  ;;  %v1672_v27 = vrot.slane %v3550_v0, 7 }
 0x3a8   : > { %v1400_v31 = vrot.slane %v1399_v45, 1  ;;  %v1440_v3 = vrot.slane %v1439_v39, 4 }
 0x3a9   : > { %v1459_v46 = vmul.f32 %v1457_v1, %v1251_v63  ;;  %2698 = vset.pattern.permute.xlu0 %v3295_v21  ;;  %2692 = vset.pattern.permute.xlu2 %v3295_v21  ;;  %v1687_v63 = vperm.slane %v1672_v27, 0 }
 0x3aa   : > { %v1401_v4 = vadd.f32 %v1400_v31, %v1399_v45  ;;  %v1441_v36 = vadd.f32 %v1440_v3, %v1439_v39  ;;  %1140 = vperm.xlu1 %2689, %v1135_v33  }
 0x3ab   : > { %v1461_v47 = vsel %vm871_vm2, %v1459_v46, 0.0  ;;  %v3556_v45 = vpop.permute.xlu0 %1811  ;;  %v1833_v39 = vpop.permute.xlu2 %1832 }
 0x3ac   : > { %1409 = vst.msk [vmem:[#allocation4 + $0x4] sm:$0x1] %vm1320_vm11, %v1401_v4  ;;  %v1442_v61 = vrot.slane %v1441_v36, 2  ;;  %v1462_v43 = vrot.slane %v1461_v47, 4  ;;  %v1209_v54 = vpop.permute.xlu1 %1208 }
 0x3ad   : > { %v1304_v2 = vmul.f32 %v3476_v32, %v1209_v54 }
 0x3ae   : > { %v1443_v30 = vadd.f32 %v1442_v61, %v1441_v36  ;;  %v1463_v15 = vadd.f32 %v1462_v43, %v1461_v47  ;;  %v3933_v61 = vperm.slane %v3311_v37, 4  ;;  %v1719_v43 = vmul.f32 %v3363_v34, %v1687_v63 }
 0x3af   : > { %v1306_v20 = vsel %vm871_vm2, %v1304_v2, 0.0 }
 0x3b0   : > { %v1444_v60 = vrot.slane %v1443_v30, 1  ;;  %v1464_v40 = vrot.slane %v1463_v15, 2  ;;  %v1307_v5 = vrot.slane %v1306_v20, 4 }
 0x3b1   : > { %1996 = vperm.xlu0 %2698, %v3932_v52   ;;  %1268 = vperm.xlu2 %2692, %v3960_v16  }
 0x3b2   : > { %v1445_v32 = vadd.f32 %v1444_v60, %v1443_v30  ;;  %v1465_v55 = vadd.f32 %v1464_v40, %v1463_v15  ;;  %v1308_v1 = vadd.f32 %v1307_v5, %v1306_v20  ;;  %2691 = vset.pattern.permute.xlu1 %v3295_v21  ;;  %v1671_v30 = vrot.slane %v3550_v0, 6 }
 0x3b3   : > { %v3961_v20 = vperm.slane %v3297_v29, 0  ;;  %v3574_v60 = vpop.permute.xlu0 %1790  ;;  %v1742_v40 = vmul.f32 1.442695, %v1719_v43  ;;  %v3577_v27 = vpop.permute.xlu2 %1804 }
 0x3b4   : > { %1453 = vst.msk [vmem:[#allocation4 + $0x6] sm:$0x1] %vm1320_vm11, %v1445_v32  ;;  %v1466_v31 = vrot.slane %v1465_v55, 1  ;;  %v1309_v3 = vrot.slane %v1308_v1, 2  ;;  %v1227_v11 = vpop.permute.xlu1 %1226  ;;  %v1686_v32 = vperm.slane %v1671_v30, 0 }
 0x3b5   : > { %v1371_v46 = vmul.f32 %v3509_v10, %v1227_v11  ;;  %2761 = vpow2.f32 %v1742_v40 }
 0x3b6   : > { %v1467_v4 = vadd.f32 %v1466_v31, %v1465_v55  ;;  %v1310_v36 = vadd.f32 %v1309_v3, %v1308_v1  ;;  %v3581_v55 = vmul.f32 %v3550_v0, %v3279_v23  ;;  %v1670_v31 = vrot.slane %v3550_v0, 5 }
 0x3b7   : > { %v1373_v47 = vsel %vm871_vm2, %v1371_v46, 0.0  ;;  %v1718_v46 = vmul.f32 %v3363_v34, %v1686_v32 }
 0x3b8   : > { %1475 = vst.msk [vmem:[#allocation4 + $0x7] sm:$0x1] %vm1320_vm11, %v1467_v4  ;;  %v1311_v54 = vrot.slane %v1310_v36, 1  ;;  %v1374_v2 = vrot.slane %v1373_v47, 4  ;;  %v1770_v4 = vrot.slane %v3581_v55, 7 }
 0x3b9   : > { %2014 = vperm.xlu0 %2698, %v3933_v61   ;;  %1286 = vperm.xlu2 %2692, %v1135_v33  }
 0x3ba   : > { %v1312_v15 = vadd.f32 %v1311_v54, %v1310_v36  ;;  %v1375_v10 = vadd.f32 %v1374_v2, %v1373_v47  ;;  %1256 = vperm.xlu1 %2691, %v3961_v20   ;;  %v3962_v36 = vperm.slane %v3311_v37, 7  ;;  %v3963_v47 = vperm.slane %v3297_v29, 7 }
 0x3bb   : > { %v1669_v54 = vrot.slane %v3550_v0, 4  ;;  %v1685_v2 = vperm.slane %v1670_v31, 0  ;;  %v1897_v20 = vperm.slane %v1770_v4, 0  ;;  %v2762_v40 = vpop.eup %2761  ;;  %v3964_v4 = vperm.slane %v3297_v29, 4 }
 0x3bc   : > { %1321 = vst.msk [vmem:[#allocation4] sm:$0x1] %vm1320_vm11, %v1312_v15  ;;  %v1376_v5 = vrot.slane %v1375_v10, 2  ;;  %v1239_v16 = vpop.permute.xlu1 %1238  ;;  %v1869_v29 = vperm.slane %v3311_v37, 5 }
 0x3bd   : > { %v1415_v33 = vmul.f32 %v3525_v42, %v1239_v16  ;;  %v1684_v32 = vperm.slane %v1669_v54, 0 }
 0x3be   : > { %v1377_v1 = vadd.f32 %v1376_v5, %v1375_v10  ;;  %v1740_v10 = vmul.f32 1.442695, %v1718_v46  ;;  %v3598_v5 = vpop.permute.xlu2 %1783 }
 0x3bf   : > { %v1417_v63 = vsel %vm871_vm2, %v1415_v33, 0.0  ;;  %v1717_v33 = vmul.f32 %v3363_v34, %v1685_v2 }
 0x3c0   : > { %v1378_v3 = vrot.slane %v1377_v1, 1  ;;  %v1418_v11 = vrot.slane %v1417_v63, 4  ;;  %2763 = vpow2.f32 %v1740_v10 }
 0x3c1   : > { %2032 = vperm.xlu0 %2698, %v3962_v36   ;;  %1298 = vperm.xlu2 %2692, %v3963_v47   ;;  %v1716_v36 = vmul.f32 %v3363_v34, %v1684_v32  ;;  %v1738_v47 = vmul.f32 1.442695, %v1717_v33  ;;  %v1666_v32 = vrot.slane %v3550_v0, 1  ;;  %v3931_v33 = vperm.slane %v3311_v37, 6 }
 0x3c2   : > { %v1379_v43 = vadd.f32 %v1378_v3, %v1377_v1  ;;  %v1419_v42 = vadd.f32 %v1418_v11, %v1417_v63  ;;  %1262 = vperm.xlu1 %2691, %v1107_v6   ;;  %v1668_v1 = vrot.slane %v3550_v0, 3  ;;  %v1929_v6 = vmul.f32 %v1897_v20, %v1833_v39 }
 0x3c3   : > { %v3595_v30 = vpop.permute.xlu0 %1942  ;;  %v1769_v63 = vrot.slane %v3581_v55, 6  ;;  %v2034_v3 = vmul.f32 0.0, %v2762_v40  ;;  %v1667_v11 = vrot.slane %v3550_v0, 2  ;;  %2765 = vpow2.f32 %v1738_v47 }
 0x3c4   : > { %1387 = vst.msk [vmem:[#allocation4 + $0x3] sm:$0x1] %vm1320_vm11, %v1379_v43  ;;  %v1420_v15 = vrot.slane %v1419_v42, 2  ;;  %v1683_v43 = vperm.slane %v1668_v1, 0 }
 0x3c5   : > { %v1896_v54 = vperm.slane %v1769_v63, 0  ;;  %v1682_v10 = vperm.slane %v1667_v11, 0  ;;  %v2525_v63 = vmul.f32 -1.442695, %v3177_v9 }
 0x3c6   : > { %v1421_v16 = vadd.f32 %v1420_v15, %v1419_v42  ;;  %v3608_v42 = vadd.f32 %v2034_v3, %v1929_v6  ;;  %v2764_v20 = vpop.eup %2763  ;;  %v1768_v6 = vrot.slane %v3581_v55, 5 }
 0x3c7   : > { %v1714_v11 = vmul.f32 %v3363_v34, %v1682_v10 }
 0x3c8   : > { %v1422_v31 = vrot.slane %v1421_v16, 1  ;;  %v2057_v1 = vmul.f32 %v2764_v20, %v3608_v42 }
 0x3c9   : > { %2695 = vset.pattern.permute.xlu2 %v3247_v26 }
 0x3ca   : > { %v1423_v46 = vadd.f32 %v1422_v31, %v1421_v16  ;;  %1280 = vperm.xlu1 %2691, %v3964_v4   ;;  %v1736_v16 = vmul.f32 1.442695, %v1716_v36  ;;  %v1715_v31 = vmul.f32 %v3363_v34, %v1683_v43  ;;  %v1681_v4 = vperm.slane %v1666_v32, 0 }
 0x3cb   : > { %v3610_v39 = vpop.permute.xlu0 %1960  ;;  %v3613_v40 = vpop.permute.xlu2 %1954  ;;  %v1767_v36 = vrot.slane %v3581_v55, 4  ;;  %v1895_v43 = vperm.slane %v1768_v6, 0 }
 0x3cc   : > { %1431 = vst.msk [vmem:[#allocation4 + $0x5] sm:$0x1] %vm1320_vm11, %v1423_v46  ;;  %v1826_v2 = vpop.permute.xlu1 %1825  ;;  %2767 = vpow2.f32 %v1736_v16  ;;  %v1734_v46 = vmul.f32 1.442695, %v1715_v31  ;;  %v1680_v31 = vperm.slane %v3550_v0, 0  ;;  %v1713_v32 = vmul.f32 %v3363_v34, %v1681_v4 }
 0x3cd   : > { %v1928_v15 = vmul.f32 %v1896_v54, %v1826_v2  ;;  %v2766_v54 = vpop.eup %2765  ;;  %v1766_v2 = vrot.slane %v3581_v55, 3  ;;  %2769 = vpow2.f32 %v2525_v63  ;;  %v1894_v6 = vperm.slane %v1767_v36, 0 }
 0x3ce   : > { %2771 = vpow2.f32 %v1734_v46  ;;  %v1765_v46 = vrot.slane %v3581_v55, 2  ;;  %v1730_v4 = vmul.f32 1.442695, %v1713_v32 }
 0x3cf   : > { %v2059_v3 = vadd.f32 %v2057_v1, %v1928_v15  ;;  %v2526_v15 = vmul.f32 -1.442695, %v3210_v38  ;;  %v1893_v61 = vperm.slane %v1766_v2, 0 }
 0x3d1   : > { %1881 = vperm.xlu2 %2695, %v3931_v33   ;;  %v2079_v1 = vmul.f32 %v2766_v54, %v2059_v3  ;;  %2773 = vpow2.f32 %v2526_v15  ;;  %v1848_v15 = vperm.slane %v3311_v37, 2 }
 0x3d2   : > { %1292 = vperm.xlu1 %2691, %v1142_v28   ;;  %v1732_v28 = vmul.f32 1.442695, %v1714_v11  ;;  %v2768_v63 = vpop.eup %2767 }
 0x3d3   : > { %v1979_v47 = vpop.permute.xlu0 %1978  ;;  %v1973_v19 = vpop.permute.xlu2 %1972 }
 0x3d4   : > { %v2061_v20 = vmul.f32 %v2059_v3, %v1979_v47  ;;  %v1819_v12 = vpop.permute.xlu1 %1818  ;;  %v1010_v47 = vmul.f32 1.442695, %v3350_v24  ;;  %v2770_v0 = vpop.eup %2769  ;;  %2775 = vpow2.f32 %v1732_v28  ;;  %v1712_v24 = vmul.f32 %v3363_v34, %v1680_v31 }
 0x3d5   : > { %v1927_v10 = vmul.f32 %v1895_v43, %v1819_v12  ;;  %v1926_v12 = vmul.f32 %v1894_v6, %v3556_v45  ;;  %v1012_v45 = vmul.f32 1.442695, %v3370_v41  ;;  %v3649_v28 = vmul.f32 %v3338_v18, %v3274_v14 }
 0x3d6   : > { %v2063_v16 = vsel %vm871_vm2, %v2061_v20, 0.0  ;;  %2777 = vpow2.f32 %v1010_v47  ;;  %v1764_v31 = vrot.slane %v3581_v55, 1  ;;  %v1892_v41 = vperm.slane %v1765_v46, 0 }
 0x3d7   : > { %v2064_v33 = vrot.slane %v2063_v16, 4  ;;  %v2081_v52 = vadd.f32 %v2079_v1, %v1927_v10  ;;  %2779 = vpow2.f32 %v1730_v4  ;;  %v3658_v46 = vadd.f32 1.0, %v2770_v0 }
 0x3d8   : > { %2781 = vpow2.f32 %v1012_v45  ;;  %v1891_v4 = vperm.slane %v1764_v31, 0 }
 0x3d9   : > { %v2065_v3 = vadd.f32 %v2064_v33, %v2063_v16  ;;  %v2083_v11 = vmul.f32 %v2081_v52, %v1973_v19  ;;  %v2101_v43 = vmul.f32 %v2768_v63, %v2081_v52  ;;  %1874 = vperm.xlu2 %2695, %v1869_v29   ;;  %v2772_v19 = vpop.eup %2771  ;;  %v1925_v33 = vmul.f32 %v1893_v61, %v3577_v27 }
 0x3da   : > { %2696 = vset.pattern.permute.xlu1 %v3247_v26  ;;  %v2774_v1 = vpop.eup %2773  ;;  %v1728_v16 = vmul.f32 1.442695, %v1712_v24  ;;  %v1164_v24 = vperm.slane %v3649_v28, 0  ;;  %vm726_vm1 = vweird.f32 %v3658_v46 }
 0x3db   : > { %v2066_v36 = vrot.slane %v2065_v3, 2  ;;  %v2085_v54 = vsel %vm871_vm2, %v2083_v11, 0.0  ;;  %v3641_v2 = vadd.f32 %v2101_v43, %v1926_v12  ;;  %v2776_v61 = vpop.eup %2775  ;;  %v3965_v43 = vperm.slane %v3311_v37, 4 }
 0x3dc   : > { %v2086_v52 = vrot.slane %v2085_v54, 4  ;;  %v1798_v10 = vpop.permute.xlu1 %1797  ;;  %v2778_v47 = vpop.eup %2777  ;;  %2783 = vpow2.f32 %v1728_v16 }
 0x3dd   : > { %v2067_v20 = vadd.f32 %v2066_v36, %v2065_v3  ;;  %v2123_v26 = vmul.f32 %v2772_v19, %v3641_v2  ;;  %v1924_v11 = vmul.f32 %v1892_v41, %v1798_v10  ;;  %v3662_v19 = vadd.f32 1.0, %v2774_v1 }
 0x3de   : > { %v2087_v34 = vadd.f32 %v2086_v52, %v2085_v54  ;;  %v2780_v52 = vpop.eup %2779  ;;  %2785 = vrcp.f32 %v3658_v46 }
 0x3df   : > { %v2068_v32 = vrot.slane %v2067_v20, 1  ;;  %v2125_v6 = vadd.f32 %v2123_v26, %v1925_v33  ;;  %v1301_v26 = vmul.f32 0.0, %v2778_v47  ;;  %v2782_v16 = vpop.eup %2781  ;;  %2787 = vrcp.f32 %v3662_v19 }
 0x3e0   : > { %v2088_v27 = vrot.slane %v2087_v34, 2  ;;  %vm741_vm0 = vweird.f32 %v3662_v19 }
 0x3e1   : > { %v2069_v63 = vadd.f32 %v2068_v32, %v2067_v20  ;;  %v2127_v12 = vmul.f32 %v2125_v6, %v3610_v39  ;;  %v2145_v3 = vmul.f32 %v2776_v61, %v2125_v6  ;;  %1853 = vperm.xlu2 %2695, %v1848_v15   ;;  %v1890_v6 = vperm.slane %v3581_v55, 0 }
 0x3e2   : > { %v2089_v18 = vadd.f32 %v2088_v27, %v2087_v34  ;;  %1867 = vperm.xlu1 %2696, %v3965_v43   ;;  %v1923_v34 = vmul.f32 %v1891_v4, %v3574_v60  ;;  %v2784_v27 = vpop.eup %2783 }
 0x3e3   : > { %2077 = vst.msk [vmem:[#allocation4 + $0x16] sm:$0x1] %vm1320_vm11, %v2069_v63  ;;  %v2129_v36 = vsel %vm871_vm2, %v2127_v12, 0.0  ;;  %v2147_v39 = vadd.f32 %v2145_v3, %v1924_v11  ;;  %v1106_v54 = vpop.permute.xlu2 %1105  ;;  %v1922_v63 = vmul.f32 %v1890_v6, %v3598_v5  ;;  %v3966_v11 = vperm.slane %v3311_v37, 1 }
 0x3e4   : > { %v2090_v45 = vrot.slane %v2089_v18, 1  ;;  %v2130_v33 = vrot.slane %v2129_v36, 4  ;;  %v1196_v20 = vmul.f32 %v1164_v24, %v1106_v54 }
 0x3e5   : > { %v2149_v10 = vmul.f32 %v2147_v39, %v3613_v40  ;;  %v2167_v0 = vmul.f32 %v2780_v52, %v2147_v39 }
 0x3e6   : > { %v2091_v31 = vadd.f32 %v2090_v45, %v2089_v18  ;;  %v2131_v32 = vadd.f32 %v2130_v33, %v2129_v36  ;;  %v3666_v41 = vadd.f32 %v1301_v26, %v1196_v20  ;;  %v3680_v36 = vpop.eup %2785 }
 0x3e7   : > { %v2151_v1 = vsel %vm871_vm2, %v2149_v10, 0.0  ;;  %v2169_v61 = vadd.f32 %v2167_v0, %v1923_v34  ;;  %v3683_v52 = vpop.eup %2787  ;;  %v3967_v0 = vperm.slane %v3311_v37, 0  ;;  %vm727_vm15 = vweird.f32 %v3680_v36 }
 0x3e8   : > { %2099 = vst.msk [vmem:[#allocation4 + $0x15] sm:$0x1] %vm1320_vm11, %v2091_v31  ;;  %v2132_v47 = vrot.slane %v2131_v32, 2  ;;  %v2152_v60 = vrot.slane %v2151_v1, 4  ;;  %v3674_v40 = vmul.f32 %v2782_v16, %v3666_v41  ;;  %v737_v16 = vmul.f32 %v3683_v52, %v3662_v19  ;;  %vm3738_vm5 = vmor %vm726_vm1, %vm727_vm15 }
 0x3e9   : > { %2697 = vset.pattern.permute.xlu2 %v3295_v21  ;;  %v2189_v55 = vmul.f32 %v2784_v27, %v2169_v61  ;;  %vm742_vm14 = vweird.f32 %v3683_v52 }
 0x3ea   : > { %v2133_v12 = vadd.f32 %v2132_v47, %v2131_v32  ;;  %v2153_v3 = vadd.f32 %v2152_v60, %v2151_v1  ;;  %1846 = vperm.xlu1 %2696, %v3966_v11   ;;  %v3695_v1 = vpop.permute.xlu0 %1154  ;;  %vm3732_vm3 = vmor %vm741_vm0, %vm742_vm14 }
 0x3eb   : > { %v2191_v18 = vadd.f32 %v2189_v55, %v1922_v63 }
 0x3ec   : > { %v2134_v43 = vrot.slane %v2133_v12, 1  ;;  %v2154_v24 = vrot.slane %v2153_v3, 2  ;;  %v1949_v4 = vpop.permute.xlu1 %1948 }
 0x3ed   : > { %v2193_v39 = vmul.f32 %v2191_v18, %v3595_v30  ;;  %v2171_v54 = vmul.f32 %v2169_v61, %v1949_v4  ;;  %v722_v30 = vmul.f32 %v3680_v36, %v3658_v46  ;;  %v3697_v61 = vpop.permute.xlu2 %1119 }
 0x3ee   : > { %v2135_v5 = vadd.f32 %v2134_v43, %v2133_v12  ;;  %v2155_v45 = vadd.f32 %v2154_v24, %v2153_v3  ;;  %v738_v12 = vsub.f32 1.0, %v737_v16  ;;  %v1758_v43 = vmul.f32 1.442695, %v3366_v35 }
 0x3ef   : > { %v2195_v33 = vsel %vm871_vm2, %v2193_v39, 0.0  ;;  %v2173_v20 = vsel %vm871_vm2, %v2171_v54, 0.0  ;;  %v723_v55 = vsub.f32 1.0, %v722_v30  ;;  %v3968_v39 = vperm.slane %v3311_v37, 3 }
 0x3f0   : > { %2143 = vst.msk [vmem:[#allocation4 + $0x13] sm:$0x1] %vm1320_vm11, %v2135_v5  ;;  %v2156_v26 = vrot.slane %v2155_v45, 1  ;;  %v2196_v34 = vrot.slane %v2195_v33, 4  ;;  %v2174_v10 = vrot.slane %v2173_v20, 4  ;;  %v739_v5 = vmul.f32 %v3683_v52, %v738_v12 }
 0x3f1   : > { %1990 = vperm.xlu2 %2697, %v3967_v0   ;;  %v724_v54 = vmul.f32 %v3680_v36, %v723_v55  ;;  %2789 = vpow2.f32 %v1758_v43  ;;  %v3971_v12 = vperm.slane %v3311_v37, 6 }
 0x3f2   : > { %v2157_v31 = vadd.f32 %v2156_v26, %v2155_v45  ;;  %v2197_v32 = vadd.f32 %v2196_v34, %v2195_v33  ;;  %v2175_v6 = vadd.f32 %v2174_v10, %v2173_v20  ;;  %2699 = vset.pattern.permute.xlu1 %v3295_v21  ;;  %v3711_v20 = vmul.f32 %v3353_v25, %v3282_v57 }
 0x3f3   : > { %v3713_v35 = vpop.permute.xlu0 %1274  ;;  %v730_v10 = vand.u32 2147483647, %v3658_v46  ;;  %v747_v25 = vand.u32 2147483648, %v3662_v19 }
 0x3f4   : > { %2165 = vst.msk [vmem:[#allocation4 + $0x12] sm:$0x1] %vm1320_vm11, %v2157_v31  ;;  %v2198_v27 = vrot.slane %v2197_v32, 2  ;;  %v2176_v47 = vrot.slane %v2175_v6, 2  ;;  %v1967_v60 = vpop.permute.xlu1 %1966  ;;  %v1777_v31 = vrot.slane %v3711_v20, 7 }
 0x3f5   : > { %v2105_v63 = vmul.f32 %v3641_v2, %v1967_v60  ;;  %v3718_v0 = vpop.permute.xlu2 %1133  ;;  %vm731_vm6 = vcmp.eq.f32.partialorder %v730_v10, 8.507059e+37 }
 0x3f6   : > { %v2199_v3 = vadd.f32 %v2198_v27, %v2197_v32  ;;  %v2177_v11 = vadd.f32 %v2176_v47, %v2175_v6  ;;  %v725_v32 = vadd.f32 %v3680_v36, %v724_v54  ;;  %v732_v27 = vand.u32 2147483648, %v3658_v46 }
 0x3f7   : > { %v2107_v18 = vsel %vm871_vm2, %v2105_v63, 0.0  ;;  %v2790_v55 = vpop.eup %2789  ;;  %v1905_v46 = vperm.slane %v1777_v31, 0 }
 0x3f8   : > { %v2200_v21 = vrot.slane %v2199_v3, 1  ;;  %v2178_v24 = vrot.slane %v2177_v11, 1  ;;  %v2108_v4 = vrot.slane %v2107_v18, 4  ;;  %v2035_v54 = vmul.f32 0.0, %v2790_v55 }
 0x3f9   : > { %2008 = vperm.xlu2 %2697, %v3968_v39   ;;  %v1756_v39 = vmul.f32 1.442695, %v3400_v8  ;;  %v1037_v8 = vrot.slane %v3649_v28, 1  ;;  %v1039_v55 = vrot.slane %v3649_v28, 3 }
 0x3fa   : > { %v2201_v45 = vadd.f32 %v2200_v21, %v2199_v3  ;;  %v2179_v2 = vadd.f32 %v2178_v24, %v2177_v11  ;;  %v2109_v33 = vadd.f32 %v2108_v4, %v2107_v18  ;;  %2002 = vperm.xlu1 %2699, %v1848_v15   ;;  %v740_v15 = vadd.f32 %v3683_v52, %v739_v5 }
 0x3fb   : > { %v748_v11 = vor.u32 1.1754944e-38, %v747_v25  ;;  %v729_v21 = vsel %vm3738_vm5, %v3680_v36, %v725_v32  ;;  %v733_v4 = vor.u32 1.1754944e-38, %v732_v27  ;;  %v1014_v36 = vmul.f32 1.442695, %v3378_v49 }
 0x3fc   : > { %2209 = vst.msk [vmem:[#allocation4 + $0x10] sm:$0x1] %vm1320_vm11, %v2201_v45  ;;  %v2110_v26 = vrot.slane %v2109_v33, 2  ;;  %v1985_v34 = vpop.permute.xlu1 %1984  ;;  %2791 = vpow2.f32 %v1756_v39  ;;  %v1038_v49 = vrot.slane %v3649_v28, 2  ;;  %v1165_v32 = vperm.slane %v1037_v8, 0 }
 0x3fd   : > { %2187 = vst.msk [vmem:[#allocation4 + $0x11] sm:$0x1] %vm1320_vm11, %v2179_v2  ;;  %v2038_v30 = vmul.f32 %v3608_v42, %v1985_v34  ;;  %v745_v42 = vand.u32 2147483647, %v3662_v19  ;;  %v744_v19 = vsel %vm3732_vm3, %v3683_v52, %v740_v15  ;;  %v734_v2 = vsel %vm731_vm6, %v733_v4, %v729_v21 }
 0x3fe   : > { %v2111_v16 = vadd.f32 %v2110_v26, %v2109_v33  ;;  %v1773_v33 = vrot.slane %v3711_v20, 3  ;;  %v3756_v26 = vpop.permute.xlu2 %1147  ;;  %2793 = vpow2.f32 %v1014_v36  ;;  %v1167_v21 = vperm.slane %v1039_v55, 0 }
 0x3ff   : > { %v2040_v6 = vsel %vm871_vm2, %v2038_v30, 0.0  ;;  %vm746_vm7 = vcmp.eq.f32.partialorder %v745_v42, 8.507059e+37  ;;  %v751_v30 = vmul.f32 %v734_v2, %v3177_v9  ;;  %v1018_v9 = vmul.f32 1.442695, %v3385_v58 }
 0x400   : > { %v2112_v47 = vrot.slane %v2111_v16, 1  ;;  %v2041_v60 = vrot.slane %v2040_v6, 4  ;;  %v749_v45 = vsel %vm746_vm7, %v748_v11, %v744_v19  ;;  %v1901_v25 = vperm.slane %v1773_v33, 0 }
 0x401   : > { %2026 = vperm.xlu2 %2697, %v3971_v12   ;;  %v752_v34 = vmul.f32 %v749_v45, %v3210_v38  ;;  %v1898_v11 = vperm.slane %v3711_v20, 0  ;;  %v1020_v58 = vmul.f32 1.442695, %v3388_v59  ;;  %v1041_v59 = vrot.slane %v3649_v28, 5 }
 0x402   : > { %v2113_v18 = vadd.f32 %v2112_v47, %v2111_v16  ;;  %v2042_v43 = vadd.f32 %v2041_v60, %v2040_v6  ;;  %2020 = vperm.xlu1 %2699, %v1869_v29   ;;  %v1016_v16 = vmul.f32 1.442695, %v3382_v56  ;;  %v2792_v27 = vpop.eup %2791  ;;  %v1166_v60 = vperm.slane %v1038_v49, 0 }
 0x403   : > { %v1889_v24 = vpop.permute.xlu0 %1888 }
 0x404   : > { %2121 = vst.msk [vmem:[#allocation4 + $0x14] sm:$0x1] %vm1320_vm11, %v2113_v18  ;;  %v2043_v52 = vrot.slane %v2042_v43, 2  ;;  %v1937_v5 = vmul.f32 %v1905_v46, %v1889_v24  ;;  %2795 = vpow2.f32 %v1016_v16  ;;  %v2794_v12 = vpop.eup %2793  ;;  %v1198_v3 = vmul.f32 %v1166_v60, %v3697_v61 }
 0x405   : > { %2797 = vpow2.f32 %v1018_v9  ;;  %v1040_v18 = vrot.slane %v3649_v28, 4  ;;  %v1022_v61 = vmul.f32 1.442695, %v3392_v62  ;;  %v1042_v62 = vrot.slane %v3649_v28, 6 }
 0x406   : > { %v2044_v37 = vadd.f32 %v2043_v52, %v2042_v43  ;;  %v3752_v29 = vadd.f32 %v2035_v54, %v1937_v5  ;;  %2799 = vpow2.f32 %v1020_v58  ;;  %v1169_v16 = vperm.slane %v1041_v59, 0 }
 0x407   : > { %v1168_v5 = vperm.slane %v1040_v18, 0  ;;  %2801 = vpow2.f32 %v1022_v61  ;;  %v1043_v60 = vrot.slane %v3649_v28, 7  ;;  %v1776_v59 = vrot.slane %v3711_v20, 6 }
 0x408   : > { %v2045_v10 = vrot.slane %v2044_v37, 1  ;;  %v3768_v47 = vmul.f32 %v2792_v27, %v3752_v29 }
 0x409   : > { %2230 = vrot.lane.b32.xlu2 %v752_v34, %s2925_s3  ;;  %v1200_v36 = vmul.f32 %v1168_v5, %v3718_v0  ;;  %v1754_v5 = vmul.f32 1.442695, %v3405_v22 }
 0x40a   : > { %v2046_v15 = vadd.f32 %v2045_v10, %v2044_v37  ;;  %2228 = vrot.lane.b32.xlu1 %v751_v30, %s2925_s3 }
 0x40b   : > { %v1861_v31 = vpop.permute.xlu0 %1860  ;;  %v1269_v63 = vpop.permute.xlu2 %1268 }
 0x40c   : > { %2055 = vst.msk [vmem:[#allocation4 + $0x17] sm:$0x1] %vm1320_vm11, %v2046_v15  ;;  %v3764_v38 = vmul.f32 %v1901_v25, %v1861_v31  ;;  %v1113_v6 = vpop.permute.xlu1 %1112  ;;  %v1024_v15 = vmul.f32 1.442695, %v3397_v7  ;;  %v1170_v7 = vperm.slane %v1042_v62, 0 }
 0x40d   : > { %v1197_v42 = vmul.f32 %v1165_v32, %v1113_v6 }
 0x40e   : > { %2803 = vpow2.f32 %v1024_v15 }
 0x40f   : > { %v3771_v56 = vadd.f32 %v3674_v40, %v1197_v42  ;;  %v2796_v40 = vpop.eup %2795  ;;  %2805 = vpow2.f32 %v1754_v5 }
 0x410   : > { %v2798_v37 = vpop.eup %2797 }
 0x411   : > { %v1346_v19 = vmul.f32 %v2794_v12, %v3771_v56  ;;  %v2800_v31 = vpop.eup %2799 }
 0x412   : > { %v2802_v55 = vpop.eup %2801 }
 0x413   : > { %v1348_v43 = vadd.f32 %v1346_v19, %v1198_v3  ;;  %v1840_v46 = vpop.permute.xlu0 %1839  ;;  %v1287_v10 = vpop.permute.xlu2 %1286  ;;  %v1202_v19 = vmul.f32 %v1170_v7, %v3756_v26 }
 0x414   : > { %v3779_v24 = vmul.f32 %v1898_v11, %v1840_v46  ;;  %v1127_v4 = vpop.permute.xlu1 %1126  ;;  %v1171_v46 = vperm.slane %v1043_v60, 0  ;;  %v2804_v28 = vpop.eup %2803 }
 0x415   : > { %v1350_v39 = vmul.f32 %v1348_v43, %v1269_v63  ;;  %v1199_v52 = vmul.f32 %v1167_v21, %v1127_v4  ;;  %v1368_v54 = vmul.f32 %v2796_v40, %v1348_v43 }
 0x416   : > { %v1203_v61 = vmul.f32 %v1171_v46, %v3695_v1 }
 0x417   : > { %v1358_v45 = vsel %vm871_vm2, %v1350_v39, 0.0  ;;  %v1370_v2 = vadd.f32 %v1368_v54, %v1199_v52 }
 0x418   : > { %v1359_v33 = vrot.slane %v1358_v45, 4 }
 0x419   : > { %v1372_v34 = vmul.f32 %v1370_v2, %v3713_v35  ;;  %v1390_v8 = vmul.f32 %v2798_v37, %v1370_v2 }
 0x41a   : > { %v1360_v30 = vadd.f32 %v1359_v33, %v1358_v45 }
 0x41b   : > { %v1380_v25 = vsel %vm871_vm2, %v1372_v34, 0.0  ;;  %v3789_v49 = vadd.f32 %v1390_v8, %v1200_v36  ;;  %v1299_v40 = vpop.permute.xlu2 %1298  ;;  %v1904_v8 = vperm.slane %v1776_v59, 0 }
 0x41c   : > { %v1361_v32 = vrot.slane %v1360_v30, 2  ;;  %v1381_v6 = vrot.slane %v1380_v25, 4  ;;  %v1141_v27 = vpop.permute.xlu1 %1140 }
 0x41d   : > { %v1201_v0 = vmul.f32 %v1169_v16, %v1141_v27  ;;  %v1412_v35 = vmul.f32 %v2800_v31, %v3789_v49  ;;  %v1752_v31 = vmul.f32 1.442695, %v3411_v44 }
 0x41e   : > { %v1362_v42 = vadd.f32 %v1361_v32, %v1360_v30  ;;  %v1382_v9 = vadd.f32 %v1381_v6, %v1380_v25 }
 0x41f   : > { %v1414_v63 = vadd.f32 %v1412_v35, %v1201_v0  ;;  %v1775_v0 = vrot.slane %v3711_v20, 5  ;;  %v2806_v35 = vpop.eup %2805  ;;  %2807 = vpow2.f32 %v1752_v31 }
 0x420   : > { %v1363_v12 = vrot.slane %v1362_v42, 1  ;;  %v1383_v3 = vrot.slane %v1382_v9, 2 }
 0x421   : > { %v1416_v11 = vmul.f32 %v1414_v63, %v1287_v10  ;;  %v1434_v58 = vmul.f32 %v2802_v55, %v1414_v63  ;;  %v1903_v44 = vperm.slane %v1775_v0, 0 }
 0x422   : > { %v1364_v18 = vadd.f32 %v1363_v12, %v1362_v42  ;;  %v1384_v43 = vadd.f32 %v1383_v3, %v1382_v9 }
 0x423   : > { %v1424_v21 = vsel %vm871_vm2, %v1416_v11, 0.0  ;;  %v3795_v4 = vadd.f32 %v1434_v58, %v1202_v19  ;;  %v3797_v39 = vpop.permute.xlu0 %1996 }
 0x424   : > { %1366 = vst.msk [vmem:[#allocation4 + $0xa] sm:$0x1] %vm1320_vm11, %v1364_v18  ;;  %v1385_v52 = vrot.slane %v1384_v43, 1  ;;  %v1425_v54 = vrot.slane %v1424_v21, 4 }
 0x425   : > { %v1456_v26 = vmul.f32 %v2804_v28, %v3795_v4  ;;  %v2808_v28 = vpop.eup %2807 }
 0x426   : > { %v1386_v45 = vadd.f32 %v1385_v52, %v1384_v43  ;;  %v1426_v2 = vadd.f32 %v1425_v54, %v1424_v21 }
 0x427   : > { %v1458_v37 = vadd.f32 %v1456_v26, %v1203_v61 }
 0x428   : > { %1388 = vst.msk [vmem:[#allocation4 + $0xb] sm:$0x1] %vm1320_vm11, %v1386_v45  ;;  %v1427_v33 = vrot.slane %v1426_v2, 2 }
 0x429   : > { %v1460_v36 = vmul.f32 %v1458_v37, %v1299_v40 }
 0x42a   : > { %v1428_v34 = vadd.f32 %v1427_v33, %v1426_v2 }
 0x42b   : > { %v1468_v10 = vsel %vm871_vm2, %v1460_v36, 0.0  ;;  %v3806_v30 = vpop.permute.xlu0 %2014  ;;  %v1882_v1 = vpop.permute.xlu2 %1881 }
 0x42c   : > { %v1429_v15 = vrot.slane %v1428_v34, 1  ;;  %v1469_v62 = vrot.slane %v1468_v10, 4  ;;  %v1257_v22 = vpop.permute.xlu1 %1256  ;;  %v1936_v25 = vmul.f32 %v1904_v8, %v1882_v1 }
 0x42d   : > { %v1305_v16 = vmul.f32 %v3666_v41, %v1257_v22 }
 0x42e   : > { %v1430_v32 = vadd.f32 %v1429_v15, %v1428_v34  ;;  %v1470_v6 = vadd.f32 %v1469_v62, %v1468_v10  ;;  %v3811_v27 = vadd.f32 %v3768_v47, %v1936_v25 }
 0x42f   : > { %v1313_v42 = vsel %vm871_vm2, %v1305_v16, 0.0 }
 0x430   : > { %1432 = vst.msk [vmem:[#allocation4 + $0xd] sm:$0x1] %vm1320_vm11, %v1430_v32  ;;  %v1471_v9 = vrot.slane %v1470_v6, 2  ;;  %v1314_v60 = vrot.slane %v1313_v42, 4  ;;  %v2080_v7 = vmul.f32 %v2806_v35, %v3811_v27 }
 0x432   : > { %v1472_v41 = vadd.f32 %v1471_v9, %v1470_v6  ;;  %v1315_v63 = vadd.f32 %v1314_v60, %v1313_v42 }
 0x433   : > { %v2033_v55 = vpop.permute.xlu0 %2032  ;;  %v1875_v12 = vpop.permute.xlu2 %1874 }
 0x434   : > { %v1473_v3 = vrot.slane %v1472_v41, 1  ;;  %v1316_v47 = vrot.slane %v1315_v63, 2  ;;  %v2039_v19 = vmul.f32 %v3752_v29, %v2033_v55  ;;  %v1263_v11 = vpop.permute.xlu1 %1262  ;;  %v1935_v58 = vmul.f32 %v1903_v44, %v1875_v12 }
 0x435   : > { %v1328_v18 = vmul.f32 %v3771_v56, %v1263_v11  ;;  %v1750_v44 = vmul.f32 1.442695, %v3418_v50  ;;  %v1774_v55 = vrot.slane %v3711_v20, 4 }
 0x436   : > { %v1474_v43 = vadd.f32 %v1473_v3, %v1472_v41  ;;  %v1317_v46 = vadd.f32 %v1316_v47, %v1315_v63  ;;  %v2047_v21 = vsel %vm871_vm2, %v2039_v19, 0.0  ;;  %v3820_v40 = vadd.f32 %v2080_v7, %v1935_v58 }
 0x437   : > { %v2048_v52 = vrot.slane %v2047_v21, 4  ;;  %v1336_v54 = vsel %vm871_vm2, %v1328_v18, 0.0  ;;  %2809 = vpow2.f32 %v1750_v44  ;;  %v1902_v47 = vperm.slane %v1774_v55, 0 }
 0x438   : > { %1476 = vst.msk [vmem:[#allocation4 + $0xf] sm:$0x1] %vm1320_vm11, %v1474_v43  ;;  %v1318_v61 = vrot.slane %v1317_v46, 1  ;;  %v1337_v26 = vrot.slane %v1336_v54, 4  ;;  %v2102_v29 = vmul.f32 %v2808_v28, %v3820_v40  ;;  %v1746_v18 = vmul.f32 1.442695, %v3424_v53 }
 0x439   : > { %v2049_v5 = vadd.f32 %v2048_v52, %v2047_v21  ;;  %v1772_v43 = vrot.slane %v3711_v20, 2  ;;  %v1744_v52 = vmul.f32 1.442695, %v3421_v51 }
 0x43a   : > { %v1319_v45 = vadd.f32 %v1318_v61, %v1317_v46  ;;  %v1338_v2 = vadd.f32 %v1337_v26, %v1336_v54  ;;  %v1771_v26 = vrot.slane %v3711_v20, 1 }
 0x43b   : > { %v2050_v56 = vrot.slane %v2049_v5, 2  ;;  %v1854_v16 = vpop.permute.xlu2 %1853 }
 0x43c   : > { %1322 = vst.msk [vmem:[#allocation4 + $0x8] sm:$0x1] %vm1320_vm11, %v1319_v45  ;;  %v1339_v59 = vrot.slane %v1338_v2, 2  ;;  %v1281_v37 = vpop.permute.xlu1 %1280 }
 0x43d   : > { %v2051_v33 = vadd.f32 %v2050_v56, %v2049_v5  ;;  %v1394_v36 = vmul.f32 %v3789_v49, %v1281_v37  ;;  %v2810_v50 = vpop.eup %2809 }
 0x43e   : > { %v1340_v34 = vadd.f32 %v1339_v59, %v1338_v2 }
 0x43f   : > { %v2052_v8 = vrot.slane %v2051_v33, 1  ;;  %v1402_v10 = vsel %vm871_vm2, %v1394_v36, 0.0  ;;  %v1899_v36 = vperm.slane %v1771_v26, 0 }
 0x440   : > { %v1341_v1 = vrot.slane %v1340_v34, 1  ;;  %v1403_v15 = vrot.slane %v1402_v10, 4 }
 0x441   : > { %v2053_v62 = vadd.f32 %v2052_v8, %v2051_v33 }
 0x442   : > { %v1342_v22 = vadd.f32 %v1341_v1, %v1340_v34  ;;  %v1404_v25 = vadd.f32 %v1403_v15, %v1402_v10 }
 0x443   : > { %2056 = vst.msk [vmem:[#allocation4 + $0x1f] sm:$0x1] %vm1320_vm11, %v2053_v62 }
 0x444   : > { %1344 = vst.msk [vmem:[#allocation4 + $0x9] sm:$0x1] %vm1320_vm11, %v1342_v22  ;;  %v1405_v31 = vrot.slane %v1404_v25, 2  ;;  %v1293_v32 = vpop.permute.xlu1 %1292 }
 0x445   : > { %v1438_v6 = vmul.f32 %v3795_v4, %v1293_v32  ;;  %v1748_v4 = vmul.f32 1.442695, %v3415_v48  ;;  %v1900_v48 = vperm.slane %v1772_v43, 0 }
 0x446   : > { %v1406_v0 = vadd.f32 %v1405_v31, %v1404_v25 }
 0x447   : > { %v1446_v49 = vsel %vm871_vm2, %v1438_v6, 0.0  ;;  %2811 = vpow2.f32 %v1748_v4 }
 0x448   : > { %v1407_v35 = vrot.slane %v1406_v0, 1  ;;  %v1447_v42 = vrot.slane %v1446_v49, 4  ;;  %2813 = vpow2.f32 %v1746_v18 }
 0x449   : > { %2815 = vpow2.f32 %v1744_v52 }
 0x44a   : > { %v1408_v9 = vadd.f32 %v1407_v35, %v1406_v0  ;;  %v1448_v60 = vadd.f32 %v1447_v42, %v1446_v49 }
 0x44b   : > { %v3832_v7 = vpop.permute.xlu2 %1990 }
 0x44c   : > { %1410 = vst.msk [vmem:[#allocation4 + $0xc] sm:$0x1] %vm1320_vm11, %v1408_v9  ;;  %v1449_v41 = vrot.slane %v1448_v60, 2 }
 0x44d   : > { %v2812_v45 = vpop.eup %2811 }
 0x44e   : > { %v1450_v63 = vadd.f32 %v1449_v41, %v1448_v60  ;;  %v2814_v8 = vpop.eup %2813 }
 0x44f   : > { %v2816_v31 = vpop.eup %2815 }
 0x450   : > { %v1451_v12 = vrot.slane %v1450_v63, 1 }
 0x452   : > { %v1452_v3 = vadd.f32 %v1451_v12, %v1450_v63 }
 0x453   : > { %v2009_v19 = vpop.permute.xlu2 %2008 }
 0x454   : > { %1454 = vst.msk [vmem:[#allocation4 + $0xe] sm:$0x1] %vm1320_vm11, %v1452_v3  ;;  %v1868_v11 = vpop.permute.xlu1 %1867 }
 0x455   : > { %v1934_v58 = vmul.f32 %v1902_v47, %v1868_v11 }
 0x457   : > { %v2104_v46 = vadd.f32 %v2102_v29, %v1934_v58  ;;  %v1932_v29 = vmul.f32 %v1900_v48, %v1854_v16 }
 0x459   : > { %v2106_v21 = vmul.f32 %v2104_v46, %v3806_v30  ;;  %v2124_v28 = vmul.f32 %v2810_v50, %v2104_v46 }
 0x45b   : > { %v2114_v54 = vsel %vm871_vm2, %v2106_v21, 0.0  ;;  %v2126_v61 = vadd.f32 %v2124_v28, %v3764_v38  ;;  %v2027_v5 = vpop.permute.xlu2 %2026 }
 0x45c   : > { %v2115_v53 = vrot.slane %v2114_v54, 4  ;;  %v2062_v2 = vmul.f32 %v3811_v27, %v2027_v5  ;;  %v1847_v37 = vpop.permute.xlu1 %1846 }
 0x45d   : > { %v2146_v56 = vmul.f32 %v2812_v45, %v2126_v61  ;;  %v2128_v59 = vmul.f32 %v2126_v61, %v2009_v19  ;;  %v1931_v1 = vmul.f32 %v1899_v36, %v1847_v37  ;;  %v2617_v45 = vld [vmem:[%s3088_s19 + $0x10] sm:$0xff]  ;;  %v2616_v37 = vld [vmem:[%s3088_s19 + $0x8] sm:$0xff] }
 0x45e   : > { %v2116_v30 = vadd.f32 %v2115_v53, %v2114_v54  ;;  %v2070_v51 = vsel %vm871_vm2, %v2062_v2, 0.0  ;;  %v2618_v54 = vld [vmem:[%s3088_s19 + $0x18] sm:$0xff] }
 0x45f   : > { %v2136_v33 = vsel %vm871_vm2, %v2128_v59, 0.0  ;;  %v2148_v34 = vadd.f32 %v2146_v56, %v1932_v29  ;;  %v2071_v38 = vrot.slane %v2070_v51, 4  ;;  %2276 = vmatpush.bf16.msra.mxu3 %v2618_v54 }
 0x460   : > { %v2117_v20 = vrot.slane %v2116_v30, 2  ;;  %v2137_v10 = vrot.slane %v2136_v33, 4 }
 0x461   : > { %v2168_v15 = vmul.f32 %v2814_v8, %v2148_v34  ;;  %v2072_v62 = vadd.f32 %v2071_v38, %v2070_v51 }
 0x462   : > { %v2118_v27 = vadd.f32 %v2117_v20, %v2116_v30  ;;  %v2138_v22 = vadd.f32 %v2137_v10, %v2136_v33  ;;  %v2705_v20 = vld [vmem:[%s3115_s20] ss:$0 sm:$0xff]  ;;  %v2706_v10 = vld [vmem:[%s3115_s20 + $0x1] ss:$0 sm:$0xff] }
 0x463   : > { %v2170_v25 = vadd.f32 %v2168_v15, %v1931_v1  ;;  %v2073_v16 = vrot.slane %v2072_v62, 2  ;;  %2277 = vmatpush.bf16.msra.mxu3 %v2617_v45  ;;  %v2220_v1 = vld [vmem:[#allocation4 + $0x10] sm:$0xff]  ;;  %v1480_v15 = vmul.f32 %v2705_v20, %v3271_v13 }
 0x464   : > { %v2119_v32 = vrot.slane %v2118_v27, 1  ;;  %v2139_v6 = vrot.slane %v2138_v22, 2 }
 0x465   : > { %v2172_v0 = vmul.f32 %v2170_v25, %v3797_v39  ;;  %v2190_v49 = vmul.f32 %v2816_v31, %v2170_v25  ;;  %v2074_v35 = vadd.f32 %v2073_v16, %v2072_v62  ;;  %v1481_v62 = vmul.f32 %v2705_v20, %v3274_v14  ;;  %v2218_v25 = vld [vmem:[#allocation4] sm:$0xff]  ;;  %v2219_v31 = vld [vmem:[#allocation4 + $0x8] sm:$0xff] }
 0x466   : > { %v2120_v42 = vadd.f32 %v2119_v32, %v2118_v27  ;;  %v2140_v9 = vadd.f32 %v2139_v6, %v2138_v22  ;;  %v2214_v27 = vmul.f32 %v2706_v10, %v3279_v23  ;;  %v2215_v22 = vmul.f32 %v2706_v10, %v3282_v57 }
 0x467   : > { %v2180_v60 = vsel %vm871_vm2, %v2172_v0, 0.0  ;;  %v2192_v41 = vadd.f32 %v2190_v49, %v3779_v24  ;;  %v2075_v63 = vrot.slane %v2074_v35, 1  ;;  %2278 = vmatpush.bf16.msra.mxu3 %v2616_v37  ;;  %v2222_v16 = vadd.f32 %v2220_v1, %v2218_v25 }
 0x468   : > { %2122 = vst.msk [vmem:[#allocation4 + $0x1c] sm:$0x1] %vm1320_vm11, %v2120_v42  ;;  %v2141_v44 = vrot.slane %v2140_v9, 1  ;;  %v2181_v55 = vrot.slane %v2180_v60, 4  ;;  %v2216_v6 = vadd.f32 %v2214_v27, %v1480_v15  ;;  %v2217_v0 = vadd.f32 %v2215_v22, %v1481_v62 }
 0x469   : > { %v2194_v12 = vmul.f32 %v2192_v41, %v3832_v7  ;;  %v2076_v3 = vadd.f32 %v2075_v63, %v2074_v35 }
 0x46a   : > { %v2142_v4 = vadd.f32 %v2141_v44, %v2140_v9  ;;  %v2182_v47 = vadd.f32 %v2181_v55, %v2180_v60  ;;  %v2224_v42 = vadd.f32 %v2222_v16, %v2216_v6  ;;  %v2231_v60 = vpop.permute.xlu2 %2230 }
 0x46b   : > { %v2202_v39 = vsel %vm871_vm2, %v2194_v12, 0.0  ;;  %2078 = vst.msk [vmem:[#allocation4 + $0x1e] sm:$0x1] %vm1320_vm11, %v2076_v3 }
 0x46c   : > { %2144 = vst.msk [vmem:[#allocation4 + $0x1b] sm:$0x1] %vm1320_vm11, %v2142_v4  ;;  %v2183_v19 = vrot.slane %v2182_v47, 2  ;;  %v2203_v11 = vrot.slane %v2202_v39, 4  ;;  %v2003_v24 = vpop.permute.xlu1 %2002 }
 0x46d   : > { %v2150_v58 = vmul.f32 %v2148_v34, %v2003_v24  ;;  %v2615_v34 = vld [vmem:[%s3088_s19] sm:$0xff] }
 0x46e   : > { %v2184_v18 = vadd.f32 %v2183_v19, %v2182_v47  ;;  %v2204_v43 = vadd.f32 %v2203_v11, %v2202_v39  ;;  %2279 = vmatpush.bf16.msra.mxu3 %v2615_v34 }
 0x46f   : > { %v2158_v46 = vsel %vm871_vm2, %v2150_v58, 0.0 }
 0x470   : > { %v2185_v7 = vrot.slane %v2184_v18, 1  ;;  %v2205_v50 = vrot.slane %v2204_v43, 2  ;;  %v2159_v21 = vrot.slane %v2158_v46, 4 }
 0x472   : > { %v2186_v28 = vadd.f32 %v2185_v7, %v2184_v18  ;;  %v2206_v52 = vadd.f32 %v2205_v50, %v2204_v43  ;;  %v2160_v48 = vadd.f32 %v2159_v21, %v2158_v46 }
 0x474   : > { %2188 = vst.msk [vmem:[#allocation4 + $0x19] sm:$0x1] %vm1320_vm11, %v2186_v28  ;;  %v2207_v61 = vrot.slane %v2206_v52, 1  ;;  %v2161_v26 = vrot.slane %v2160_v48, 2  ;;  %v2021_v5 = vpop.permute.xlu1 %2020 }
 0x475   : > { %v2084_v53 = vmul.f32 %v3820_v40, %v2021_v5 }
 0x476   : > { %v2208_v2 = vadd.f32 %v2207_v61, %v2206_v52  ;;  %v2162_v29 = vadd.f32 %v2161_v26, %v2160_v48 }
 0x477   : > { %v2092_v56 = vsel %vm871_vm2, %v2084_v53, 0.0 }
 0x478   : > { %2210 = vst.msk [vmem:[#allocation4 + $0x18] sm:$0x1] %vm1320_vm11, %v2208_v2  ;;  %v2163_v59 = vrot.slane %v2162_v29, 1  ;;  %v2093_v30 = vrot.slane %v2092_v56, 4 }
 0x47a   : > { %v2164_v51 = vadd.f32 %v2163_v59, %v2162_v29  ;;  %v2094_v33 = vadd.f32 %v2093_v30, %v2092_v56 }
 0x47c   : > { %2166 = vst.msk [vmem:[#allocation4 + $0x1a] sm:$0x1] %vm1320_vm11, %v2164_v51  ;;  %v2095_v36 = vrot.slane %v2094_v33, 2  ;;  %v2229_v35 = vpop.permute.xlu1 %2228 }
 0x47d   : > { %v2234_v41 = vmul.f32 %v2229_v35, %v2224_v42 }
 0x47e   : > { %v2096_v40 = vadd.f32 %v2095_v36, %v2094_v33 }
 0x480   : > { %v2097_v38 = vrot.slane %v2096_v40, 1 }
 0x482   : > { %v2098_v8 = vadd.f32 %v2097_v38, %v2096_v40 }
 0x484   : > { %2100 = vst.msk [vmem:[#allocation4 + $0x1d] sm:$0x1] %vm1320_vm11, %v2098_v8 }
 0x48b   : > { %v2221_v32 = vld [vmem:[#allocation4 + $0x18] sm:$0xff] }
 0x48c   : > { %v2223_v49 = vadd.f32 %v2221_v32, %v2219_v31 }
 0x48e   : > { %v2225_v9 = vadd.f32 %v2223_v49, %v2217_v0 }
 0x490   : > { %v2235_v63 = vmul.f32 %v2231_v60, %v2225_v9 }
 0x492   : > { %v2236_v13 = vpack.c.bf16 %v2235_v63, %v2234_v41 }
 0x494   : > { %2594 = vmatmul.msk.bf16.vlgmr.msra.gmra.mxu3 %vm871_vm2, %v2236_v13 }
 0x517   : > { %v2281_v14 = vpop.f32.mrf.mxu3 }
 0x518   : > { %2286 = vst.msk [vmem:[#allocation2] sm:$0xff] %vm634_vm4, %v2281_v14 }
 0x51c   : > { %2293 = sbr.rel (%p2595_p8) target bundleno = 1469 (0x5bd), region = 80 }
 0x51f   : > { %v2283_v23 = vpop.f32.mrf.mxu3 }
 0x520   : > { %2287 = vst.msk [vmem:[#allocation2 + $0x8] sm:$0xff] %vm634_vm4, %v2283_v23 }
 0x521   : > { %v2294_v57 = vadd.f32 %v2281_v14, %v3130_v17  ;;  %v3974_v55 = vld [vmem:[#allocation15_spill] sm:$0xff]  ;;  %v3975_v19 = vld [vmem:[#allocation16_spill] sm:$0xff]  ;;  %v2817_v54 = vld [vmem:[%s3917_s11] ss:$0 sm:$0xff] }
 0x522   : > { %v2295_v12 = vadd.f32 %v2283_v23, %v3974_v55 }
 0x523   : > { %v2297_v44 = vmul.f32 %v2294_v57, %v2294_v57 }
 0x524   : > { %v2298_v4 = vmul.f32 %v2295_v12, %v2295_v12 }
 0x525   : > { %v2299_v3 = vsel %vm634_vm4, %v2297_v44, 0.0 }
 0x526   : > { %2300 = vadd.xlane.f32.xlu0 %v2299_v3  ;;  %v2302_v47 = vsel %vm634_vm4, %v2298_v4, 0.0 }
 0x52e   : > { %2303 = vadd.xlane.f32.xlu0 %v2302_v47 }
 0x599   : > { %v2301_v39 = vpop.xlane.xlu0 %2300 }
 0x59a   : > { %v2305_v11 = vmul.f32 %v2301_v39, %v3975_v19 }
 0x59c   : > { %v2307_v24 = vadd.f32 1e-05, %v2305_v11 }
 0x59e   : > { %2818 = vrsqrt.f32 %v2307_v24  ;;  %vm2315_vm8 = vweird.f32 %v2307_v24 }
 0x5a1   : > { %v2304_v58 = vpop.xlane.xlu0 %2303 }
 0x5a2   : > { %v2306_v18 = vmul.f32 %v2304_v58, %v3975_v19 }
 0x5a4   : > { %v2819_v43 = vpop.eup %2818  ;;  %v2308_v17 = vadd.f32 1e-05, %v2306_v18 }
 0x5a5   : > { %v2310_v46 = vmul.f32 %v2819_v43, %v2307_v24  ;;  %vm2316_vm2 = vweird.f32 %v2819_v43 }
 0x5a6   : > { %2820 = vrsqrt.f32 %v2308_v17  ;;  %vm2317_vm9 = vmor %vm2315_vm8, %vm2316_vm2  ;;  %vm2325_vm11 = vweird.f32 %v2308_v17 }
 0x5a7   : > { %v2311_v7 = vmul.f32 %v2819_v43, %v2310_v46 }
 0x5a9   : > { %v2312_v50 = vmul.f32 0.5, %v2311_v7 }
 0x5ab   : > { %v2313_v21 = vsub.f32 1.5, %v2312_v50 }
 0x5ac   : > { %v2821_v28 = vpop.eup %2820 }
 0x5ad   : > { %v2314_v52 = vmul.f32 %v2819_v43, %v2313_v21  ;;  %v2320_v48 = vmul.f32 %v2821_v28, %v2308_v17  ;;  %vm2326_vm10 = vweird.f32 %v2821_v28 }
 0x5ae   : > { %vm2327_vm12 = vmor %vm2325_vm11, %vm2326_vm10 }
 0x5af   : > { %v2318_v61 = vsel %vm2317_vm9, %v2819_v43, %v2314_v52  ;;  %v2321_v26 = vmul.f32 %v2821_v28, %v2320_v48 }
 0x5b0   : > { %v2329_v5 = vmul.f32 %v2318_v61, %v2294_v57 }
 0x5b1   : > { %v2322_v45 = vmul.f32 0.5, %v2321_v26 }
 0x5b2   : > { %v2334_v53 = vmul.f32 %v2817_v54, %v2329_v5 }
 0x5b3   : > { %v2323_v2 = vsub.f32 1.5, %v2322_v45 }
 0x5b4   : > { %2336 = vst.msk [vmem:[#allocation8] sm:$0xff] %vm634_vm4, %v2334_v53 }
 0x5b5   : > { %v2324_v29 = vmul.f32 %v2821_v28, %v2323_v2 }
 0x5b7   : > { %v2328_v56 = vsel %vm2327_vm12, %v2821_v28, %v2324_v29 }
 0x5b8   : > { %v2330_v59 = vmul.f32 %v2328_v56, %v2295_v12 }
 0x5ba   : > { %v2335_v30 = vmul.f32 %v2817_v54, %v2330_v59 }
 0x5bc   : > { %2337 = vst.msk [vmem:[#allocation8 + $0x8] sm:$0xff] %vm634_vm4, %v2335_v30 }
 0x5bd PF: > { %p2632_p9 = scmp.eq.s32.totalorder %s3013_s25, 1  ;;  %s2926_s29 = smov [#allocation8]  }
 0x5be   : > { %s2343_s19 = sshll.u32 %s2926_s29, 4  ;;  %s2345_s15 = sshll.u32 %s3918_s12, 4  ;;  %s2344_s19 = int_to_ptr.vmem [resolvable:$true] %s2343_s19  ;;  %s2346_s15 = int_to_ptr.hbm [resolvable:$true] %s2345_s15 }
 0x5bf   : > { %s2927_s20 = smov 128   ;;  %s2928_s7 = smov 8  }
 0x5c0   : > { %2624 = dma.vmem_to_hbm [thread:$0]  (%p2632_p9), %s2344_s19, 256, %s2346_s15, [#allocation7], %s2927_s20, %s2927_s20, %s2928_s7  }
 0x5c1   : > { %2901 = dma.done.wait (%p2632_p9), [#allocation7], 256  }
 0x5c2   : > { %2903 = vsyncadd (%p2632_p9), [#allocation7], 4294967040 }
 0x5c3 PF: > { %s3976_s24 = sld [smem:[#allocation13_spill]] }
 0x5c4   : > { %s3977_s21 = sld [smem:[#allocation11_spill]] }
 0x5c5   : > { %s3978_s22 = sld [smem:[#allocation12_spill]] }
 0x5c6   : > { %s3979_s23 = sld [smem:[#allocation14_spill]] }
 0x5c9   : > { %p23_p10 = scmp.ge.s32.totalorder %s3976_s24, 4  }
 0x5cb   :  { %25 = sbr.rel (!%p23_p10) target bundleno = 8 (0x8), region = 144 }
 0x5d0   :  { %2362 = vsyncpa [#allocation6], 1 }
 0x5d1   :  { %2364 = vsyncpa [#allocation6 + $0x1], 1 }
 0x5d2   :  { %2365 = vsyncpa [#allocation7], 1 }
 0x5d3   :  { %2367 = vsyncpa [#allocation7 + $0x1], 1 }

</bundles_post_ra>
